<compile_context>
chip_gen: v7x
topology: tpu7x:2x2x1
jax: 0.10.0
libtpu: 0.0.40
codegen_flags: <defaults>
</compile_context>

<pallas_src>
import functools

import jax
import jax.numpy as jnp
from jax.experimental import pallas as pl
from jax.experimental.pallas import tpu as pltpu

EPS = 1e-5
HID = 100          # true GRU hidden size (PyTorch)
GP = 128           # per-gate padded hidden size (lane aligned)


def _round_up(x, m):
    return ((x + m - 1) // m) * m


def _default_vmem_limit():
    # Generation-aware scoped VMEM: ~60% of physical per-core VMEM
    # (128 MiB on v5e/v6e -> ~76 MiB, 64 MiB on v7x -> ~38 MiB).
    try:
        cap = int(getattr(pltpu.get_tpu_info(), "vmem_capacity_bytes", 0))
        if cap > 0:
            return int(cap * 0.6)
    except Exception:
        pass
    return 48 * 1024 * 1024


VMEM_LIMIT = _default_vmem_limit()


# ----------------------------------------------------------------------------
# Kernel 1: fused conv-as-matmul + BatchNorm (training-mode batch stats over the
#           per-timestep batch, as nn.BatchNorm2d in train()) + ReLU + 2x2 pool.
# Input patches are grouped by pool quadrant: x = [1, Q, K, Nq] with Q = 4 for
# pooled layers (conv1/conv2) and Q = 1 for conv3 (no pool).  For each quadrant
# a [Cout, K] x [K, Nq] matmul; BN stats accumulate across all Q*Nq pre-pool
# pixels; output = max over quadrants -> lane-dense [Cout, Nq] store (4x smaller
# writeback than the un-pooled tile).
# Grid axis = timestep ("parallel": shards across TensorCores on v7x).
# ----------------------------------------------------------------------------
def _conv_bn_relu_pool_kernel(x_ref, w_ref, g_ref, beta_ref, o_ref):
    w = w_ref[...]                                   # [Cout, K]
    q_count = x_ref.shape[1]
    nq = x_ref.shape[3]

    ys = []
    s = None
    ss = None
    for q in range(q_count):                         # static loop (Q = 1 or 4)
        y = jnp.dot(w, x_ref[0, q], preferred_element_type=jnp.float32)  # [Cout, Nq]
        ys.append(y)
        ps = jnp.sum(y, axis=1, keepdims=True)
        pss = jnp.sum(y * y, axis=1, keepdims=True)
        s = ps if s is None else s + ps
        ss = pss if ss is None else ss + pss

    inv_n = 1.0 / float(q_count * nq)
    mean = s * inv_n
    # Single-pass biased variance (train-mode BN).  NOTE: E[y^2]-mean^2 is less
    # numerically stable than the two-pass form when |mean| >> std.
    var = jnp.maximum(ss * inv_n - mean * mean, 0.0)
    scale = g_ref[...] * jax.lax.rsqrt(var + EPS)    # BN affine folded to scale/shift
    shift = beta_ref[...] - mean * scale

    out = None
    for q in range(q_count):
        a = jnp.maximum(ys[q] * scale + shift, 0.0)              # BN + ReLU
        out = a if out is None else jnp.maximum(out, a)          # fused 2x2 max-pool
    o_ref[0] = out


def conv_bn_relu_pool(patches, w_mat, gamma, beta):
    # patches: [T, Q, K, Nq], w_mat: [Cout, K], gamma/beta: [Cout, 1]
    T, Q, K, Nq = patches.shape
    C = w_mat.shape[0]
    return pl.pallas_call(
        _conv_bn_relu_pool_kernel,
        out_shape=jax.ShapeDtypeStruct((T, C, Nq), jnp.float32),
        grid=(T,),
        in_specs=[
            pl.BlockSpec((1, Q, K, Nq), lambda t: (t, 0, 0, 0)),
            pl.BlockSpec((C, K), lambda t: (0, 0)),
            pl.BlockSpec((C, 1), lambda t: (0, 0)),
            pl.BlockSpec((C, 1), lambda t: (0, 0)),
        ],
        out_specs=pl.BlockSpec((1, C, Nq), lambda t: (t, 0, 0)),
        compiler_params=pltpu.CompilerParams(
            dimension_semantics=("parallel",),
            vmem_limit_bytes=VMEM_LIMIT),
    )(patches, w_mat, gamma, beta)


# ----------------------------------------------------------------------------
# Kernel 2: GRU input projection  gi = feats @ W_ih + b_ih  as ONE GEMM over all
# (T*B) rows, tiled along M ("parallel" -> megacore shardable), W_ih resident.
# ----------------------------------------------------------------------------
def _gi_kernel(x_ref, w_ref, b_ref, o_ref):
    o_ref[...] = (jnp.dot(x_ref[...], w_ref[...], preferred_element_type=jnp.float32)
                  + b_ref[...])


def gi_proj(feats, w_ih, b_ih, tm):
    # feats: [Mp, D] with Mp % tm == 0
    Mp, D = feats.shape
    G3 = w_ih.shape[1]
    return pl.pallas_call(
        _gi_kernel,
        out_shape=jax.ShapeDtypeStruct((Mp, G3), jnp.float32),
        grid=(Mp // tm,),
        in_specs=[
            pl.BlockSpec((tm, D), lambda m: (m, 0)),
            pl.BlockSpec((D, G3), lambda m: (0, 0)),
            pl.BlockSpec((1, G3), lambda m: (0, 0)),
        ],
        out_specs=pl.BlockSpec((tm, G3), lambda m: (m, 0)),
        compiler_params=pltpu.CompilerParams(
            dimension_semantics=("parallel",),
            vmem_limit_bytes=VMEM_LIMIT),
    )(feats, w_ih, b_ih)


# ----------------------------------------------------------------------------
# Kernel 3: GRU recurrence streamed in T-chunks ("arbitrary" grid axis), hidden
# state carried in VMEM scratch, final Linear fused at the last chunk.
# PyTorch gate order (r, z, n):  n = tanh(gi_n + r*gh_n),  h = (1-z)*n + z*h.
# Gates are padded per-gate to GP=128 lanes (offsets 0/128/256); padded hidden
# lanes provably stay exactly 0 (zero-padded W/b columns, h(0)=0), and the FC
# weight rows for those lanes are 0.
# ----------------------------------------------------------------------------
def _gru_fc_kernel(gi_ref, whh_ref, bhh_ref, wfc_ref, bfc_ref, out_ref, h_ref,
                   *, t_total, tc):
    c = pl.program_id(0)

    @pl.when(c == 0)
    def _():
        h_ref[...] = jnp.zeros_like(h_ref)

    whh = whh_ref[...]                    # [GP, 3*GP]  (resident across the grid)
    bhh = bhh_ref[...]                    # [1, 3*GP]
    needs_guard = (t_total % tc) != 0     # static: only last chunk can be ragged

    # TODO(synk): if the bundle dump shows whh re-staged into the MXU every step,
    # drive it explicitly (pltpu.matmul_push_rhs once, matmul_acc_lhs per step).
    h = h_ref[...]
    for j in range(tc):                   # static unroll, capped at tc (<= 8)
        gi = gi_ref[j]                    # [B, 3*GP] precomputed input projection
        gh = jnp.dot(h, whh, preferred_element_type=jnp.float32) + bhh
        r = jax.nn.sigmoid(gi[:, 0:GP] + gh[:, 0:GP])
        z = jax.nn.sigmoid(gi[:, GP:2 * GP] + gh[:, GP:2 * GP])
        n = jnp.tanh(gi[:, 2 * GP:3 * GP] + r * gh[:, 2 * GP:3 * GP])
        h_new = (1.0 - z) * n + z * h
        if needs_guard:
            vf = ((c * tc + j) < t_total).astype(jnp.float32)
            h = vf * h_new + (1.0 - vf) * h
        else:
            h = h_new
    h_ref[...] = h

    @pl.when(c == pl.num_programs(0) - 1)
    def _():
        out_ref[...] = (jnp.dot(h, wfc_ref[...], preferred_element_type=jnp.float32)
                        + bfc_ref[...])


def gru_fc(gi, w_hh, b_hh, w_fc, b_fc, *, t_total, tc):
    Tp, B, G3 = gi.shape
    kernel = functools.partial(_gru_fc_kernel, t_total=t_total, tc=tc)
    return pl.pallas_call(
        kernel,
        out_shape=jax.ShapeDtypeStruct((B, GP), jnp.float32),
        grid=(Tp // tc,),
        in_specs=[
            pl.BlockSpec((tc, B, G3), lambda c: (c, 0, 0)),
            pl.BlockSpec((GP, G3), lambda c: (0, 0)),
            pl.BlockSpec((1, G3), lambda c: (0, 0)),
            pl.BlockSpec((GP, GP), lambda c: (0, 0)),
            pl.BlockSpec((1, GP), lambda c: (0, 0)),
        ],
        out_specs=pl.BlockSpec((B, GP), lambda c: (0, 0)),
        scratch_shapes=[pltpu.VMEM((B, GP), jnp.float32)],
        compiler_params=pltpu.CompilerParams(
            dimension_semantics=("arbitrary",),
            vmem_limit_bytes=VMEM_LIMIT),
    )(gi, w_hh, b_hh, w_fc, b_fc)


# ----------------------------------------------------------------------------
# JAX glue (pure data movement): zero padding + im2col patch assembly.
# Activations are kept channel-first: [T, C, B, H, W].
# ----------------------------------------------------------------------------
def _pad_hw(x, p):  # x: [T, C, B, H, W]
    return jnp.pad(x, ((0, 0), (0, 0), (0, 0), (p, p), (p, p)))


def _conv_taps(x, H, W):
    # x: [T, C, B, Hp, Wp] (padded) -> [T, C, 9, B, H, W]; tap order (kh, kw).
    taps = [x[:, :, :, kh:kh + H, kw:kw + W] for kh in range(3) for kw in range(3)]
    return jnp.stack(taps, axis=2)


def _patches_pooled(x, H, W):
    # im2col grouped by pool quadrant: [T, 4, C*9, B*(H//2)*(W//2)].
    # Quadrant q = dh*2 + dw holds the columns for output pixels (b, 2ho+dh, 2wo+dw);
    # K order (cin, kh, kw) matches w.reshape(Cout, Cin*9); Nq order (b, ho, wo).
    T, C, B = x.shape[0], x.shape[1], x.shape[2]
    p = _conv_taps(x, H, W)                                 # [T, C, 9, B, H, W]
    p = p.reshape(T, C * 9, B, H // 2, 2, W // 2, 2)        # (t, K, b, ho, dh, wo, dw)
    p = jnp.transpose(p, (0, 4, 6, 1, 2, 3, 5))             # (t, dh, dw, K, b, ho, wo)
    return p.reshape(T, 4, C * 9, B * (H // 2) * (W // 2))


def _patches_plain(x, H, W):
    # im2col, no pooling: [T, 1, C*9, B*H*W]; N order (b, h, w).
    T, C, B = x.shape[0], x.shape[1], x.shape[2]
    return _conv_taps(x, H, W).reshape(T, 1, C * 9, B * H * W)


# ----------------------------------------------------------------------------
# Forward pass equivalent to RNN_Net.forward
# ----------------------------------------------------------------------------
def rnn_net_forward(data, params):
    # data: [B, T, 1, 28, 28]  (PyTorch NCHW per timestep)
    B, T = data.shape[0], data.shape[1]
    x = jnp.transpose(data, (1, 2, 0, 3, 4)).astype(jnp.float32)   # [T,1,B,28,28]

    # conv1(pad=1) + bn1 + relu + fused maxpool2
    p1 = _patches_pooled(_pad_hw(x, 1), 28, 28)                    # [T,4,9,B*196]
    y1 = conv_bn_relu_pool(p1, params['w1'], params['g1'], params['be1'])
    y1 = y1.reshape(T, 16, B, 14, 14)

    # conv2(pad=2) + bn2 + relu + fused maxpool2
    p2 = _patches_pooled(_pad_hw(y1, 2), 16, 16)                   # [T,4,144,B*64]
    y2 = conv_bn_relu_pool(p2, params['w2'], params['g2'], params['be2'])
    y2 = y2.reshape(T, 32, B, 8, 8)

    # conv3(pad=1) + bn3 + relu (no pool)
    p3 = _patches_plain(_pad_hw(y2, 1), 8, 8)                      # [T,1,288,B*64]
    y3 = conv_bn_relu_pool(p3, params['w3'], params['g3'], params['be3'])
    y3 = y3.reshape(T, 16, B, 8, 8)

    # flatten exactly like torch's .view on NCHW: per-sample order (C, H, W)
    feats = jnp.transpose(y3, (0, 2, 1, 3, 4)).reshape(T * B, 8 * 8 * 16)

    # GRU input projection as one (T*B)-row GEMM, M-tiled & parallel.
    M = T * B
    TM = 256 if M >= 256 else _round_up(M, 8)
    Mp = _round_up(M, TM)
    if Mp != M:
        feats = jnp.pad(feats, ((0, Mp - M), (0, 0)))
    gi = gi_proj(feats, params['w_ih'], params['b_ih'], TM)[:M]    # [M, 384]
    gi = gi.reshape(T, B, 3 * GP)

    # Sequential GRU streamed in T-chunks + fused final Linear.
    TC = min(8, T)
    Tp = _round_up(T, TC)
    if Tp != T:
        gi = jnp.pad(gi, ((0, Tp - T), (0, 0), (0, 0)))            # guarded in-kernel
    out = gru_fc(gi, params['w_hh'], params['b_hh'], params['w_fc'], params['b_fc'],
                 t_total=T, tc=TC)
    return out[:, :10]                                             # drop fc padding lanes


# ----------------------------------------------------------------------------
# Parameter construction: torch-layout tensors packed into kernel layouts
# (conv [Cout, 9*Cin]; GRU per-gate 128-lane zero padding — pads MUST stay 0).
# Conv biases are omitted: a per-channel constant cancels exactly under
# training-mode BatchNorm batch statistics.
# ----------------------------------------------------------------------------
def _pack_params(p):
    def col(v):                     # [C] -> [C, 1]
        return v.reshape(-1, 1)

    def gate_pad_cols(w):           # torch [3*HID, in] -> [in, 3*GP], per-gate zero pad
        in_dim = w.shape[1]
        w3 = w.reshape(3, HID, in_dim)
        w3 = jnp.pad(w3, ((0, 0), (0, GP - HID), (0, 0)))
        return jnp.transpose(w3, (2, 0, 1)).reshape(in_dim, 3 * GP)

    def gate_pad_bias(b):           # [3*HID] -> [1, 3*GP]
        return jnp.pad(b.reshape(3, HID), ((0, 0), (0, GP - HID))).reshape(1, 3 * GP)

    w_hh = gate_pad_cols(p['w_hh'])                                # [HID, 3*GP]
    w_hh = jnp.pad(w_hh, ((0, GP - HID), (0, 0)))                  # [GP, 3*GP]
    w_fc = jnp.pad(p['w_fc'].T, ((0, GP - HID), (0, GP - 10)))     # [GP, GP]
    b_fc = jnp.pad(p['b_fc'].reshape(1, -1), ((0, 0), (0, GP - 10)))

    return dict(
        w1=p['w1'].reshape(16, 9),   g1=col(p['g1']), be1=col(p['be1']),
        w2=p['w2'].reshape(32, 144), g2=col(p['g2']), be2=col(p['be2']),
        w3=p['w3'].reshape(16, 288), g3=col(p['g3']), be3=col(p['be3']),
        w_ih=gate_pad_cols(p['w_ih']), b_ih=gate_pad_bias(p['b_ih']),
        w_hh=w_hh, b_hh=gate_pad_bias(p['b_hh']),
        w_fc=w_fc, b_fc=b_fc,
    )


def init_params(key):
    ks = jax.random.split(key, 15)

    def u(k, shape, scale):
        return jax.random.uniform(k, shape, jnp.float32, -1.0, 1.0) * scale

    raw = dict(
        w1=u(ks[0], (16, 1, 3, 3), 0.3),
        w2=u(ks[1], (32, 16, 3, 3), 0.1),
        w3=u(ks[2], (16, 32, 3, 3), 0.1),
        g1=1.0 + u(ks[3], (16,), 0.1),     be1=u(ks[4], (16,), 0.1),
        g2=1.0 + u(ks[5], (32,), 0.1),     be2=u(ks[6], (32,), 0.1),
        g3=1.0 + u(ks[7], (16,), 0.1),     be3=u(ks[8], (16,), 0.1),
        w_ih=u(ks[9], (3 * HID, 8 * 8 * 16), 0.03),    # torch [300, 1024]
        w_hh=u(ks[10], (3 * HID, HID), 0.1),           # torch [300, 100]
        b_ih=u(ks[11], (3 * HID,), 0.1),
        b_hh=u(ks[12], (3 * HID,), 0.1),
        w_fc=u(ks[13], (10, HID), 0.1),
        b_fc=u(ks[14], (10,), 0.1),
    )
    return _pack_params(raw)


if __name__ == "__main__":
    B, T = 2, 3   # small batch / short random-walk sequence; H=W=28 fixed by the model
    key = jax.random.PRNGKey(0)
    kd, kp = jax.random.split(key)
    data = jax.random.uniform(kd, (B, T, 1, 28, 28), jnp.float32)  # ~ MNIST/256 range
    params = init_params(kp)

    out = jax.jit(rnn_net_forward)(data, params)
    out = jax.block_until_ready(out)
    assert out.shape == (B, 10) and out.dtype == jnp.float32
    print("KERNEL_OK")
</pallas_src>

<mosaic_0001>
module attributes {stable_mosaic.version = 11 : i64} {
  func.func @_conv_bn_relu_pool_kernel(%arg0: i32, %arg1: memref<1x4x9x392xf32, #tpu.memory_space<vmem>>, %arg2: memref<16x9xf32, #tpu.memory_space<vmem>>, %arg3: memref<16x1xf32, #tpu.memory_space<vmem>>, %arg4: memref<16x1xf32, #tpu.memory_space<vmem>>, %arg5: memref<1x16x392xf32, #tpu.memory_space<vmem>>) attributes {dimension_semantics = [#tpu.dimension_semantics<parallel>], iteration_bounds = array<i64: 3>, scalar_prefetch = 0 : i64, scratch_operands = 0 : i64, tpu.core_type = #tpu.core_type<tc>, window_params = [{transform_indices = @transform_0, window_bounds = array<i64: 1, 4, 9, 392>}, {pipeline_mode = #tpu.pipeline_mode<synchronous>, transform_indices = @transform_1, window_bounds = array<i64: 16, 9>}, {pipeline_mode = #tpu.pipeline_mode<synchronous>, transform_indices = @transform_2, window_bounds = array<i64: 16, 1>}, {pipeline_mode = #tpu.pipeline_mode<synchronous>, transform_indices = @transform_3, window_bounds = array<i64: 16, 1>}, {transform_indices = @transform_4, window_bounds = array<i64: 1, 16, 392>}]} {
    %c0 = arith.constant 0 : index
    %c0_0 = arith.constant 0 : index
    %0 = vector.load %arg2[%c0, %c0_0] : memref<16x9xf32, #tpu.memory_space<vmem>>, vector<16x9xf32>
    %c0_1 = arith.constant 0 : index
    %c0_2 = arith.constant 0 : index
    %c0_3 = arith.constant 0 : index
    %c0_4 = arith.constant 0 : index
    %1 = vector.load %arg1[%c0_1, %c0_2, %c0_3, %c0_4] : memref<1x4x9x392xf32, #tpu.memory_space<vmem>>, vector<1x1x9x392xf32>
    %2 = vector.shape_cast %1 : vector<1x1x9x392xf32> to vector<9x392xf32>
    %cst = arith.constant dense<0.000000e+00> : vector<16x392xf32>
    %3 = tpu.matmul %0, %2, %cst {dimension_numbers = #tpu.dot_dimension_numbers<[1], [0], [0], [1], [0, 0, 1, 1], [], []>} : vector<16x9xf32>, vector<9x392xf32>, vector<16x392xf32> -> vector<16x392xf32>
    %cst_5 = arith.constant dense<0.000000e+00> : vector<16xf32>
    %4 = vector.multi_reduction <add>, %3, %cst_5 [1] : vector<16x392xf32> to vector<16xf32>
    %5 = vector.shape_cast %4 : vector<16xf32> to vector<16x1xf32>
    %6 = arith.mulf %3, %3 : vector<16x392xf32>
    %cst_6 = arith.constant dense<0.000000e+00> : vector<16xf32>
    %7 = vector.multi_reduction <add>, %6, %cst_6 [1] : vector<16x392xf32> to vector<16xf32>
    %8 = vector.shape_cast %7 : vector<16xf32> to vector<16x1xf32>
    %c0_7 = arith.constant 0 : index
    %c1 = arith.constant 1 : index
    %c0_8 = arith.constant 0 : index
    %c0_9 = arith.constant 0 : index
    %9 = vector.load %arg1[%c0_7, %c1, %c0_8, %c0_9] : memref<1x4x9x392xf32, #tpu.memory_space<vmem>>, vector<1x1x9x392xf32>
    %10 = vector.shape_cast %9 : vector<1x1x9x392xf32> to vector<9x392xf32>
    %cst_10 = arith.constant dense<0.000000e+00> : vector<16x392xf32>
    %11 = tpu.matmul %0, %10, %cst_10 {dimension_numbers = #tpu.dot_dimension_numbers<[1], [0], [0], [1], [0, 0, 1, 1], [], []>} : vector<16x9xf32>, vector<9x392xf32>, vector<16x392xf32> -> vector<16x392xf32>
    %cst_11 = arith.constant dense<0.000000e+00> : vector<16xf32>
    %12 = vector.multi_reduction <add>, %11, %cst_11 [1] : vector<16x392xf32> to vector<16xf32>
    %13 = vector.shape_cast %12 : vector<16xf32> to vector<16x1xf32>
    %14 = arith.mulf %11, %11 : vector<16x392xf32>
    %cst_12 = arith.constant dense<0.000000e+00> : vector<16xf32>
    %15 = vector.multi_reduction <add>, %14, %cst_12 [1] : vector<16x392xf32> to vector<16xf32>
    %16 = vector.shape_cast %15 : vector<16xf32> to vector<16x1xf32>
    %17 = arith.addf %5, %13 : vector<16x1xf32>
    %18 = arith.addf %8, %16 : vector<16x1xf32>
    %c0_13 = arith.constant 0 : index
    %c2 = arith.constant 2 : index
    %c0_14 = arith.constant 0 : index
    %c0_15 = arith.constant 0 : index
    %19 = vector.load %arg1[%c0_13, %c2, %c0_14, %c0_15] : memref<1x4x9x392xf32, #tpu.memory_space<vmem>>, vector<1x1x9x392xf32>
    %20 = vector.shape_cast %19 : vector<1x1x9x392xf32> to vector<9x392xf32>
    %cst_16 = arith.constant dense<0.000000e+00> : vector<16x392xf32>
    %21 = tpu.matmul %0, %20, %cst_16 {dimension_numbers = #tpu.dot_dimension_numbers<[1], [0], [0], [1], [0, 0, 1, 1], [], []>} : vector<16x9xf32>, vector<9x392xf32>, vector<16x392xf32> -> vector<16x392xf32>
    %cst_17 = arith.constant dense<0.000000e+00> : vector<16xf32>
    %22 = vector.multi_reduction <add>, %21, %cst_17 [1] : vector<16x392xf32> to vector<16xf32>
    %23 = vector.shape_cast %22 : vector<16xf32> to vector<16x1xf32>
    %24 = arith.mulf %21, %21 : vector<16x392xf32>
    %cst_18 = arith.constant dense<0.000000e+00> : vector<16xf32>
    %25 = vector.multi_reduction <add>, %24, %cst_18 [1] : vector<16x392xf32> to vector<16xf32>
    %26 = vector.shape_cast %25 : vector<16xf32> to vector<16x1xf32>
    %27 = arith.addf %17, %23 : vector<16x1xf32>
    %28 = arith.addf %18, %26 : vector<16x1xf32>
    %c0_19 = arith.constant 0 : index
    %c3 = arith.constant 3 : index
    %c0_20 = arith.constant 0 : index
    %c0_21 = arith.constant 0 : index
    %29 = vector.load %arg1[%c0_19, %c3, %c0_20, %c0_21] : memref<1x4x9x392xf32, #tpu.memory_space<vmem>>, vector<1x1x9x392xf32>
    %30 = vector.shape_cast %29 : vector<1x1x9x392xf32> to vector<9x392xf32>
    %cst_22 = arith.constant dense<0.000000e+00> : vector<16x392xf32>
    %31 = tpu.matmul %0, %30, %cst_22 {dimension_numbers = #tpu.dot_dimension_numbers<[1], [0], [0], [1], [0, 0, 1, 1], [], []>} : vector<16x9xf32>, vector<9x392xf32>, vector<16x392xf32> -> vector<16x392xf32>
    %cst_23 = arith.constant dense<0.000000e+00> : vector<16xf32>
    %32 = vector.multi_reduction <add>, %31, %cst_23 [1] : vector<16x392xf32> to vector<16xf32>
    %33 = vector.shape_cast %32 : vector<16xf32> to vector<16x1xf32>
    %34 = arith.mulf %31, %31 : vector<16x392xf32>
    %cst_24 = arith.constant dense<0.000000e+00> : vector<16xf32>
    %35 = vector.multi_reduction <add>, %34, %cst_24 [1] : vector<16x392xf32> to vector<16xf32>
    %36 = vector.shape_cast %35 : vector<16xf32> to vector<16x1xf32>
    %37 = arith.addf %27, %33 : vector<16x1xf32>
    %38 = arith.addf %28, %36 : vector<16x1xf32>
    %cst_25 = arith.constant 6.37755089E-4 : f32
    %39 = vector.broadcast %cst_25 : f32 to vector<16x1xf32>
    %40 = arith.mulf %37, %39 : vector<16x1xf32>
    %cst_26 = arith.constant 6.37755089E-4 : f32
    %41 = vector.broadcast %cst_26 : f32 to vector<16x1xf32>
    %42 = arith.mulf %38, %41 : vector<16x1xf32>
    %43 = arith.mulf %40, %40 : vector<16x1xf32>
    %44 = arith.subf %42, %43 : vector<16x1xf32>
    %cst_27 = arith.constant 0.000000e+00 : f32
    %45 = vector.broadcast %cst_27 : f32 to vector<16x1xf32>
    %46 = arith.maximumf %44, %45 : vector<16x1xf32>
    %c0_28 = arith.constant 0 : index
    %c0_29 = arith.constant 0 : index
    %47 = vector.load %arg3[%c0_28, %c0_29] : memref<16x1xf32, #tpu.memory_space<vmem>>, vector<16x1xf32>
    %cst_30 = arith.constant 9.99999974E-6 : f32
    %48 = vector.broadcast %cst_30 : f32 to vector<16x1xf32>
    %49 = arith.addf %46, %48 : vector<16x1xf32>
    %50 = math.rsqrt %49 : vector<16x1xf32>
    %51 = arith.mulf %47, %50 : vector<16x1xf32>
    %c0_31 = arith.constant 0 : index
    %c0_32 = arith.constant 0 : index
    %52 = vector.load %arg4[%c0_31, %c0_32] : memref<16x1xf32, #tpu.memory_space<vmem>>, vector<16x1xf32>
    %53 = arith.mulf %40, %51 : vector<16x1xf32>
    %54 = arith.subf %52, %53 : vector<16x1xf32>
    %55 = vector.broadcast %51 : vector<16x1xf32> to vector<16x392xf32>
    %56 = arith.mulf %3, %55 : vector<16x392xf32>
    %57 = vector.broadcast %54 : vector<16x1xf32> to vector<16x392xf32>
    %58 = arith.addf %56, %57 : vector<16x392xf32>
    %cst_33 = arith.constant 0.000000e+00 : f32
    %59 = vector.broadcast %cst_33 : f32 to vector<16x392xf32>
    %60 = arith.maximumf %58, %59 : vector<16x392xf32>
    %61 = vector.broadcast %51 : vector<16x1xf32> to vector<16x392xf32>
    %62 = arith.mulf %11, %61 : vector<16x392xf32>
    %63 = vector.broadcast %54 : vector<16x1xf32> to vector<16x392xf32>
    %64 = arith.addf %62, %63 : vector<16x392xf32>
    %cst_34 = arith.constant 0.000000e+00 : f32
    %65 = vector.broadcast %cst_34 : f32 to vector<16x392xf32>
    %66 = arith.maximumf %64, %65 : vector<16x392xf32>
    %67 = arith.maximumf %60, %66 : vector<16x392xf32>
    %68 = vector.broadcast %51 : vector<16x1xf32> to vector<16x392xf32>
    %69 = arith.mulf %21, %68 : vector<16x392xf32>
    %70 = vector.broadcast %54 : vector<16x1xf32> to vector<16x392xf32>
    %71 = arith.addf %69, %70 : vector<16x392xf32>
    %cst_35 = arith.constant 0.000000e+00 : f32
    %72 = vector.broadcast %cst_35 : f32 to vector<16x392xf32>
    %73 = arith.maximumf %71, %72 : vector<16x392xf32>
    %74 = arith.maximumf %67, %73 : vector<16x392xf32>
    %75 = vector.broadcast %51 : vector<16x1xf32> to vector<16x392xf32>
    %76 = arith.mulf %31, %75 : vector<16x392xf32>
    %77 = vector.broadcast %54 : vector<16x1xf32> to vector<16x392xf32>
    %78 = arith.addf %76, %77 : vector<16x392xf32>
    %cst_36 = arith.constant 0.000000e+00 : f32
    %79 = vector.broadcast %cst_36 : f32 to vector<16x392xf32>
    %80 = arith.maximumf %78, %79 : vector<16x392xf32>
    %81 = arith.maximumf %74, %80 : vector<16x392xf32>
    %c0_37 = arith.constant 0 : index
    %c0_38 = arith.constant 0 : index
    %c0_39 = arith.constant 0 : index
    %82 = vector.load %arg5[%c0_37, %c0_38, %c0_39] : memref<1x16x392xf32, #tpu.memory_space<vmem>>, vector<1x16x392xf32>
    %83 = vector.shape_cast %82 : vector<1x16x392xf32> to vector<16x392xf32>
    %84 = vector.shape_cast %81 : vector<16x392xf32> to vector<1x16x392xf32>
    tpu.vector_store %arg5[%c0_37, %c0_38, %c0_39], %84 {strides = array<i32>} : memref<1x16x392xf32, #tpu.memory_space<vmem>>, vector<1x16x392xf32>,
    return
  }
  func.func @transform_0(%arg0: i32) -> (i32, i32, i32, i32) {
    %c0_i32 = arith.constant 0 : i32
    %c0_i32_0 = arith.constant 0 : i32
    %c0_i32_1 = arith.constant 0 : i32
    %c0_i32_2 = arith.constant 0 : i32
    return %arg0, %c0_i32, %c0_i32_0, %c0_i32_1 : i32, i32, i32, i32
  }
  func.func @transform_1(%arg0: i32) -> (i32, i32) {
    %c0_i32 = arith.constant 0 : i32
    %c0_i32_0 = arith.constant 0 : i32
    %c0_i32_1 = arith.constant 0 : i32
    return %c0_i32, %c0_i32_0 : i32, i32
  }
  func.func @transform_2(%arg0: i32) -> (i32, i32) {
    %c0_i32 = arith.constant 0 : i32
    %c0_i32_0 = arith.constant 0 : i32
    %c0_i32_1 = arith.constant 0 : i32
    return %c0_i32, %c0_i32_0 : i32, i32
  }
  func.func @transform_3(%arg0: i32) -> (i32, i32) {
    %c0_i32 = arith.constant 0 : i32
    %c0_i32_0 = arith.constant 0 : i32
    %c0_i32_1 = arith.constant 0 : i32
    return %c0_i32, %c0_i32_0 : i32, i32
  }
  func.func @transform_4(%arg0: i32) -> (i32, i32, i32) {
    %c0_i32 = arith.constant 0 : i32
    %c0_i32_0 = arith.constant 0 : i32
    %c0_i32_1 = arith.constant 0 : i32
    return %arg0, %c0_i32, %c0_i32_0 : i32, i32, i32
  }
}

module attributes {stable_mosaic.version = 11 : i64} {
  func.func @_conv_bn_relu_pool_kernel(%arg0: i32, %arg1: memref<1x4x144x128xf32, #tpu.memory_space<vmem>>, %arg2: memref<32x144xf32, #tpu.memory_space<vmem>>, %arg3: memref<32x1xf32, #tpu.memory_space<vmem>>, %arg4: memref<32x1xf32, #tpu.memory_space<vmem>>, %arg5: memref<1x32x128xf32, #tpu.memory_space<vmem>>) attributes {dimension_semantics = [#tpu.dimension_semantics<parallel>], iteration_bounds = array<i64: 3>, scalar_prefetch = 0 : i64, scratch_operands = 0 : i64, tpu.core_type = #tpu.core_type<tc>, window_params = [{transform_indices = @transform_0, window_bounds = array<i64: 1, 4, 144, 128>}, {pipeline_mode = #tpu.pipeline_mode<synchronous>, transform_indices = @transform_1, window_bounds = array<i64: 32, 144>}, {pipeline_mode = #tpu.pipeline_mode<synchronous>, transform_indices = @transform_2, window_bounds = array<i64: 32, 1>}, {pipeline_mode = #tpu.pipeline_mode<synchronous>, transform_indices = @transform_3, window_bounds = array<i64: 32, 1>}, {transform_indices = @transform_4, window_bounds = array<i64: 1, 32, 128>}]} {
    %c0 = arith.constant 0 : index
    %c0_0 = arith.constant 0 : index
    %0 = vector.load %arg2[%c0, %c0_0] : memref<32x144xf32, #tpu.memory_space<vmem>>, vector<32x144xf32>
    %c0_1 = arith.constant 0 : index
    %c0_2 = arith.constant 0 : index
    %c0_3 = arith.constant 0 : index
    %c0_4 = arith.constant 0 : index
    %1 = vector.load %arg1[%c0_1, %c0_2, %c0_3, %c0_4] : memref<1x4x144x128xf32, #tpu.memory_space<vmem>>, vector<1x1x144x128xf32>
    %2 = vector.shape_cast %1 : vector<1x1x144x128xf32> to vector<144x128xf32>
    %cst = arith.constant dense<0.000000e+00> : vector<32x128xf32>
    %3 = tpu.matmul %0, %2, %cst {dimension_numbers = #tpu.dot_dimension_numbers<[1], [0], [0], [1], [0, 0, 1, 1], [], []>} : vector<32x144xf32>, vector<144x128xf32>, vector<32x128xf32> -> vector<32x128xf32>
    %cst_5 = arith.constant dense<0.000000e+00> : vector<32xf32>
    %4 = vector.multi_reduction <add>, %3, %cst_5 [1] : vector<32x128xf32> to vector<32xf32>
    %5 = vector.shape_cast %4 : vector<32xf32> to vector<32x1xf32>
    %6 = arith.mulf %3, %3 : vector<32x128xf32>
    %cst_6 = arith.constant dense<0.000000e+00> : vector<32xf32>
    %7 = vector.multi_reduction <add>, %6, %cst_6 [1] : vector<32x128xf32> to vector<32xf32>
    %8 = vector.shape_cast %7 : vector<32xf32> to vector<32x1xf32>
    %c0_7 = arith.constant 0 : index
    %c1 = arith.constant 1 : index
    %c0_8 = arith.constant 0 : index
    %c0_9 = arith.constant 0 : index
    %9 = vector.load %arg1[%c0_7, %c1, %c0_8, %c0_9] : memref<1x4x144x128xf32, #tpu.memory_space<vmem>>, vector<1x1x144x128xf32>
    %10 = vector.shape_cast %9 : vector<1x1x144x128xf32> to vector<144x128xf32>
    %cst_10 = arith.constant dense<0.000000e+00> : vector<32x128xf32>
    %11 = tpu.matmul %0, %10, %cst_10 {dimension_numbers = #tpu.dot_dimension_numbers<[1], [0], [0], [1], [0, 0, 1, 1], [], []>} : vector<32x144xf32>, vector<144x128xf32>, vector<32x128xf32> -> vector<32x128xf32>
    %cst_11 = arith.constant dense<0.000000e+00> : vector<32xf32>
    %12 = vector.multi_reduction <add>, %11, %cst_11 [1] : vector<32x128xf32> to vector<32xf32>
    %13 = vector.shape_cast %12 : vector<32xf32> to vector<32x1xf32>
    %14 = arith.mulf %11, %11 : vector<32x128xf32>
    %cst_12 = arith.constant dense<0.000000e+00> : vector<32xf32>
    %15 = vector.multi_reduction <add>, %14, %cst_12 [1] : vector<32x128xf32> to vector<32xf32>
    %16 = vector.shape_cast %15 : vector<32xf32> to vector<32x1xf32>
    %17 = arith.addf %5, %13 : vector<32x1xf32>
    %18 = arith.addf %8, %16 : vector<32x1xf32>
    %c0_13 = arith.constant 0 : index
    %c2 = arith.constant 2 : index
    %c0_14 = arith.constant 0 : index
    %c0_15 = arith.constant 0 : index
    %19 = vector.load %arg1[%c0_13, %c2, %c0_14, %c0_15] : memref<1x4x144x128xf32, #tpu.memory_space<vmem>>, vector<1x1x144x128xf32>
    %20 = vector.shape_cast %19 : vector<1x1x144x128xf32> to vector<144x128xf32>
    %cst_16 = arith.constant dense<0.000000e+00> : vector<32x128xf32>
    %21 = tpu.matmul %0, %20, %cst_16 {dimension_numbers = #tpu.dot_dimension_numbers<[1], [0], [0], [1], [0, 0, 1, 1], [], []>} : vector<32x144xf32>, vector<144x128xf32>, vector<32x128xf32> -> vector<32x128xf32>
    %cst_17 = arith.constant dense<0.000000e+00> : vector<32xf32>
    %22 = vector.multi_reduction <add>, %21, %cst_17 [1] : vector<32x128xf32> to vector<32xf32>
    %23 = vector.shape_cast %22 : vector<32xf32> to vector<32x1xf32>
    %24 = arith.mulf %21, %21 : vector<32x128xf32>
    %cst_18 = arith.constant dense<0.000000e+00> : vector<32xf32>
    %25 = vector.multi_reduction <add>, %24, %cst_18 [1] : vector<32x128xf32> to vector<32xf32>
    %26 = vector.shape_cast %25 : vector<32xf32> to vector<32x1xf32>
    %27 = arith.addf %17, %23 : vector<32x1xf32>
    %28 = arith.addf %18, %26 : vector<32x1xf32>
    %c0_19 = arith.constant 0 : index
    %c3 = arith.constant 3 : index
    %c0_20 = arith.constant 0 : index
    %c0_21 = arith.constant 0 : index
    %29 = vector.load %arg1[%c0_19, %c3, %c0_20, %c0_21] : memref<1x4x144x128xf32, #tpu.memory_space<vmem>>, vector<1x1x144x128xf32>
    %30 = vector.shape_cast %29 : vector<1x1x144x128xf32> to vector<144x128xf32>
    %cst_22 = arith.constant dense<0.000000e+00> : vector<32x128xf32>
    %31 = tpu.matmul %0, %30, %cst_22 {dimension_numbers = #tpu.dot_dimension_numbers<[1], [0], [0], [1], [0, 0, 1, 1], [], []>} : vector<32x144xf32>, vector<144x128xf32>, vector<32x128xf32> -> vector<32x128xf32>
    %cst_23 = arith.constant dense<0.000000e+00> : vector<32xf32>
    %32 = vector.multi_reduction <add>, %31, %cst_23 [1] : vector<32x128xf32> to vector<32xf32>
    %33 = vector.shape_cast %32 : vector<32xf32> to vector<32x1xf32>
    %34 = arith.mulf %31, %31 : vector<32x128xf32>
    %cst_24 = arith.constant dense<0.000000e+00> : vector<32xf32>
    %35 = vector.multi_reduction <add>, %34, %cst_24 [1] : vector<32x128xf32> to vector<32xf32>
    %36 = vector.shape_cast %35 : vector<32xf32> to vector<32x1xf32>
    %37 = arith.addf %27, %33 : vector<32x1xf32>
    %38 = arith.addf %28, %36 : vector<32x1xf32>
    %cst_25 = arith.constant 0.001953125 : f32
    %39 = vector.broadcast %cst_25 : f32 to vector<32x1xf32>
    %40 = arith.mulf %37, %39 : vector<32x1xf32>
    %cst_26 = arith.constant 0.001953125 : f32
    %41 = vector.broadcast %cst_26 : f32 to vector<32x1xf32>
    %42 = arith.mulf %38, %41 : vector<32x1xf32>
    %43 = arith.mulf %40, %40 : vector<32x1xf32>
    %44 = arith.subf %42, %43 : vector<32x1xf32>
    %cst_27 = arith.constant 0.000000e+00 : f32
    %45 = vector.broadcast %cst_27 : f32 to vector<32x1xf32>
    %46 = arith.maximumf %44, %45 : vector<32x1xf32>
    %c0_28 = arith.constant 0 : index
    %c0_29 = arith.constant 0 : index
    %47 = vector.load %arg3[%c0_28, %c0_29] : memref<32x1xf32, #tpu.memory_space<vmem>>, vector<32x1xf32>
    %cst_30 = arith.constant 9.99999974E-6 : f32
    %48 = vector.broadcast %cst_30 : f32 to vector<32x1xf32>
    %49 = arith.addf %46, %48 : vector<32x1xf32>
    %50 = math.rsqrt %49 : vector<32x1xf32>
    %51 = arith.mulf %47, %50 : vector<32x1xf32>
    %c0_31 = arith.constant 0 : index
    %c0_32 = arith.constant 0 : index
    %52 = vector.load %arg4[%c0_31, %c0_32] : memref<32x1xf32, #tpu.memory_space<vmem>>, vector<32x1xf32>
    %53 = arith.mulf %40, %51 : vector<32x1xf32>
    %54 = arith.subf %52, %53 : vector<32x1xf32>
    %55 = vector.broadcast %51 : vector<32x1xf32> to vector<32x128xf32>
    %56 = arith.mulf %3, %55 : vector<32x128xf32>
    %57 = vector.broadcast %54 : vector<32x1xf32> to vector<32x128xf32>
    %58 = arith.addf %56, %57 : vector<32x128xf32>
    %cst_33 = arith.constant 0.000000e+00 : f32
    %59 = vector.broadcast %cst_33 : f32 to vector<32x128xf32>
    %60 = arith.maximumf %58, %59 : vector<32x128xf32>
    %61 = vector.broadcast %51 : vector<32x1xf32> to vector<32x128xf32>
    %62 = arith.mulf %11, %61 : vector<32x128xf32>
    %63 = vector.broadcast %54 : vector<32x1xf32> to vector<32x128xf32>
    %64 = arith.addf %62, %63 : vector<32x128xf32>
    %cst_34 = arith.constant 0.000000e+00 : f32
    %65 = vector.broadcast %cst_34 : f32 to vector<32x128xf32>
    %66 = arith.maximumf %64, %65 : vector<32x128xf32>
    %67 = arith.maximumf %60, %66 : vector<32x128xf32>
    %68 = vector.broadcast %51 : vector<32x1xf32> to vector<32x128xf32>
    %69 = arith.mulf %21, %68 : vector<32x128xf32>
    %70 = vector.broadcast %54 : vector<32x1xf32> to vector<32x128xf32>
    %71 = arith.addf %69, %70 : vector<32x128xf32>
    %cst_35 = arith.constant 0.000000e+00 : f32
    %72 = vector.broadcast %cst_35 : f32 to vector<32x128xf32>
    %73 = arith.maximumf %71, %72 : vector<32x128xf32>
    %74 = arith.maximumf %67, %73 : vector<32x128xf32>
    %75 = vector.broadcast %51 : vector<32x1xf32> to vector<32x128xf32>
    %76 = arith.mulf %31, %75 : vector<32x128xf32>
    %77 = vector.broadcast %54 : vector<32x1xf32> to vector<32x128xf32>
    %78 = arith.addf %76, %77 : vector<32x128xf32>
    %cst_36 = arith.constant 0.000000e+00 : f32
    %79 = vector.broadcast %cst_36 : f32 to vector<32x128xf32>
    %80 = arith.maximumf %78, %79 : vector<32x128xf32>
    %81 = arith.maximumf %74, %80 : vector<32x128xf32>
    %c0_37 = arith.constant 0 : index
    %c0_38 = arith.constant 0 : index
    %c0_39 = arith.constant 0 : index
    %82 = vector.load %arg5[%c0_37, %c0_38, %c0_39] : memref<1x32x128xf32, #tpu.memory_space<vmem>>, vector<1x32x128xf32>
    %83 = vector.shape_cast %82 : vector<1x32x128xf32> to vector<32x128xf32>
    %84 = vector.shape_cast %81 : vector<32x128xf32> to vector<1x32x128xf32>
    tpu.vector_store %arg5[%c0_37, %c0_38, %c0_39], %84 {strides = array<i32>} : memref<1x32x128xf32, #tpu.memory_space<vmem>>, vector<1x32x128xf32>,
    return
  }
  func.func @transform_0(%arg0: i32) -> (i32, i32, i32, i32) {
    %c0_i32 = arith.constant 0 : i32
    %c0_i32_0 = arith.constant 0 : i32
    %c0_i32_1 = arith.constant 0 : i32
    %c0_i32_2 = arith.constant 0 : i32
    return %arg0, %c0_i32, %c0_i32_0, %c0_i32_1 : i32, i32, i32, i32
  }
  func.func @transform_1(%arg0: i32) -> (i32, i32) {
    %c0_i32 = arith.constant 0 : i32
    %c0_i32_0 = arith.constant 0 : i32
    %c0_i32_1 = arith.constant 0 : i32
    return %c0_i32, %c0_i32_0 : i32, i32
  }
  func.func @transform_2(%arg0: i32) -> (i32, i32) {
    %c0_i32 = arith.constant 0 : i32
    %c0_i32_0 = arith.constant 0 : i32
    %c0_i32_1 = arith.constant 0 : i32
    return %c0_i32, %c0_i32_0 : i32, i32
  }
  func.func @transform_3(%arg0: i32) -> (i32, i32) {
    %c0_i32 = arith.constant 0 : i32
    %c0_i32_0 = arith.constant 0 : i32
    %c0_i32_1 = arith.constant 0 : i32
    return %c0_i32, %c0_i32_0 : i32, i32
  }
  func.func @transform_4(%arg0: i32) -> (i32, i32, i32) {
    %c0_i32 = arith.constant 0 : i32
    %c0_i32_0 = arith.constant 0 : i32
    %c0_i32_1 = arith.constant 0 : i32
    return %arg0, %c0_i32, %c0_i32_0 : i32, i32, i32
  }
}

module attributes {stable_mosaic.version = 11 : i64} {
  func.func @_conv_bn_relu_pool_kernel(%arg0: i32, %arg1: memref<1x1x288x128xf32, #tpu.memory_space<vmem>>, %arg2: memref<16x288xf32, #tpu.memory_space<vmem>>, %arg3: memref<16x1xf32, #tpu.memory_space<vmem>>, %arg4: memref<16x1xf32, #tpu.memory_space<vmem>>, %arg5: memref<1x16x128xf32, #tpu.memory_space<vmem>>) attributes {dimension_semantics = [#tpu.dimension_semantics<parallel>], iteration_bounds = array<i64: 3>, scalar_prefetch = 0 : i64, scratch_operands = 0 : i64, tpu.core_type = #tpu.core_type<tc>, window_params = [{transform_indices = @transform_0, window_bounds = array<i64: 1, 1, 288, 128>}, {pipeline_mode = #tpu.pipeline_mode<synchronous>, transform_indices = @transform_1, window_bounds = array<i64: 16, 288>}, {pipeline_mode = #tpu.pipeline_mode<synchronous>, transform_indices = @transform_2, window_bounds = array<i64: 16, 1>}, {pipeline_mode = #tpu.pipeline_mode<synchronous>, transform_indices = @transform_3, window_bounds = array<i64: 16, 1>}, {transform_indices = @transform_4, window_bounds = array<i64: 1, 16, 128>}]} {
    %c0 = arith.constant 0 : index
    %c0_0 = arith.constant 0 : index
    %0 = vector.load %arg2[%c0, %c0_0] : memref<16x288xf32, #tpu.memory_space<vmem>>, vector<16x288xf32>
    %c0_1 = arith.constant 0 : index
    %c0_2 = arith.constant 0 : index
    %c0_3 = arith.constant 0 : index
    %c0_4 = arith.constant 0 : index
    %1 = vector.load %arg1[%c0_1, %c0_2, %c0_3, %c0_4] : memref<1x1x288x128xf32, #tpu.memory_space<vmem>>, vector<1x1x288x128xf32>
    %2 = vector.shape_cast %1 : vector<1x1x288x128xf32> to vector<288x128xf32>
    %cst = arith.constant dense<0.000000e+00> : vector<16x128xf32>
    %3 = tpu.matmul %0, %2, %cst {dimension_numbers = #tpu.dot_dimension_numbers<[1], [0], [0], [1], [0, 0, 1, 1], [], []>} : vector<16x288xf32>, vector<288x128xf32>, vector<16x128xf32> -> vector<16x128xf32>
    %cst_5 = arith.constant dense<0.000000e+00> : vector<16xf32>
    %4 = vector.multi_reduction <add>, %3, %cst_5 [1] : vector<16x128xf32> to vector<16xf32>
    %5 = vector.shape_cast %4 : vector<16xf32> to vector<16x1xf32>
    %6 = arith.mulf %3, %3 : vector<16x128xf32>
    %cst_6 = arith.constant dense<0.000000e+00> : vector<16xf32>
    %7 = vector.multi_reduction <add>, %6, %cst_6 [1] : vector<16x128xf32> to vector<16xf32>
    %8 = vector.shape_cast %7 : vector<16xf32> to vector<16x1xf32>
    %cst_7 = arith.constant 7.812500e-03 : f32
    %9 = vector.broadcast %cst_7 : f32 to vector<16x1xf32>
    %10 = arith.mulf %5, %9 : vector<16x1xf32>
    %cst_8 = arith.constant 7.812500e-03 : f32
    %11 = vector.broadcast %cst_8 : f32 to vector<16x1xf32>
    %12 = arith.mulf %8, %11 : vector<16x1xf32>
    %13 = arith.mulf %10, %10 : vector<16x1xf32>
    %14 = arith.subf %12, %13 : vector<16x1xf32>
    %cst_9 = arith.constant 0.000000e+00 : f32
    %15 = vector.broadcast %cst_9 : f32 to vector<16x1xf32>
    %16 = arith.maximumf %14, %15 : vector<16x1xf32>
    %c0_10 = arith.constant 0 : index
    %c0_11 = arith.constant 0 : index
    %17 = vector.load %arg3[%c0_10, %c0_11] : memref<16x1xf32, #tpu.memory_space<vmem>>, vector<16x1xf32>
    %cst_12 = arith.constant 9.99999974E-6 : f32
    %18 = vector.broadcast %cst_12 : f32 to vector<16x1xf32>
    %19 = arith.addf %16, %18 : vector<16x1xf32>
    %20 = math.rsqrt %19 : vector<16x1xf32>
    %21 = arith.mulf %17, %20 : vector<16x1xf32>
    %c0_13 = arith.constant 0 : index
    %c0_14 = arith.constant 0 : index
    %22 = vector.load %arg4[%c0_13, %c0_14] : memref<16x1xf32, #tpu.memory_space<vmem>>, vector<16x1xf32>
    %23 = arith.mulf %10, %21 : vector<16x1xf32>
    %24 = arith.subf %22, %23 : vector<16x1xf32>
    %25 = vector.broadcast %21 : vector<16x1xf32> to vector<16x128xf32>
    %26 = arith.mulf %3, %25 : vector<16x128xf32>
    %27 = vector.broadcast %24 : vector<16x1xf32> to vector<16x128xf32>
    %28 = arith.addf %26, %27 : vector<16x128xf32>
    %cst_15 = arith.constant 0.000000e+00 : f32
    %29 = vector.broadcast %cst_15 : f32 to vector<16x128xf32>
    %30 = arith.maximumf %28, %29 : vector<16x128xf32>
    %c0_16 = arith.constant 0 : index
    %c0_17 = arith.constant 0 : index
    %c0_18 = arith.constant 0 : index
    %31 = vector.load %arg5[%c0_16, %c0_17, %c0_18] : memref<1x16x128xf32, #tpu.memory_space<vmem>>, vector<1x16x128xf32>
    %32 = vector.shape_cast %31 : vector<1x16x128xf32> to vector<16x128xf32>
    %33 = vector.shape_cast %30 : vector<16x128xf32> to vector<1x16x128xf32>
    tpu.vector_store %arg5[%c0_16, %c0_17, %c0_18], %33 {strides = array<i32>} : memref<1x16x128xf32, #tpu.memory_space<vmem>>, vector<1x16x128xf32>,
    return
  }
  func.func @transform_0(%arg0: i32) -> (i32, i32, i32, i32) {
    %c0_i32 = arith.constant 0 : i32
    %c0_i32_0 = arith.constant 0 : i32
    %c0_i32_1 = arith.constant 0 : i32
    %c0_i32_2 = arith.constant 0 : i32
    return %arg0, %c0_i32, %c0_i32_0, %c0_i32_1 : i32, i32, i32, i32
  }
  func.func @transform_1(%arg0: i32) -> (i32, i32) {
    %c0_i32 = arith.constant 0 : i32
    %c0_i32_0 = arith.constant 0 : i32
    %c0_i32_1 = arith.constant 0 : i32
    return %c0_i32, %c0_i32_0 : i32, i32
  }
  func.func @transform_2(%arg0: i32) -> (i32, i32) {
    %c0_i32 = arith.constant 0 : i32
    %c0_i32_0 = arith.constant 0 : i32
    %c0_i32_1 = arith.constant 0 : i32
    return %c0_i32, %c0_i32_0 : i32, i32
  }
  func.func @transform_3(%arg0: i32) -> (i32, i32) {
    %c0_i32 = arith.constant 0 : i32
    %c0_i32_0 = arith.constant 0 : i32
    %c0_i32_1 = arith.constant 0 : i32
    return %c0_i32, %c0_i32_0 : i32, i32
  }
  func.func @transform_4(%arg0: i32) -> (i32, i32, i32) {
    %c0_i32 = arith.constant 0 : i32
    %c0_i32_0 = arith.constant 0 : i32
    %c0_i32_1 = arith.constant 0 : i32
    return %arg0, %c0_i32, %c0_i32_0 : i32, i32, i32
  }
}

module attributes {stable_mosaic.version = 11 : i64} {
  func.func @_gi_kernel(%arg0: i32, %arg1: memref<8x1024xf32, #tpu.memory_space<vmem>>, %arg2: memref<1024x384xf32, #tpu.memory_space<vmem>>, %arg3: memref<1x384xf32, #tpu.memory_space<vmem>>, %arg4: memref<8x384xf32, #tpu.memory_space<vmem>>) attributes {dimension_semantics = [#tpu.dimension_semantics<parallel>], iteration_bounds = array<i64: 1>, scalar_prefetch = 0 : i64, scratch_operands = 0 : i64, tpu.core_type = #tpu.core_type<tc>, window_params = [{transform_indices = @transform_0, window_bounds = array<i64: 8, 1024>}, {pipeline_mode = #tpu.pipeline_mode<synchronous>, transform_indices = @transform_1, window_bounds = array<i64: 1024, 384>}, {pipeline_mode = #tpu.pipeline_mode<synchronous>, transform_indices = @transform_2, window_bounds = array<i64: 1, 384>}, {transform_indices = @transform_3, window_bounds = array<i64: 8, 384>}]} {
    %c0 = arith.constant 0 : index
    %c0_0 = arith.constant 0 : index
    %0 = vector.load %arg1[%c0, %c0_0] : memref<8x1024xf32, #tpu.memory_space<vmem>>, vector<8x1024xf32>
    %c0_1 = arith.constant 0 : index
    %c0_2 = arith.constant 0 : index
    %1 = vector.load %arg2[%c0_1, %c0_2] : memref<1024x384xf32, #tpu.memory_space<vmem>>, vector<1024x384xf32>
    %cst = arith.constant dense<0.000000e+00> : vector<8x384xf32>
    %2 = tpu.matmul %0, %1, %cst {dimension_numbers = #tpu.dot_dimension_numbers<[1], [0], [0], [1], [0, 0, 1, 1], [], []>} : vector<8x1024xf32>, vector<1024x384xf32>, vector<8x384xf32> -> vector<8x384xf32>
    %c0_3 = arith.constant 0 : index
    %c0_4 = arith.constant 0 : index
    %3 = vector.load %arg3[%c0_3, %c0_4] : memref<1x384xf32, #tpu.memory_space<vmem>>, vector<1x384xf32>
    %4 = vector.broadcast %3 : vector<1x384xf32> to vector<8x384xf32>
    %5 = arith.addf %2, %4 : vector<8x384xf32>
    %c0_5 = arith.constant 0 : index
    %c0_6 = arith.constant 0 : index
    %6 = vector.load %arg4[%c0_5, %c0_6] : memref<8x384xf32, #tpu.memory_space<vmem>>, vector<8x384xf32>
    tpu.vector_store %arg4[%c0_5, %c0_6], %5 {strides = array<i32>} : memref<8x384xf32, #tpu.memory_space<vmem>>, vector<8x384xf32>,
    return
  }
  func.func @transform_0(%arg0: i32) -> (i32, i32) {
    %c0_i32 = arith.constant 0 : i32
    %c0_i32_0 = arith.constant 0 : i32
    return %arg0, %c0_i32 : i32, i32
  }
  func.func @transform_1(%arg0: i32) -> (i32, i32) {
    %c0_i32 = arith.constant 0 : i32
    %c0_i32_0 = arith.constant 0 : i32
    %c0_i32_1 = arith.constant 0 : i32
    return %c0_i32, %c0_i32_0 : i32, i32
  }
  func.func @transform_2(%arg0: i32) -> (i32, i32) {
    %c0_i32 = arith.constant 0 : i32
    %c0_i32_0 = arith.constant 0 : i32
    %c0_i32_1 = arith.constant 0 : i32
    return %c0_i32, %c0_i32_0 : i32, i32
  }
  func.func @transform_3(%arg0: i32) -> (i32, i32) {
    %c0_i32 = arith.constant 0 : i32
    %c0_i32_0 = arith.constant 0 : i32
    return %arg0, %c0_i32 : i32, i32
  }
}

module attributes {stable_mosaic.version = 11 : i64} {
  func.func @_gru_fc_kernel(%arg0: i32, %arg1: memref<3x2x384xf32, #tpu.memory_space<vmem>>, %arg2: memref<128x384xf32, #tpu.memory_space<vmem>>, %arg3: memref<1x384xf32, #tpu.memory_space<vmem>>, %arg4: memref<128x128xf32, #tpu.memory_space<vmem>>, %arg5: memref<1x128xf32, #tpu.memory_space<vmem>>, %arg6: memref<2x128xf32, #tpu.memory_space<vmem>>, %arg7: memref<2x128xf32, #tpu.memory_space<vmem>>) attributes {dimension_semantics = [#tpu.dimension_semantics<arbitrary>], iteration_bounds = array<i64: 1>, scalar_prefetch = 0 : i64, scratch_operands = 1 : i64, tpu.core_type = #tpu.core_type<tc>, window_params = [{transform_indices = @transform_0, window_bounds = array<i64: 3, 2, 384>}, {pipeline_mode = #tpu.pipeline_mode<synchronous>, transform_indices = @transform_1, window_bounds = array<i64: 128, 384>}, {pipeline_mode = #tpu.pipeline_mode<synchronous>, transform_indices = @transform_2, window_bounds = array<i64: 1, 384>}, {pipeline_mode = #tpu.pipeline_mode<synchronous>, transform_indices = @transform_3, window_bounds = array<i64: 128, 128>}, {pipeline_mode = #tpu.pipeline_mode<synchronous>, transform_indices = @transform_4, window_bounds = array<i64: 1, 128>}, {pipeline_mode = #tpu.pipeline_mode<synchronous>, transform_indices = @transform_5, window_bounds = array<i64: 2, 128>}]} {
    %c0_i32 = arith.constant 0 : i32
    %0 = arith.cmpi eq, %arg0, %c0_i32 : i32
    %1 = arith.extui %0 : i1 to i32
    %c0_i32_0 = arith.constant 0 : i32
    %2 = arith.cmpi ne, %1, %c0_i32_0 : i32
    scf.if %2 {
      %cst_28 = arith.constant 0.000000e+00 : f32
      %103 = vector.broadcast %cst_28 : f32 to vector<2x128xf32>
      %c0_29 = arith.constant 0 : index
      %c0_30 = arith.constant 0 : index
      %104 = vector.load %arg7[%c0_29, %c0_30] : memref<2x128xf32, #tpu.memory_space<vmem>>, vector<2x128xf32>
      tpu.vector_store %arg7[%c0_29, %c0_30], %103 {strides = array<i32>} : memref<2x128xf32, #tpu.memory_space<vmem>>, vector<2x128xf32>,
    } else {
    }
    %c0 = arith.constant 0 : index
    %c0_1 = arith.constant 0 : index
    %3 = vector.load %arg2[%c0, %c0_1] : memref<128x384xf32, #tpu.memory_space<vmem>>, vector<128x384xf32>
    %c0_2 = arith.constant 0 : index
    %c0_3 = arith.constant 0 : index
    %4 = vector.load %arg3[%c0_2, %c0_3] : memref<1x384xf32, #tpu.memory_space<vmem>>, vector<1x384xf32>
    %c0_4 = arith.constant 0 : index
    %c0_5 = arith.constant 0 : index
    %5 = vector.load %arg7[%c0_4, %c0_5] : memref<2x128xf32, #tpu.memory_space<vmem>>, vector<2x128xf32>
    %c0_6 = arith.constant 0 : index
    %c0_7 = arith.constant 0 : index
    %c0_8 = arith.constant 0 : index
    %6 = vector.load %arg1[%c0_6, %c0_7, %c0_8] : memref<3x2x384xf32, #tpu.memory_space<vmem>>, vector<1x2x384xf32>
    %7 = vector.shape_cast %6 : vector<1x2x384xf32> to vector<2x384xf32>
    %cst = arith.constant dense<0.000000e+00> : vector<2x384xf32>
    %8 = tpu.matmul %5, %3, %cst {dimension_numbers = #tpu.dot_dimension_numbers<[1], [0], [0], [1], [0, 0, 1, 1], [], []>} : vector<2x128xf32>, vector<128x384xf32>, vector<2x384xf32> -> vector<2x384xf32>
    %9 = vector.broadcast %4 : vector<1x384xf32> to vector<2x384xf32>
    %10 = arith.addf %8, %9 : vector<2x384xf32>
    %11 = vector.extract_strided_slice %7 {offsets = [0, 0], sizes = [2, 128], strides = [1, 1]} : vector<2x384xf32> to vector<2x128xf32>
    %12 = vector.extract_strided_slice %10 {offsets = [0, 0], sizes = [2, 128], strides = [1, 1]} : vector<2x384xf32> to vector<2x128xf32>
    %13 = arith.addf %11, %12 : vector<2x128xf32>
    %14 = arith.negf %13 : vector<2x128xf32>
    %15 = math.exp %14 : vector<2x128xf32>
    %cst_9 = arith.constant 1.000000e+00 : f32
    %16 = vector.broadcast %cst_9 : f32 to vector<2x128xf32>
    %17 = arith.addf %16, %15 : vector<2x128xf32>
    %18 = arith.divf %16, %17 : vector<2x128xf32>
    %19 = vector.extract_strided_slice %7 {offsets = [0, 128], sizes = [2, 128], strides = [1, 1]} : vector<2x384xf32> to vector<2x128xf32>
    %20 = vector.extract_strided_slice %10 {offsets = [0, 128], sizes = [2, 128], strides = [1, 1]} : vector<2x384xf32> to vector<2x128xf32>
    %21 = arith.addf %19, %20 : vector<2x128xf32>
    %22 = arith.negf %21 : vector<2x128xf32>
    %23 = math.exp %22 : vector<2x128xf32>
    %cst_10 = arith.constant 1.000000e+00 : f32
    %24 = vector.broadcast %cst_10 : f32 to vector<2x128xf32>
    %25 = arith.addf %24, %23 : vector<2x128xf32>
    %26 = arith.divf %24, %25 : vector<2x128xf32>
    %27 = vector.extract_strided_slice %7 {offsets = [0, 256], sizes = [2, 128], strides = [1, 1]} : vector<2x384xf32> to vector<2x128xf32>
    %28 = vector.extract_strided_slice %10 {offsets = [0, 256], sizes = [2, 128], strides = [1, 1]} : vector<2x384xf32> to vector<2x128xf32>
    %29 = arith.mulf %18, %28 : vector<2x128xf32>
    %30 = arith.addf %27, %29 : vector<2x128xf32>
    %31 = math.tanh %30 : vector<2x128xf32>
    %cst_11 = arith.constant 1.000000e+00 : f32
    %32 = vector.broadcast %cst_11 : f32 to vector<2x128xf32>
    %33 = arith.subf %32, %26 : vector<2x128xf32>
    %34 = arith.mulf %33, %31 : vector<2x128xf32>
    %35 = arith.mulf %26, %5 : vector<2x128xf32>
    %36 = arith.addf %34, %35 : vector<2x128xf32>
    %c1 = arith.constant 1 : index
    %c0_12 = arith.constant 0 : index
    %c0_13 = arith.constant 0 : index
    %37 = vector.load %arg1[%c1, %c0_12, %c0_13] : memref<3x2x384xf32, #tpu.memory_space<vmem>>, vector<1x2x384xf32>
    %38 = vector.shape_cast %37 : vector<1x2x384xf32> to vector<2x384xf32>
    %cst_14 = arith.constant dense<0.000000e+00> : vector<2x384xf32>
    %39 = tpu.matmul %36, %3, %cst_14 {dimension_numbers = #tpu.dot_dimension_numbers<[1], [0], [0], [1], [0, 0, 1, 1], [], []>} : vector<2x128xf32>, vector<128x384xf32>, vector<2x384xf32> -> vector<2x384xf32>
    %40 = vector.broadcast %4 : vector<1x384xf32> to vector<2x384xf32>
    %41 = arith.addf %39, %40 : vector<2x384xf32>
    %42 = vector.extract_strided_slice %38 {offsets = [0, 0], sizes = [2, 128], strides = [1, 1]} : vector<2x384xf32> to vector<2x128xf32>
    %43 = vector.extract_strided_slice %41 {offsets = [0, 0], sizes = [2, 128], strides = [1, 1]} : vector<2x384xf32> to vector<2x128xf32>
    %44 = arith.addf %42, %43 : vector<2x128xf32>
    %45 = arith.negf %44 : vector<2x128xf32>
    %46 = math.exp %45 : vector<2x128xf32>
    %cst_15 = arith.constant 1.000000e+00 : f32
    %47 = vector.broadcast %cst_15 : f32 to vector<2x128xf32>
    %48 = arith.addf %47, %46 : vector<2x128xf32>
    %49 = arith.divf %47, %48 : vector<2x128xf32>
    %50 = vector.extract_strided_slice %38 {offsets = [0, 128], sizes = [2, 128], strides = [1, 1]} : vector<2x384xf32> to vector<2x128xf32>
    %51 = vector.extract_strided_slice %41 {offsets = [0, 128], sizes = [2, 128], strides = [1, 1]} : vector<2x384xf32> to vector<2x128xf32>
    %52 = arith.addf %50, %51 : vector<2x128xf32>
    %53 = arith.negf %52 : vector<2x128xf32>
    %54 = math.exp %53 : vector<2x128xf32>
    %cst_16 = arith.constant 1.000000e+00 : f32
    %55 = vector.broadcast %cst_16 : f32 to vector<2x128xf32>
    %56 = arith.addf %55, %54 : vector<2x128xf32>
    %57 = arith.divf %55, %56 : vector<2x128xf32>
    %58 = vector.extract_strided_slice %38 {offsets = [0, 256], sizes = [2, 128], strides = [1, 1]} : vector<2x384xf32> to vector<2x128xf32>
    %59 = vector.extract_strided_slice %41 {offsets = [0, 256], sizes = [2, 128], strides = [1, 1]} : vector<2x384xf32> to vector<2x128xf32>
    %60 = arith.mulf %49, %59 : vector<2x128xf32>
    %61 = arith.addf %58, %60 : vector<2x128xf32>
    %62 = math.tanh %61 : vector<2x128xf32>
    %cst_17 = arith.constant 1.000000e+00 : f32
    %63 = vector.broadcast %cst_17 : f32 to vector<2x128xf32>
    %64 = arith.subf %63, %57 : vector<2x128xf32>
    %65 = arith.mulf %64, %62 : vector<2x128xf32>
    %66 = arith.mulf %57, %36 : vector<2x128xf32>
    %67 = arith.addf %65, %66 : vector<2x128xf32>
    %c2 = arith.constant 2 : index
    %c0_18 = arith.constant 0 : index
    %c0_19 = arith.constant 0 : index
    %68 = vector.load %arg1[%c2, %c0_18, %c0_19] : memref<3x2x384xf32, #tpu.memory_space<vmem>>, vector<1x2x384xf32>
    %69 = vector.shape_cast %68 : vector<1x2x384xf32> to vector<2x384xf32>
    %cst_20 = arith.constant dense<0.000000e+00> : vector<2x384xf32>
    %70 = tpu.matmul %67, %3, %cst_20 {dimension_numbers = #tpu.dot_dimension_numbers<[1], [0], [0], [1], [0, 0, 1, 1], [], []>} : vector<2x128xf32>, vector<128x384xf32>, vector<2x384xf32> -> vector<2x384xf32>
    %71 = vector.broadcast %4 : vector<1x384xf32> to vector<2x384xf32>
    %72 = arith.addf %70, %71 : vector<2x384xf32>
    %73 = vector.extract_strided_slice %69 {offsets = [0, 0], sizes = [2, 128], strides = [1, 1]} : vector<2x384xf32> to vector<2x128xf32>
    %74 = vector.extract_strided_slice %72 {offsets = [0, 0], sizes = [2, 128], strides = [1, 1]} : vector<2x384xf32> to vector<2x128xf32>
    %75 = arith.addf %73, %74 : vector<2x128xf32>
    %76 = arith.negf %75 : vector<2x128xf32>
    %77 = math.exp %76 : vector<2x128xf32>
    %cst_21 = arith.constant 1.000000e+00 : f32
    %78 = vector.broadcast %cst_21 : f32 to vector<2x128xf32>
    %79 = arith.addf %78, %77 : vector<2x128xf32>
    %80 = arith.divf %78, %79 : vector<2x128xf32>
    %81 = vector.extract_strided_slice %69 {offsets = [0, 128], sizes = [2, 128], strides = [1, 1]} : vector<2x384xf32> to vector<2x128xf32>
    %82 = vector.extract_strided_slice %72 {offsets = [0, 128], sizes = [2, 128], strides = [1, 1]} : vector<2x384xf32> to vector<2x128xf32>
    %83 = arith.addf %81, %82 : vector<2x128xf32>
    %84 = arith.negf %83 : vector<2x128xf32>
    %85 = math.exp %84 : vector<2x128xf32>
    %cst_22 = arith.constant 1.000000e+00 : f32
    %86 = vector.broadcast %cst_22 : f32 to vector<2x128xf32>
    %87 = arith.addf %86, %85 : vector<2x128xf32>
    %88 = arith.divf %86, %87 : vector<2x128xf32>
    %89 = vector.extract_strided_slice %69 {offsets = [0, 256], sizes = [2, 128], strides = [1, 1]} : vector<2x384xf32> to vector<2x128xf32>
    %90 = vector.extract_strided_slice %72 {offsets = [0, 256], sizes = [2, 128], strides = [1, 1]} : vector<2x384xf32> to vector<2x128xf32>
    %91 = arith.mulf %80, %90 : vector<2x128xf32>
    %92 = arith.addf %89, %91 : vector<2x128xf32>
    %93 = math.tanh %92 : vector<2x128xf32>
    %cst_23 = arith.constant 1.000000e+00 : f32
    %94 = vector.broadcast %cst_23 : f32 to vector<2x128xf32>
    %95 = arith.subf %94, %88 : vector<2x128xf32>
    %96 = arith.mulf %95, %93 : vector<2x128xf32>
    %97 = arith.mulf %88, %67 : vector<2x128xf32>
    %98 = arith.addf %96, %97 : vector<2x128xf32>
    %c0_24 = arith.constant 0 : index
    %c0_25 = arith.constant 0 : index
    %99 = vector.load %arg7[%c0_24, %c0_25] : memref<2x128xf32, #tpu.memory_space<vmem>>, vector<2x128xf32>
    tpu.vector_store %arg7[%c0_24, %c0_25], %98 {strides = array<i32>} : memref<2x128xf32, #tpu.memory_space<vmem>>, vector<2x128xf32>,
    %c0_i32_26 = arith.constant 0 : i32
    %100 = arith.cmpi eq, %arg0, %c0_i32_26 : i32
    %101 = arith.extui %100 : i1 to i32
    %c0_i32_27 = arith.constant 0 : i32
    %102 = arith.cmpi ne, %101, %c0_i32_27 : i32
    scf.if %102 {
      %c0_28 = arith.constant 0 : index
      %c0_29 = arith.constant 0 : index
      %103 = vector.load %arg4[%c0_28, %c0_29] : memref<128x128xf32, #tpu.memory_space<vmem>>, vector<128x128xf32>
      %cst_30 = arith.constant dense<0.000000e+00> : vector<2x128xf32>
      %104 = tpu.matmul %98, %103, %cst_30 {dimension_numbers = #tpu.dot_dimension_numbers<[1], [0], [0], [1], [0, 0, 1, 1], [], []>} : vector<2x128xf32>, vector<128x128xf32>, vector<2x128xf32> -> vector<2x128xf32>
      %c0_31 = arith.constant 0 : index
      %c0_32 = arith.constant 0 : index
      %105 = vector.load %arg5[%c0_31, %c0_32] : memref<1x128xf32, #tpu.memory_space<vmem>>, vector<1x128xf32>
      %106 = vector.broadcast %105 : vector<1x128xf32> to vector<2x128xf32>
      %107 = arith.addf %104, %106 : vector<2x128xf32>
      %c0_33 = arith.constant 0 : index
      %c0_34 = arith.constant 0 : index
      %108 = vector.load %arg6[%c0_33, %c0_34] : memref<2x128xf32, #tpu.memory_space<vmem>>, vector<2x128xf32>
      tpu.vector_store %arg6[%c0_33, %c0_34], %107 {strides = array<i32>} : memref<2x128xf32, #tpu.memory_space<vmem>>, vector<2x128xf32>,
    } else {
    }
    return
  }
  func.func @transform_0(%arg0: i32) -> (i32, i32, i32) {
    %c0_i32 = arith.constant 0 : i32
    %c0_i32_0 = arith.constant 0 : i32
    %c0_i32_1 = arith.constant 0 : i32
    return %arg0, %c0_i32, %c0_i32_0 : i32, i32, i32
  }
  func.func @transform_1(%arg0: i32) -> (i32, i32) {
    %c0_i32 = arith.constant 0 : i32
    %c0_i32_0 = arith.constant 0 : i32
    %c0_i32_1 = arith.constant 0 : i32
    return %c0_i32, %c0_i32_0 : i32, i32
  }
  func.func @transform_2(%arg0: i32) -> (i32, i32) {
    %c0_i32 = arith.constant 0 : i32
    %c0_i32_0 = arith.constant 0 : i32
    %c0_i32_1 = arith.constant 0 : i32
    return %c0_i32, %c0_i32_0 : i32, i32
  }
  func.func @transform_3(%arg0: i32) -> (i32, i32) {
    %c0_i32 = arith.constant 0 : i32
    %c0_i32_0 = arith.constant 0 : i32
    %c0_i32_1 = arith.constant 0 : i32
    return %c0_i32, %c0_i32_0 : i32, i32
  }
  func.func @transform_4(%arg0: i32) -> (i32, i32) {
    %c0_i32 = arith.constant 0 : i32
    %c0_i32_0 = arith.constant 0 : i32
    %c0_i32_1 = arith.constant 0 : i32
    return %c0_i32, %c0_i32_0 : i32, i32
  }
  func.func @transform_5(%arg0: i32) -> (i32, i32) {
    %c0_i32 = arith.constant 0 : i32
    %c0_i32_0 = arith.constant 0 : i32
    %c0_i32_1 = arith.constant 0 : i32
    return %c0_i32, %c0_i32_0 : i32, i32
  }
}

</mosaic_0001>

<bundles_post_ra>
// kernel: rnn_net_forward.5
= control target key start
LH: loop header
LB: loop body
LE: loop exit
PB: predicated region body
PF: predicated region fallthrough
CT: control target
= control target key end

     0   :  { %s1445_s15 = smov 0   ;;  %s1852_s0 = inlined_call_operand.vmem [shape: f32[3,4,9,392], index: 0, kind: input, shape index: {}]   ;;  %s1853_s1 = inlined_call_operand.vmem [shape: f32[16,9], index: 1, kind: input, shape index: {}]   ;;  %s1854_s2 = inlined_call_operand.vmem [shape: f32[16,1], index: 2, kind: input, shape index: {}]   ;;  %s1855_s3 = inlined_call_operand.vmem [shape: f32[16,1], index: 3, kind: input, shape index: {}]   ;;  %s1856_s4 = inlined_call_operand.vmem [shape: f32[3,16,392], index: 4, kind: output, shape index: {}]  }
   0x1 LB: > { %s1275_s16 = sadd.s32 4294967295, %s1415_s15   ;;  %p1279_p0 = scmp.ge.s32.totalorder %s1415_s15, 1  ;;  %s1415_s15 = sphi %s1445_s15, %s14_s15  }
   0x2   : > { %p162_p1 = scmp.lt.s32.totalorder %s1415_s15, 4 }
   0x4   : > { %p163_p2 = pnand %p1279_p0, %p162_p1 }
   0x5   : > { %p188_p3 = scmp.lt.s32.totalorder (!%p163_p2), %s1275_s16, 2  ;;  %v1417_v0 = vmov (!%p163_p2), 0.0   ;;  %vm215_vm0 = vcmask (!%p163_p2), 1040384   ;;  %vm1418_vm1 = vmmov (!%p163_p2), 1   ;;  %v1478_v13 = vld [vmem:[%s1853_s1] sm:$0xff] (!%p163_p2)  ;;  %vm208_vm3 = vcmask (!%p163_p2), 72704  }
   0x6   : > { %166 = sbr.rel (%p163_p2) target bundleno = 600 (0x258), region = 36  ;;  %292 = vmatprep.mubr.f32.mxu0 (!%p163_p2), %v1417_v0  ;;  %369 = vmatprep.mubr.f32.mxu1 (!%p163_p2), %v1417_v0  ;;  %vm1463_vm2 = vmpackc.low (!%p163_p2), %vm215_vm0, %vm1418_vm1  ;;  %v199_v32 = vld [vmem:[%s1853_s1 + $0x8] sm:$0xff] (!%p163_p2)  ;;  %vm384_vm4 = vcmask (!%p163_p2), 64512  }
   0xd   : > { %s1860_s16 = smov (!%p188_p3, %s1275_s16), 2 }
   0xe   : > { %s1342_s17 = sshll.u32 %s1860_s16, 8  ;;  %s1343_s7 = sshll.u32 %s1860_s16, 6 }
   0xf   : > { %s1461_s20 = scalar_lea.vmem %s1852_s0, %s1342_s17  ;;  %s1825_s10 = scalar_lea.vmem %s1856_s4, %s1343_s7 }
  0x10   : > { %v201_v2 = vld [vmem:[%s1461_s20 + $0x8] sm:$0xff]  ;;  %v200_v4 = vld [vmem:[%s1461_s20] sm:$0xff]  ;;  %v203_v7 = vld [vmem:[%s1461_s20 + $0x18] sm:$0xff] }
  0x11   : > { %v205_v3 = vld [vmem:[%s1461_s20 + $0x28] sm:$0x1]  ;;  %v204_v6 = vld [vmem:[%s1461_s20 + $0x20] sm:$0x1]  ;;  %v207_v8 = vld [vmem:[%s1461_s20 + $0x38] sm:$0x1] }
  0x12   : > { %v1344_v5 = vpack.c.bf16 %v205_v3, %v201_v2  ;;  %v1347_v9 = vpack.c.bf16 %v204_v6, %v200_v4  ;;  %v1350_v10 = vpack.c.bf16 %v207_v8, %v203_v7  ;;  %v202_v11 = vld [vmem:[%s1461_s20 + $0x10] sm:$0xff]  ;;  %v1293_v14 = vld [vmem:[%s1461_s20 + $0x48] sm:$0xff]  ;;  %v1292_v17 = vld [vmem:[%s1461_s20 + $0x40] sm:$0xff] }
  0x13   : > { %v206_v12 = vld [vmem:[%s1461_s20 + $0x30] sm:$0x1]  ;;  %v1297_v16 = vld [vmem:[%s1461_s20 + $0x68] sm:$0x1]  ;;  %v1296_v18 = vld [vmem:[%s1461_s20 + $0x60] sm:$0x1] }
  0x14   : > { %1346 = vmatprep.subr.msk.bf16.mxu0 %vm1463_vm2, %v1344_v5  ;;  %v1353_v15 = vpack.c.bf16 %v206_v12, %v202_v11  ;;  %1352 = vmatprep.subr.msk.bf16.mxu1 %vm1463_vm2, %v1350_v10  ;;  %v1356_v19 = vpack.c.bf16 %v1297_v16, %v1293_v14  ;;  %v1359_v20 = vpack.c.bf16 %v1296_v18, %v1292_v17  ;;  %v1295_v21 = vld [vmem:[%s1461_s20 + $0x58] sm:$0xff]  ;;  %v1294_v23 = vld [vmem:[%s1461_s20 + $0x50] sm:$0xff]  ;;  %v1309_v26 = vld [vmem:[%s1461_s20 + $0x88] sm:$0xff] }
  0x15   : > { %1349 = vmatpush1.bf16.msk.msra.mxu0 %vm1463_vm2, %v1347_v9  ;;  %v1299_v22 = vld [vmem:[%s1461_s20 + $0x78] sm:$0x1]  ;;  %v1298_v25 = vld [vmem:[%s1461_s20 + $0x70] sm:$0x1]  ;;  %v1313_v27 = vld [vmem:[%s1461_s20 + $0xa8] sm:$0x1] }
  0x16   : > { %1355 = vmatpush1.bf16.msk.msra.mxu1 %vm1463_vm2, %v1353_v15  ;;  %v1362_v24 = vpack.c.bf16 %v1299_v22, %v1295_v21  ;;  %1358 = vmatprep.subr.msk.bf16.mxu0 %vm1463_vm2, %v1356_v19  ;;  %v1365_v28 = vpack.c.bf16 %v1298_v25, %v1294_v23  ;;  %v1368_v29 = vpack.c.bf16 %v1313_v27, %v1309_v26  ;;  %v1311_v30 = vld [vmem:[%s1461_s20 + $0x98] sm:$0xff]  ;;  %v1308_v34 = vld [vmem:[%s1461_s20 + $0x80] sm:$0xff]  ;;  %v1325_v36 = vld [vmem:[%s1461_s20 + $0xc8] sm:$0xff] }
  0x17   : > { %v1315_v31 = vld [vmem:[%s1461_s20 + $0xb8] sm:$0x1]  ;;  %v1312_v35 = vld [vmem:[%s1461_s20 + $0xa0] sm:$0x1]  ;;  %v1329_v37 = vld [vmem:[%s1461_s20 + $0xe8] sm:$0x1] }
  0x18   : > { %1286 = vmatmul.mubr.msk.f32.vlgmr.msra.gmra.mrb[0].mxu0 %vm208_vm3, %v1478_v13  ;;  %1364 = vmatprep.subr.msk.bf16.mxu1 %vm1463_vm2, %v1362_v24  ;;  %v1374_v33 = vpack.c.bf16 %v1315_v31, %v1311_v30  ;;  %v1310_v38 = vld [vmem:[%s1461_s20 + $0x90] sm:$0xff]  ;;  %v1371_v40 = vpack.c.bf16 %v1312_v35, %v1308_v34  ;;  %v1327_v41 = vld [vmem:[%s1461_s20 + $0xd8] sm:$0xff]  ;;  %v1380_v43 = vpack.c.bf16 %v1329_v37, %v1325_v36  ;;  %v1324_v46 = vld [vmem:[%s1461_s20 + $0xc0] sm:$0xff] }
  0x19   : > { %1290 = vmatmul.mubr.msk.f32.vlgmr.msra.gmra.mrb[0].mxu1 %vm208_vm3, %v1478_v13  ;;  %1361 = vmatpush1.bf16.msk.msra.mxu0 %vm1463_vm2, %v1359_v20  ;;  %v1314_v39 = vld [vmem:[%s1461_s20 + $0xb0] sm:$0x1]  ;;  %v1331_v42 = vld [vmem:[%s1461_s20 + $0xf8] sm:$0x1]  ;;  %v1328_v47 = vld [vmem:[%s1461_s20 + $0xe0] sm:$0x1] }
  0x1a   : > { %298 = vmatprep.mubr.f32.mxu0 %v1417_v0  ;;  %375 = vmatprep.mubr.f32.mxu1 %v1417_v0  ;;  %v1377_v44 = vpack.c.bf16 %v1314_v39, %v1310_v38  ;;  %v1386_v45 = vpack.c.bf16 %v1331_v42, %v1327_v41  ;;  %v1326_v48 = vld [vmem:[%s1461_s20 + $0xd0] sm:$0xff]  ;;  %v1383_v50 = vpack.c.bf16 %v1328_v47, %v1324_v46 }
  0x1b   : > { %1367 = vmatpush1.bf16.msk.msra.mxu1 %vm1463_vm2, %v1365_v28  ;;  %1370 = vmatprep.subr.msk.bf16.mxu0 %vm1463_vm2, %v1368_v29  ;;  %v1330_v49 = vld [vmem:[%s1461_s20 + $0xf0] sm:$0x1] }
  0x1c   : > { %1287 = vmatmul.mubr.msk.f32.gmra.mrb[2].mxu0 %vm208_vm3, %v199_v32  ;;  %1376 = vmatprep.subr.msk.bf16.mxu1 %vm1463_vm2, %v1374_v33  ;;  %v1389_v51 = vpack.c.bf16 %v1330_v49, %v1326_v48 }
  0x1d   : > { %1291 = vmatmul.mubr.msk.f32.gmra.mrb[2].mxu1 %vm208_vm3, %v199_v32  ;;  %500 = vmatprep.mubr.f32.mxu0 %v1417_v0 }
  0x1e   : > { %577 = vmatprep.mubr.f32.mxu1 %v1417_v0 }
  0x20   : > { %1302 = vmatmul.mubr.msk.f32.vlgmr.msra.gmra.mrb[4].mxu0 %vm208_vm3, %v1478_v13 }
  0x21   : > { %1373 = vmatpush1.bf16.msk.msra.mxu0 %vm1463_vm2, %v1371_v40  ;;  %506 = vmatprep.mubr.f32.mxu0 %v1417_v0 }
  0x22   : > { %1306 = vmatmul.mubr.msk.f32.vlgmr.msra.gmra.mrb[4].mxu1 %vm208_vm3, %v1478_v13  ;;  %1382 = vmatprep.subr.msk.bf16.mxu0 %vm1463_vm2, %v1380_v43 }
  0x23   : > { %1379 = vmatpush1.bf16.msk.msra.mxu1 %vm1463_vm2, %v1377_v44  ;;  %583 = vmatprep.mubr.f32.mxu1 %v1417_v0 }
  0x24   : > { %1303 = vmatmul.mubr.msk.f32.gmra.mrb[6].mxu0 %vm208_vm3, %v199_v32  ;;  %1388 = vmatprep.subr.msk.bf16.mxu1 %vm1463_vm2, %v1386_v45 }
  0x25   : > { %711 = vmatprep.mubr.f32.mxu0 %v1417_v0 }
  0x26   : > { %1307 = vmatmul.mubr.msk.f32.gmra.mrb[6].mxu1 %vm208_vm3, %v199_v32 }
  0x27   : > { %788 = vmatprep.mubr.f32.mxu1 %v1417_v0 }
  0x28   : > { %1318 = vmatmul.mubr.msk.f32.vlgmr.msra.gmra.mrb[8].mxu0 %vm208_vm3, %v1478_v13 }
  0x29   : > { %1385 = vmatpush1.bf16.msk.msra.mxu0 %vm1463_vm2, %v1383_v50  ;;  %717 = vmatprep.mubr.f32.mxu0 %v1417_v0 }
  0x2a   : > { %1322 = vmatmul.mubr.msk.f32.vlgmr.msra.gmra.mrb[8].mxu1 %vm208_vm3, %v1478_v13 }
  0x2b   : > { %1391 = vmatpush1.bf16.msk.msra.mxu1 %vm1463_vm2, %v1389_v51  ;;  %794 = vmatprep.mubr.f32.mxu1 %v1417_v0 }
  0x2c   : > { %1319 = vmatmul.mubr.msk.f32.gmra.mrb[10].mxu0 %vm208_vm3, %v199_v32 }
  0x2d   : > { %922 = vmatprep.mubr.f32.mxu0 %v1417_v0 }
  0x2e   : > { %1323 = vmatmul.mubr.msk.f32.gmra.mrb[10].mxu1 %vm208_vm3, %v199_v32 }
  0x2f   : > { %999 = vmatprep.mubr.f32.mxu1 %v1417_v0 }
  0x30   : > { %1334 = vmatmul.mubr.msk.f32.vlgmr.msra.gmra.mrb[12].mxu0 %vm208_vm3, %v1478_v13 }
  0x31   : > { %928 = vmatprep.mubr.f32.mxu0 %v1417_v0 }
  0x32   : > { %1338 = vmatmul.mubr.msk.f32.vlgmr.msra.gmra.mrb[12].mxu1 %vm208_vm3, %v1478_v13 }
  0x33   : > { %1005 = vmatprep.mubr.f32.mxu1 %v1417_v0 }
  0x34   : > { %1335 = vmatmul.mubr.msk.f32.gmra.mrb[14].mxu0 %vm208_vm3, %v199_v32 }
  0x36   : > { %1339 = vmatmul.mubr.msk.f32.gmra.mrb[14].mxu1 %vm208_vm3, %v199_v32 }
  0xeb   : > { %v1577_v52 = vpop.f32.mrb[0].mxu0 }
  0xec   : > { %v395_v53 = vmul.f32 %v1577_v52, %v1577_v52  ;;  %v1581_v54 = vpop.f32.mrb[1].mxu0  ;;  %v1583_v55 = vpop.f32.mrb[0].mxu1 }
  0xed   : > { %v382_v56 = vadd.f32 %v1581_v54, %v1577_v52  ;;  %v396_v57 = vmul.f32 %v1581_v54, %v1581_v54  ;;  %v1589_v58 = vpop.f32.mrb[1].mxu1  ;;  %v397_v59 = vmul.f32 %v1583_v55, %v1583_v55 }
  0xee   : > { %v398_v60 = vmul.f32 %v1589_v58, %v1589_v58  ;;  %v385_v61 = vsel %vm384_vm4, %v1589_v58, 0.0 }
  0xef   : > { %v1597_v62 = vpop.f32.mrb[2].mxu0  ;;  %v383_v63 = vadd.f32 %v382_v56, %v1583_v55  ;;  %v403_v0 = vadd.f32 %v396_v57, %v395_v53 }
  0xf0   : > { %v399_v1 = vmul.f32 %v1597_v62, %v1597_v62  ;;  %v1602_v2 = vpop.f32.mrb[3].mxu0  ;;  %v1604_v3 = vpop.f32.mrb[2].mxu1  ;;  %v405_v4 = vsel %vm384_vm4, %v398_v60, 0.0 }
  0xf1   : > { %v389_v5 = vadd.f32 %v1602_v2, %v1597_v62  ;;  %v400_v6 = vmul.f32 %v1602_v2, %v1602_v2  ;;  %v401_v7 = vmul.f32 %v1604_v3, %v1604_v3  ;;  %v1613_v8 = vpop.f32.mrb[3].mxu1  ;;  %v386_v9 = vadd.f32 %v385_v61, %v383_v63 }
  0xf2   : > { %v404_v10 = vadd.f32 %v403_v0, %v397_v59  ;;  %v402_v11 = vmul.f32 %v1613_v8, %v1613_v8  ;;  %v391_v12 = vsel %vm384_vm4, %v1613_v8, 0.0 }
  0xf3   : > { %387 = vadd.xlane.f32.xlu0 %v386_v9  ;;  %v1619_v13 = vpop.f32.mrb[4].mxu0  ;;  %v409_v14 = vadd.f32 %v400_v6, %v399_v1  ;;  %v390_v15 = vadd.f32 %v389_v5, %v1604_v3 }
  0xf4   : > { %v602_v16 = vmul.f32 %v1619_v13, %v1619_v13  ;;  %v1624_v17 = vpop.f32.mrb[5].mxu0  ;;  %v406_v18 = vadd.f32 %v405_v4, %v404_v10  ;;  %v411_v19 = vsel %vm384_vm4, %v402_v11, 0.0 }
  0xf5   : > { %v590_v20 = vadd.f32 %v1624_v17, %v1619_v13  ;;  %v603_v21 = vmul.f32 %v1624_v17, %v1624_v17  ;;  %v1631_v22 = vpop.f32.mrb[4].mxu1  ;;  %v410_v23 = vadd.f32 %v409_v14, %v401_v7  ;;  %v392_v24 = vadd.f32 %v391_v12, %v390_v15 }
  0xf6   : > { %v604_v25 = vmul.f32 %v1631_v22, %v1631_v22  ;;  %v1635_v26 = vpop.f32.mrb[5].mxu1 }
  0xf7   : > { %407 = vadd.xlane.f32.xlu0 %v406_v18  ;;  %v1637_v27 = vpop.f32.mrb[6].mxu0  ;;  %v605_v28 = vmul.f32 %v1635_v26, %v1635_v26  ;;  %v412_v29 = vadd.f32 %v411_v19, %v410_v23  ;;  %v591_v30 = vadd.f32 %v590_v20, %v1631_v22  ;;  %v592_v31 = vsel %vm384_vm4, %v1635_v26, 0.0 }
  0xf8   : > { %v606_v32 = vmul.f32 %v1637_v27, %v1637_v27  ;;  %v1646_v33 = vpop.f32.mrb[7].mxu0  ;;  %v610_v34 = vadd.f32 %v603_v21, %v602_v16 }
  0xf9   : > { %v596_v35 = vadd.f32 %v1646_v33, %v1637_v27  ;;  %v607_v36 = vmul.f32 %v1646_v33, %v1646_v33  ;;  %413 = vadd.xlane.f32.xlu1 %v412_v29  ;;  %v1652_v37 = vpop.f32.mrb[6].mxu1  ;;  %v593_v38 = vadd.f32 %v592_v31, %v591_v30  ;;  %v612_v39 = vsel %vm384_vm4, %v605_v28, 0.0 }
  0xfa   : > { %v608_v40 = vmul.f32 %v1652_v37, %v1652_v37  ;;  %v1657_v41 = vpop.f32.mrb[7].mxu1  ;;  %v611_v42 = vadd.f32 %v610_v34, %v604_v25 }
  0xfb   : > { %v1659_v43 = vpop.f32.mrb[8].mxu0  ;;  %393 = vadd.xlane.f32.xlu0 %v392_v24  ;;  %v609_v44 = vmul.f32 %v1657_v41, %v1657_v41  ;;  %v597_v45 = vadd.f32 %v596_v35, %v1652_v37  ;;  %v598_v46 = vsel %vm384_vm4, %v1657_v41, 0.0  ;;  %v616_v47 = vadd.f32 %v607_v36, %v606_v32 }
  0xfc   : > { %v813_v48 = vmul.f32 %v1659_v43, %v1659_v43  ;;  %v1668_v49 = vpop.f32.mrb[9].mxu0  ;;  %v613_v50 = vadd.f32 %v612_v39, %v611_v42 }
  0xfd   : > { %v801_v51 = vadd.f32 %v1668_v49, %v1659_v43  ;;  %v814_v53 = vmul.f32 %v1668_v49, %v1668_v49  ;;  %594 = vadd.xlane.f32.xlu1 %v593_v38  ;;  %v1674_v56 = vpop.f32.mrb[8].mxu1  ;;  %v599_v57 = vadd.f32 %v598_v46, %v597_v45  ;;  %v617_v59 = vadd.f32 %v616_v47, %v608_v40 }
  0xfe   : > { %v815_v60 = vmul.f32 %v1674_v56, %v1674_v56  ;;  %v1678_v61 = vpop.f32.mrb[9].mxu1  ;;  %v618_v63 = vsel %vm384_vm4, %v609_v44, 0.0 }
  0xff   : > { %v816_v0 = vmul.f32 %v1678_v61, %v1678_v61  ;;  %614 = vadd.xlane.f32.xlu0 %v613_v50  ;;  %v1683_v1 = vpop.f32.mrb[10].mxu0  ;;  %v802_v4 = vadd.f32 %v801_v51, %v1674_v56  ;;  %v803_v5 = vsel %vm384_vm4, %v1678_v61, 0.0  ;;  %v619_v6 = vadd.f32 %v618_v63, %v617_v59 }
 0x100   : > { %v817_v7 = vmul.f32 %v1683_v1, %v1683_v1  ;;  %v1690_v9 = vpop.f32.mrb[11].mxu0  ;;  %v821_v10 = vadd.f32 %v814_v53, %v813_v48 }
 0x101   : > { %v807_v11 = vadd.f32 %v1690_v9, %v1683_v1  ;;  %v818_v12 = vmul.f32 %v1690_v9, %v1690_v9  ;;  %600 = vadd.xlane.f32.xlu1 %v599_v57  ;;  %v1696_v14 = vpop.f32.mrb[10].mxu1  ;;  %v804_v15 = vadd.f32 %v803_v5, %v802_v4  ;;  %v823_v16 = vsel %vm384_vm4, %v816_v0, 0.0 }
 0x102   : > { %v819_v18 = vmul.f32 %v1696_v14, %v1696_v14  ;;  %v1701_v19 = vpop.f32.mrb[11].mxu1  ;;  %v822_v20 = vadd.f32 %v821_v10, %v815_v60 }
 0x103   : > { %v1703_v21 = vpop.f32.mrb[12].mxu0  ;;  %805 = vadd.xlane.f32.xlu0 %v804_v15  ;;  %v820_v23 = vmul.f32 %v1701_v19, %v1701_v19  ;;  %v808_v24 = vadd.f32 %v807_v11, %v1696_v14  ;;  %v809_v25 = vsel %vm384_vm4, %v1701_v19, 0.0  ;;  %v827_v28 = vadd.f32 %v818_v12, %v817_v7 }
 0x104   : > { %v1024_v29 = vmul.f32 %v1703_v21, %v1703_v21  ;;  %v1712_v30 = vpop.f32.mrb[13].mxu0  ;;  %v824_v31 = vadd.f32 %v823_v16, %v822_v20 }
 0x105   : > { %v1012_v32 = vadd.f32 %v1712_v30, %v1703_v21  ;;  %v1025_v34 = vmul.f32 %v1712_v30, %v1712_v30  ;;  %620 = vadd.xlane.f32.xlu1 %v619_v6  ;;  %v1718_v35 = vpop.f32.mrb[12].mxu1  ;;  %v810_v36 = vadd.f32 %v809_v25, %v808_v24  ;;  %v828_v38 = vadd.f32 %v827_v28, %v819_v18 }
 0x106   : > { %v1026_v39 = vmul.f32 %v1718_v35, %v1718_v35  ;;  %v1722_v40 = vpop.f32.mrb[13].mxu1  ;;  %v829_v42 = vsel %vm384_vm4, %v820_v23, 0.0  ;;  %v1419_v24 = vmov 0  }
 0x107   : > { %v1027_v44 = vmul.f32 %v1722_v40, %v1722_v40  ;;  %825 = vadd.xlane.f32.xlu0 %v824_v31  ;;  %v1727_v45 = vpop.f32.mrb[14].mxu0  ;;  %v1013_v46 = vadd.f32 %v1012_v32, %v1718_v35  ;;  %v1014_v47 = vsel %vm384_vm4, %v1722_v40, 0.0  ;;  %v830_v48 = vadd.f32 %v829_v42, %v828_v38  ;;  %1404 = vset.pattern.permute.xlu1 %v1419_v24 }
 0x108   : > { %v1028_v50 = vmul.f32 %v1727_v45, %v1727_v45  ;;  %v1734_v51 = vpop.f32.mrb[15].mxu0  ;;  %v1032_v53 = vadd.f32 %v1025_v34, %v1024_v29  ;;  %1403 = vset.pattern.permute.xlu0 %v1419_v24 }
 0x109   : > { %v1018_v57 = vadd.f32 %v1734_v51, %v1727_v45  ;;  %v1029_v59 = vmul.f32 %v1734_v51, %v1734_v51  ;;  %811 = vadd.xlane.f32.xlu1 %v810_v36  ;;  %v1740_v60 = vpop.f32.mrb[14].mxu1  ;;  %v1015_v63 = vadd.f32 %v1014_v47, %v1013_v46  ;;  %v1034_v0 = vsel %vm384_vm4, %v1027_v44, 0.0 }
 0x10a   : > { %v1030_v4 = vmul.f32 %v1740_v60, %v1740_v60  ;;  %v1745_v5 = vpop.f32.mrb[15].mxu1  ;;  %v1033_v6 = vadd.f32 %v1032_v53, %v1026_v39 }
 0x10b   : > { %v1038_v7 = vadd.f32 %v1029_v59, %v1028_v50  ;;  %1016 = vadd.xlane.f32.xlu0 %v1015_v63  ;;  %v1020_v10 = vsel %vm384_vm4, %v1745_v5, 0.0  ;;  %v1031_v11 = vmul.f32 %v1745_v5, %v1745_v5  ;;  %v1019_v12 = vadd.f32 %v1018_v57, %v1740_v60 }
 0x10c   : > { %v1035_v15 = vadd.f32 %v1034_v0, %v1033_v6 }
 0x10d   : > { %831 = vadd.xlane.f32.xlu1 %v830_v48  ;;  %v1021_v16 = vadd.f32 %v1020_v10, %v1019_v12  ;;  %v1039_v18 = vadd.f32 %v1038_v7, %v1030_v4  ;;  %v1040_v20 = vsel %vm384_vm4, %v1031_v11, 0.0 }
 0x10f   : > { %1036 = vadd.xlane.f32.xlu0 %v1035_v15  ;;  %v1041_v23 = vadd.f32 %v1040_v20, %v1039_v18 }
 0x111   : > { %1022 = vadd.xlane.f32.xlu1 %v1021_v16 }
 0x115   : > { %1042 = vadd.xlane.f32.xlu1 %v1041_v23 }
 0x180   : > { %v388_v25 = vpop.xlane.xlu0 %387 }
 0x184   : > { %v408_v28 = vpop.xlane.xlu0 %407 }
 0x186   : > { %v414_v29 = vpop.xlane.xlu1 %413 }
 0x188   : > { %v394_v31 = vpop.xlane.xlu0 %393 }
 0x18a   : > { %v595_v32 = vpop.xlane.xlu1 %594 }
 0x18b   : > { %v622_v44 = vadd.f32 %v595_v32, %v388_v25 }
 0x18c   : > { %v615_v34 = vpop.xlane.xlu0 %614 }
 0x18d   : > { %v624_v50 = vadd.f32 %v615_v34, %v408_v28 }
 0x18e   : > { %v601_v36 = vpop.xlane.xlu1 %600 }
 0x18f   : > { %v623_v59 = vadd.f32 %v601_v36, %v394_v31 }
 0x190   : > { %v806_v38 = vpop.xlane.xlu0 %805 }
 0x191   : > { %v833_v47 = vadd.f32 %v806_v38, %v622_v44 }
 0x192   : > { %v621_v39 = vpop.xlane.xlu1 %620 }
 0x193   : > { %v625_v11 = vadd.f32 %v621_v39, %v414_v29  ;;  %v1058_v29 = vld [vmem:[%s1854_s2] sm:$0xff] }
 0x194   : > { %v826_v42 = vpop.xlane.xlu0 %825 }
 0x195   : > { %v835_v63 = vadd.f32 %v826_v42, %v624_v50 }
 0x196   : > { %v812_v46 = vpop.xlane.xlu1 %811 }
 0x197   : > { %v834_v6 = vadd.f32 %v812_v46, %v623_v59  ;;  %v1059_v46 = vld [vmem:[%s1854_s2 + $0x8] sm:$0xff] }
 0x198   : > { %v1017_v48 = vpop.xlane.xlu0 %1016 }
 0x199   : > { %v1044_v53 = vadd.f32 %v1017_v48, %v833_v47 }
 0x19a   : > { %v832_v57 = vpop.xlane.xlu1 %831 }
 0x19b   : > { %v1048_v0 = vmul.f32 0.0006377551, %v1044_v53  ;;  %v836_v18 = vadd.f32 %v832_v57, %v625_v11  ;;  %v1066_v53 = vld [vmem:[%s1855_s3] sm:$0xff] }
 0x19c   : > { %v1037_v4 = vpop.xlane.xlu0 %1036 }
 0x19d   : > { %v1046_v7 = vadd.f32 %v1037_v4, %v835_v63  ;;  %v1052_v12 = vmul.f32 %v1048_v0, %v1048_v0  ;;  %v1067_v63 = vld [vmem:[%s1855_s3 + $0x8] sm:$0xff] }
 0x19e   : > { %v1023_v10 = vpop.xlane.xlu1 %1022 }
 0x19f   : > { %v1050_v15 = vmul.f32 0.0006377551, %v1046_v7  ;;  %v1045_v16 = vadd.f32 %v1023_v10, %v834_v6 }
 0x1a1   : > { %v1054_v20 = vsub.f32 %v1050_v15, %v1052_v12  ;;  %v1049_v23 = vmul.f32 0.0006377551, %v1045_v16 }
 0x1a2   : > { %v1043_v24 = vpop.xlane.xlu1 %1042 }
 0x1a3   : > { %v1056_v25 = vmax.f32 %v1054_v20, 0.0  ;;  %v1047_v32 = vadd.f32 %v1043_v24, %v836_v18  ;;  %v1053_v34 = vmul.f32 %v1049_v23, %v1049_v23 }
 0x1a5   : > { %v1060_v28 = vadd.f32 1e-05, %v1056_v25  ;;  %v1051_v38 = vmul.f32 0.0006377551, %v1047_v32 }
 0x1a7   : > { %1405 = vrsqrt.f32 %v1060_v28  ;;  %v1055_v31 = vsub.f32 %v1051_v38, %v1053_v34 }
 0x1a9   : > { %v1057_v36 = vmax.f32 %v1055_v31, 0.0 }
 0x1ab   : > { %v1061_v42 = vadd.f32 1e-05, %v1057_v36 }
 0x1ad   : > { %1407 = vrsqrt.f32 %v1061_v42 }
 0x1b1   : > { %v1406_v39 = vpop.eup %1405 }
 0x1b2   : > { %v1064_v44 = vmul.f32 %v1406_v39, %v1058_v29 }
 0x1b4   : > { %1074 = vperm.xlu0 %1403, %v1064_v44   ;;  %v1068_v50 = vmul.f32 %v1064_v44, %v1048_v0 }
 0x1b6   : > { %v1070_v57 = vsub.f32 %v1066_v53, %v1068_v50 }
 0x1b7   : > { %v1408_v47 = vpop.eup %1407 }
 0x1b8   : > { %v1065_v48 = vmul.f32 %v1408_v47, %v1059_v46 }
 0x1ba   : > { %1079 = vperm.xlu1 %1404, %v1065_v48   ;;  %v1069_v59 = vmul.f32 %v1065_v48, %v1049_v23 }
 0x1bc   : > { %v1071_v4 = vsub.f32 %v1067_v63, %v1069_v59 }
 0x1be   : > { %1092 = vperm.xlu1 %1404, %v1070_v57  }
 0x1c2   : > { %1097 = vperm.xlu1 %1404, %v1071_v4  }
 0x233   : > { %v1075_v6 = vpop.permute.xlu0 %1074 }
 0x234   : > { %v1082_v7 = vmul.f32 %v1075_v6, %v1577_v52  ;;  %v1083_v10 = vmul.f32 %v1075_v6, %v1581_v54  ;;  %v1084_v0 = vmul.f32 %v1075_v6, %v1583_v55  ;;  %v1085_v11 = vmul.f32 %v1075_v6, %v1589_v58 }
 0x235   : > { %v1116_v12 = vmul.f32 %v1075_v6, %v1619_v13  ;;  %v1117_v15 = vmul.f32 %v1075_v6, %v1624_v17  ;;  %v1118_v16 = vmul.f32 %v1075_v6, %v1631_v22  ;;  %v1119_v18 = vmul.f32 %v1075_v6, %v1635_v26 }
 0x236   : > { %v1148_v20 = vmul.f32 %v1075_v6, %v1659_v43  ;;  %v1149_v23 = vmul.f32 %v1075_v6, %v1668_v49  ;;  %v1150_v52 = vmul.f32 %v1075_v6, %v1674_v56  ;;  %v1151_v54 = vmul.f32 %v1075_v6, %v1678_v61 }
 0x237   : > { %v1180_v55 = vmul.f32 %v1075_v6, %v1703_v21  ;;  %v1181_v58 = vmul.f32 %v1075_v6, %v1712_v30  ;;  %v1182_v13 = vmul.f32 %v1075_v6, %v1718_v35  ;;  %v1183_v17 = vmul.f32 %v1075_v6, %v1722_v40 }
 0x239   : > { %v1080_v24 = vpop.permute.xlu1 %1079 }
 0x23a   : > { %v1086_v22 = vmul.f32 %v1080_v24, %v1597_v62  ;;  %v1087_v26 = vmul.f32 %v1080_v24, %v1602_v2  ;;  %v1088_v43 = vmul.f32 %v1080_v24, %v1604_v3  ;;  %v1089_v49 = vmul.f32 %v1080_v24, %v1613_v8 }
 0x23b   : > { %v1786_v56 = vmul.f32 %v1080_v24, %v1637_v27  ;;  %v1789_v61 = vmul.f32 %v1080_v24, %v1646_v33  ;;  %v1792_v21 = vmul.f32 %v1080_v24, %v1652_v37  ;;  %v1795_v30 = vmul.f32 %v1080_v24, %v1657_v41 }
 0x23c   : > { %v1798_v62 = vmul.f32 %v1080_v24, %v1683_v1  ;;  %v1801_v2 = vmul.f32 %v1080_v24, %v1690_v9  ;;  %v1804_v3 = vmul.f32 %v1080_v24, %v1696_v14  ;;  %v1807_v8 = vmul.f32 %v1080_v24, %v1701_v19 }
 0x23d   : > { %v1093_v27 = vpop.permute.xlu1 %1092  ;;  %v1810_v33 = vmul.f32 %v1080_v24, %v1727_v45  ;;  %v1813_v37 = vmul.f32 %v1080_v24, %v1734_v51  ;;  %v1816_v41 = vmul.f32 %v1080_v24, %v1740_v60  ;;  %v1819_v1 = vmul.f32 %v1080_v24, %v1745_v5 }
 0x23e   : > { %v1100_v9 = vadd.f32 %v1093_v27, %v1082_v7  ;;  %v1101_v35 = vadd.f32 %v1093_v27, %v1083_v10  ;;  %v1102_v14 = vadd.f32 %v1093_v27, %v1084_v0  ;;  %v1103_v40 = vadd.f32 %v1093_v27, %v1085_v11 }
 0x23f   : > { %v1124_v25 = vadd.f32 %v1116_v12, %v1093_v27  ;;  %v1125_v19 = vadd.f32 %v1117_v15, %v1093_v27  ;;  %v1126_v32 = vadd.f32 %v1118_v16, %v1093_v27  ;;  %v1127_v28 = vadd.f32 %v1119_v18, %v1093_v27 }
 0x240   : > { %v1108_v34 = vmax.f32 %v1100_v9, 0.0  ;;  %v1109_v45 = vmax.f32 %v1101_v35, 0.0  ;;  %v1110_v38 = vmax.f32 %v1102_v14, 0.0  ;;  %v1111_v31 = vmax.f32 %v1103_v40, 0.0 }
 0x241   : > { %v1132_v51 = vmax.f32 %v1124_v25, 0.0  ;;  %v1133_v36 = vmax.f32 %v1125_v19, 0.0  ;;  %v1134_v60 = vmax.f32 %v1126_v32, 0.0  ;;  %v1135_v42 = vmax.f32 %v1127_v28, 0.0  ;;  %v1098_v0 = vpop.permute.xlu1 %1097 }
 0x242   : > { %v1156_v29 = vadd.f32 %v1148_v20, %v1093_v27  ;;  %v1157_v5 = vadd.f32 %v1149_v23, %v1093_v27  ;;  %v1158_v39 = vadd.f32 %v1150_v52, %v1093_v27  ;;  %v1159_v44 = vadd.f32 %v1151_v54, %v1093_v27 }
 0x243   : > { %v1140_v46 = vmax.f32 %v1108_v34, %v1132_v51  ;;  %v1141_v47 = vmax.f32 %v1109_v45, %v1133_v36  ;;  %v1142_v48 = vmax.f32 %v1110_v38, %v1134_v60  ;;  %v1143_v50 = vmax.f32 %v1111_v31, %v1135_v42 }
 0x244   : > { %v1164_v53 = vmax.f32 %v1156_v29, 0.0  ;;  %v1165_v57 = vmax.f32 %v1157_v5, 0.0  ;;  %v1166_v59 = vmax.f32 %v1158_v39, 0.0  ;;  %v1167_v63 = vmax.f32 %v1159_v44, 0.0 }
 0x245   : > { %v1188_v4 = vadd.f32 %v1180_v55, %v1093_v27  ;;  %v1189_v6 = vadd.f32 %v1181_v58, %v1093_v27  ;;  %v1190_v7 = vadd.f32 %v1182_v13, %v1093_v27  ;;  %v1191_v10 = vadd.f32 %v1183_v17, %v1093_v27 }
 0x246   : > { %v1172_v11 = vmax.f32 %v1140_v46, %v1164_v53  ;;  %v1173_v12 = vmax.f32 %v1141_v47, %v1165_v57  ;;  %v1174_v15 = vmax.f32 %v1142_v48, %v1166_v59  ;;  %v1175_v16 = vmax.f32 %v1143_v50, %v1167_v63 }
 0x247   : > { %v1196_v18 = vmax.f32 %v1188_v4, 0.0  ;;  %v1197_v20 = vmax.f32 %v1189_v6, 0.0  ;;  %v1198_v23 = vmax.f32 %v1190_v7, 0.0  ;;  %v1199_v52 = vmax.f32 %v1191_v10, 0.0 }
 0x248   : > { %v1104_v54 = vadd.f32 %v1098_v0, %v1086_v22  ;;  %v1105_v55 = vadd.f32 %v1098_v0, %v1087_v26  ;;  %v1106_v58 = vadd.f32 %v1098_v0, %v1088_v43  ;;  %v1107_v13 = vadd.f32 %v1098_v0, %v1089_v49 }
 0x249   : > { %v1204_v17 = vmax.f32 %v1172_v11, %v1196_v18  ;;  %v1205_v24 = vmax.f32 %v1173_v12, %v1197_v20  ;;  %v1206_v27 = vmax.f32 %v1174_v15, %v1198_v23  ;;  %v1207_v9 = vmax.f32 %v1175_v16, %v1199_v52 }
 0x24a   : > { %v1112_v35 = vmax.f32 %v1104_v54, 0.0  ;;  %v1113_v14 = vmax.f32 %v1105_v55, 0.0  ;;  %v1114_v40 = vmax.f32 %v1106_v58, 0.0  ;;  %v1115_v25 = vmax.f32 %v1107_v13, 0.0 }
 0x24b   : > { %1212 = vst [vmem:[%s1825_s10] sm:$0xff] %v1204_v17  ;;  %1213 = vst [vmem:[%s1825_s10 + $0x8] sm:$0xff] %v1205_v24  ;;  %v1128_v19 = vadd.f32 %v1786_v56, %v1098_v0  ;;  %v1129_v22 = vadd.f32 %v1789_v61, %v1098_v0  ;;  %v1130_v26 = vadd.f32 %v1792_v21, %v1098_v0 }
 0x24c   : > { %1214 = vst [vmem:[%s1825_s10 + $0x10] sm:$0xff] %v1206_v27  ;;  %1215 = vst.msk [vmem:[%s1825_s10 + $0x18] sm:$0xff] %vm384_vm4, %v1207_v9  ;;  %v1131_v43 = vadd.f32 %v1795_v30, %v1098_v0  ;;  %v1160_v49 = vadd.f32 %v1798_v62, %v1098_v0  ;;  %v1161_v32 = vadd.f32 %v1801_v2, %v1098_v0 }
 0x24d   : > { %v1162_v28 = vadd.f32 %v1804_v3, %v1098_v0  ;;  %v1163_v34 = vadd.f32 %v1807_v8, %v1098_v0  ;;  %v1136_v45 = vmax.f32 %v1128_v19, 0.0  ;;  %v1137_v38 = vmax.f32 %v1129_v22, 0.0 }
 0x24e   : > { %v1138_v31 = vmax.f32 %v1130_v26, 0.0  ;;  %v1139_v51 = vmax.f32 %v1131_v43, 0.0  ;;  %v1168_v36 = vmax.f32 %v1160_v49, 0.0  ;;  %v1169_v56 = vmax.f32 %v1161_v32, 0.0 }
 0x24f   : > { %v1170_v60 = vmax.f32 %v1162_v28, 0.0  ;;  %v1171_v61 = vmax.f32 %v1163_v34, 0.0  ;;  %v1144_v42 = vmax.f32 %v1112_v35, %v1136_v45  ;;  %v1145_v21 = vmax.f32 %v1113_v14, %v1137_v38 }
 0x250   : > { %v1146_v29 = vmax.f32 %v1114_v40, %v1138_v31  ;;  %v1147_v30 = vmax.f32 %v1115_v25, %v1139_v51  ;;  %v1192_v62 = vadd.f32 %v1810_v33, %v1098_v0  ;;  %v1193_v2 = vadd.f32 %v1813_v37, %v1098_v0 }
 0x251   : > { %v1194_v3 = vadd.f32 %v1816_v41, %v1098_v0  ;;  %v1195_v8 = vadd.f32 %v1819_v1, %v1098_v0  ;;  %v1176_v5 = vmax.f32 %v1144_v42, %v1168_v36  ;;  %v1177_v39 = vmax.f32 %v1145_v21, %v1169_v56 }
 0x252   : > { %v1178_v44 = vmax.f32 %v1146_v29, %v1170_v60  ;;  %v1179_v46 = vmax.f32 %v1147_v30, %v1171_v61  ;;  %v1200_v47 = vmax.f32 %v1192_v62, 0.0  ;;  %v1201_v48 = vmax.f32 %v1193_v2, 0.0 }
 0x253   : > { %v1202_v50 = vmax.f32 %v1194_v3, 0.0  ;;  %v1203_v53 = vmax.f32 %v1195_v8, 0.0 }
 0x254   : > { %v1208_v57 = vmax.f32 %v1176_v5, %v1200_v47  ;;  %v1209_v33 = vmax.f32 %v1177_v39, %v1201_v48 }
 0x255   : > { %v1210_v59 = vmax.f32 %v1178_v44, %v1202_v50  ;;  %v1211_v63 = vmax.f32 %v1179_v46, %v1203_v53 }
 0x256   : > { %1216 = vst [vmem:[%s1825_s10 + $0x20] sm:$0xff] %v1208_v57  ;;  %1217 = vst [vmem:[%s1825_s10 + $0x28] sm:$0xff] %v1209_v33 }
 0x257   : > { %1218 = vst [vmem:[%s1825_s10 + $0x30] sm:$0xff] %v1210_v59  ;;  %1219 = vst.msk [vmem:[%s1825_s10 + $0x38] sm:$0xff] %vm384_vm4, %v1211_v63 }
 0x258 PF: > { %s14_s15 = sadd.s32 1, %s1415_s15  }
 0x259   : > { %p11_p4 = scmp.ge.s32.totalorder %s14_s15, 5  }
 0x25b   :  { %13 = sbr.rel (!%p11_p4) target bundleno = 1 (0x1), region = 69 }

// kernel: rnn_net_forward.6
= control target key start
LH: loop header
LB: loop body
LE: loop exit
PB: predicated region body
PF: predicated region fallthrough
CT: control target
= control target key end

     0   :  { %s1190_s15 = smov 0   ;;  %s1540_s0 = inlined_call_operand.vmem [shape: f32[3,4,144,128], index: 0, kind: input, shape index: {}]   ;;  %s1541_s1 = inlined_call_operand.vmem [shape: f32[32,144], index: 1, kind: input, shape index: {}]   ;;  %s1542_s2 = inlined_call_operand.vmem [shape: f32[32,1], index: 2, kind: input, shape index: {}]   ;;  %s1543_s3 = inlined_call_operand.vmem [shape: f32[32,1], index: 3, kind: input, shape index: {}]   ;;  %s1544_s4 = inlined_call_operand.vmem [shape: f32[3,32,128], index: 4, kind: output, shape index: {}]  }
   0x1 LB: > { %s945_s16 = sadd.s32 4294967295, %s1161_s15   ;;  %p949_p0 = scmp.ge.s32.totalorder %s1161_s15, 1  ;;  %s1161_s15 = sphi %s1190_s15, %s14_s15  }
   0x2   : > { %p162_p1 = scmp.lt.s32.totalorder %s1161_s15, 4 }
   0x4   : > { %p163_p2 = pnand %p949_p0, %p162_p1 }
   0x5   : > { %p188_p3 = scmp.lt.s32.totalorder (!%p163_p2), %s945_s16, 2  ;;  %v1201_v0 = vld [vmem:[%s1541_s1 + $0x8] sm:$0xff] (!%p163_p2)  ;;  %vm224_vm0 = vcmask (!%p163_p2), 130048   ;;  %v1163_v1 = vmov (!%p163_p2), 0.0|0.0   ;;  %v1276_v60 = vld [vmem:[%s1541_s1] sm:$0xff] (!%p163_p2) }
   0x6   : > { %166 = sbr.rel (%p163_p2) target bundleno = 651 (0x28b), region = 36  ;;  %1026 = vmatprep.subr.bf16.mxu0 (!%p163_p2), %v1163_v1  ;;  %1053 = vmatprep.subr.bf16.mxu1 (!%p163_p2), %v1163_v1 }
   0x7   : > { %953 = vmatprep.mubr.msk.f32.mxu0 (!%p163_p2), %vm224_vm0, %v1201_v0  ;;  %975 = vmatprep.mubr.msk.f32.mxu1 (!%p163_p2), %vm224_vm0, %v1201_v0 }
   0xd   : > { %s1546_s16 = smov (!%p188_p3, %s945_s16), 2 }
   0xe   : > { %s1134_s19 = smul.u32 576, %s1546_s16  ;;  %s1025_s29 = sshll.u32 %s1546_s16, 5 }
   0xf   : > { %s1519_s6 = scalar_lea.vmem %s1544_s4, %s1025_s29 }
  0x10   : > { %s1215_s22 = scalar_lea.vmem %s1540_s0, %s1134_s19 }
  0x11   : > { %v206_v2 = vld [vmem:[%s1215_s22] sm:$0xff]  ;;  %v207_v3 = vld [vmem:[%s1215_s22 + $0x8] sm:$0xff]  ;;  %v957_v4 = vld [vmem:[%s1215_s22 + $0x90] sm:$0xff] }
  0x12   : > { %v1027_v5 = vpack.c.bf16 %v207_v3, %v206_v2  ;;  %v958_v6 = vld [vmem:[%s1215_s22 + $0x98] sm:$0xff]  ;;  %v208_v7 = vld [vmem:[%s1215_s22 + $0x10] sm:$0xff]  ;;  %v959_v10 = vld [vmem:[%s1215_s22 + $0xa0] sm:$0xff] }
  0x13   : > { %v209_v8 = vld [vmem:[%s1215_s22 + $0x18] sm:$0xff]  ;;  %v1054_v9 = vpack.c.bf16 %v958_v6, %v957_v4  ;;  %v960_v11 = vld [vmem:[%s1215_s22 + $0xa8] sm:$0xff]  ;;  %v210_v14 = vld [vmem:[%s1215_s22 + $0x20] sm:$0xff] }
  0x14   : > { %1028 = vmatpush1.bf16.msra.mxu0 %v1027_v5  ;;  %v1030_v12 = vpack.c.bf16 %v209_v8, %v208_v7  ;;  %v1057_v13 = vpack.c.bf16 %v960_v11, %v959_v10  ;;  %v211_v15 = vld [vmem:[%s1215_s22 + $0x28] sm:$0xff]  ;;  %v961_v16 = vld [vmem:[%s1215_s22 + $0xb0] sm:$0xff]  ;;  %v962_v17 = vld [vmem:[%s1215_s22 + $0xb8] sm:$0xff] }
  0x15   : > { %1055 = vmatpush1.bf16.msra.mxu1 %v1054_v9  ;;  %1029 = vmatprep.subr.bf16.mxu0 %v1163_v1  ;;  %v1033_v18 = vpack.c.bf16 %v211_v15, %v210_v14  ;;  %v1060_v19 = vpack.c.bf16 %v962_v17, %v961_v16  ;;  %v212_v20 = vld [vmem:[%s1215_s22 + $0x30] sm:$0xff]  ;;  %v213_v21 = vld [vmem:[%s1215_s22 + $0x38] sm:$0xff]  ;;  %v963_v22 = vld [vmem:[%s1215_s22 + $0xc0] sm:$0xff] }
  0x16   : > { %1056 = vmatprep.subr.bf16.mxu1 %v1163_v1  ;;  %v964_v23 = vld [vmem:[%s1215_s22 + $0xc8] sm:$0xff]  ;;  %v1036_v24 = vpack.c.bf16 %v213_v21, %v212_v20  ;;  %v214_v26 = vld [vmem:[%s1215_s22 + $0x40] sm:$0xff]  ;;  %v965_v28 = vld [vmem:[%s1215_s22 + $0xd0] sm:$0xff] }
  0x17   : > { %v1063_v25 = vpack.c.bf16 %v964_v23, %v963_v22  ;;  %v215_v27 = vld [vmem:[%s1215_s22 + $0x48] sm:$0xff]  ;;  %v966_v29 = vld [vmem:[%s1215_s22 + $0xd8] sm:$0xff]  ;;  %v216_v32 = vld [vmem:[%s1215_s22 + $0x50] sm:$0xff] }
  0x18   : > { %1031 = vmatpush1.bf16.msra.mxu0 %v1030_v12  ;;  %v1039_v30 = vpack.c.bf16 %v215_v27, %v214_v26  ;;  %v1066_v31 = vpack.c.bf16 %v966_v29, %v965_v28  ;;  %v217_v33 = vld [vmem:[%s1215_s22 + $0x58] sm:$0xff]  ;;  %v967_v34 = vld [vmem:[%s1215_s22 + $0xe0] sm:$0xff]  ;;  %v968_v35 = vld [vmem:[%s1215_s22 + $0xe8] sm:$0xff] }
  0x19   : > { %1058 = vmatpush1.bf16.msra.mxu1 %v1057_v13  ;;  %1032 = vmatprep.subr.bf16.mxu0 %v1163_v1  ;;  %v1042_v36 = vpack.c.bf16 %v217_v33, %v216_v32  ;;  %v1069_v37 = vpack.c.bf16 %v968_v35, %v967_v34  ;;  %v218_v38 = vld [vmem:[%s1215_s22 + $0x60] sm:$0xff]  ;;  %v219_v39 = vld [vmem:[%s1215_s22 + $0x68] sm:$0xff]  ;;  %v969_v40 = vld [vmem:[%s1215_s22 + $0xf0] sm:$0xff] }
  0x1a   : > { %1059 = vmatprep.subr.bf16.mxu1 %v1163_v1  ;;  %v970_v41 = vld [vmem:[%s1215_s22 + $0xf8] sm:$0xff]  ;;  %v1045_v42 = vpack.c.bf16 %v219_v39, %v218_v38  ;;  %v220_v44 = vld [vmem:[%s1215_s22 + $0x70] sm:$0xff]  ;;  %v971_v46 = vld [vmem:[%s1215_s22 + $0x100] sm:$0xff] }
  0x1b   : > { %v1072_v43 = vpack.c.bf16 %v970_v41, %v969_v40  ;;  %v221_v45 = vld [vmem:[%s1215_s22 + $0x78] sm:$0xff]  ;;  %v972_v47 = vld [vmem:[%s1215_s22 + $0x108] sm:$0xff]  ;;  %v222_v50 = vld [vmem:[%s1215_s22 + $0x80] sm:$0xff] }
  0x1c   : > { %1034 = vmatpush1.bf16.msra.mxu0 %v1033_v18  ;;  %v1048_v48 = vpack.c.bf16 %v221_v45, %v220_v44  ;;  %v1075_v49 = vpack.c.bf16 %v972_v47, %v971_v46  ;;  %v223_v51 = vld [vmem:[%s1215_s22 + $0x88] sm:$0xff]  ;;  %v973_v52 = vld [vmem:[%s1215_s22 + $0x110] sm:$0xff]  ;;  %v974_v53 = vld [vmem:[%s1215_s22 + $0x118] sm:$0xff] }
  0x1d   : > { %1061 = vmatpush1.bf16.msra.mxu1 %v1060_v19  ;;  %1035 = vmatprep.subr.bf16.mxu0 %v1163_v1  ;;  %v1051_v54 = vpack.c.bf16 %v223_v51, %v222_v50  ;;  %v1078_v55 = vpack.c.bf16 %v974_v53, %v973_v52  ;;  %v979_v56 = vld [vmem:[%s1215_s22 + $0x120] sm:$0xff]  ;;  %v980_v57 = vld [vmem:[%s1215_s22 + $0x128] sm:$0xff]  ;;  %v1001_v58 = vld [vmem:[%s1215_s22 + $0x1b0] sm:$0xff] }
  0x1e   : > { %1062 = vmatprep.subr.bf16.mxu1 %v1163_v1  ;;  %v1002_v59 = vld [vmem:[%s1215_s22 + $0x1b8] sm:$0xff]  ;;  %v1081_v61 = vpack.c.bf16 %v980_v57, %v979_v56  ;;  %v981_v62 = vld [vmem:[%s1215_s22 + $0x130] sm:$0xff]  ;;  %v1003_v4 = vld [vmem:[%s1215_s22 + $0x1c0] sm:$0xff] }
  0x1f   : > { %v982_v63 = vld [vmem:[%s1215_s22 + $0x138] sm:$0xff]  ;;  %v1108_v3 = vpack.c.bf16 %v1002_v59, %v1001_v58  ;;  %v1004_v5 = vld [vmem:[%s1215_s22 + $0x1c8] sm:$0xff]  ;;  %v1296_v7 = vld [vmem:[%s1541_s1 + $0x10] sm:$0xff] }
  0x20   : > { %1037 = vmatpush1.bf16.msra.mxu0 %v1036_v24  ;;  %v1284_v2 = vld [vmem:[%s1541_s1 + $0x18] sm:$0xff]  ;;  %v1084_v6 = vpack.c.bf16 %v982_v63, %v981_v62  ;;  %v983_v8 = vld [vmem:[%s1215_s22 + $0x140] sm:$0xff]  ;;  %v984_v9 = vld [vmem:[%s1215_s22 + $0x148] sm:$0xff]  ;;  %v1111_v10 = vpack.c.bf16 %v1004_v5, %v1003_v4 }
  0x21   : > { %1064 = vmatpush1.bf16.msra.mxu1 %v1063_v25  ;;  %1038 = vmatprep.subr.bf16.mxu0 %v1163_v1  ;;  %v1306_v11 = vld [vmem:[%s1541_s1 + $0x28] sm:$0xff]  ;;  %v1005_v12 = vld [vmem:[%s1215_s22 + $0x1d0] sm:$0xff]  ;;  %v1006_v13 = vld [vmem:[%s1215_s22 + $0x1d8] sm:$0xff]  ;;  %v1087_v14 = vpack.c.bf16 %v984_v9, %v983_v8 }
  0x22   : > { %1065 = vmatprep.subr.bf16.mxu1 %v1163_v1  ;;  %v1316_v15 = vld [vmem:[%s1541_s1 + $0x20] sm:$0xff]  ;;  %v985_v16 = vld [vmem:[%s1215_s22 + $0x150] sm:$0xff]  ;;  %v986_v17 = vld [vmem:[%s1215_s22 + $0x158] sm:$0xff]  ;;  %v1114_v19 = vpack.c.bf16 %v1006_v13, %v1005_v12 }
  0x23   : > { %v1326_v18 = vld [vmem:[%s1541_s1 + $0x38] sm:$0xff]  ;;  %v1007_v20 = vld [vmem:[%s1215_s22 + $0x1e0] sm:$0xff]  ;;  %v1008_v21 = vld [vmem:[%s1215_s22 + $0x1e8] sm:$0xff]  ;;  %v1090_v22 = vpack.c.bf16 %v986_v17, %v985_v16 }
  0x24   : > { %1040 = vmatpush1.bf16.msra.mxu0 %v1039_v30  ;;  %v1339_v23 = vld [vmem:[%s1541_s1 + $0x30] sm:$0xff]  ;;  %v987_v24 = vld [vmem:[%s1215_s22 + $0x160] sm:$0xff]  ;;  %v988_v25 = vld [vmem:[%s1215_s22 + $0x168] sm:$0xff]  ;;  %v1117_v26 = vpack.c.bf16 %v1008_v21, %v1007_v20 }
  0x25   : > { %1067 = vmatpush1.bf16.msra.mxu1 %v1066_v31  ;;  %1041 = vmatprep.subr.bf16.mxu0 %v1163_v1  ;;  %v1009_v27 = vld [vmem:[%s1215_s22 + $0x1f0] sm:$0xff]  ;;  %v1010_v28 = vld [vmem:[%s1215_s22 + $0x1f8] sm:$0xff]  ;;  %v1093_v29 = vpack.c.bf16 %v988_v25, %v987_v24  ;;  %v1011_v33 = vld [vmem:[%s1215_s22 + $0x200] sm:$0xff] }
  0x26   : > { %1068 = vmatprep.subr.bf16.mxu1 %v1163_v1  ;;  %v989_v30 = vld [vmem:[%s1215_s22 + $0x170] sm:$0xff]  ;;  %v990_v31 = vld [vmem:[%s1215_s22 + $0x178] sm:$0xff]  ;;  %v1120_v32 = vpack.c.bf16 %v1010_v28, %v1009_v27  ;;  %v1012_v34 = vld [vmem:[%s1215_s22 + $0x208] sm:$0xff] }
  0x27   : > { %v1096_v35 = vpack.c.bf16 %v990_v31, %v989_v30  ;;  %v1123_v38 = vpack.c.bf16 %v1012_v34, %v1011_v33  ;;  %v1014_v39 = vld [vmem:[%s1215_s22 + $0x218] sm:$0xff]  ;;  %v993_v41 = vld [vmem:[%s1215_s22 + $0x190] sm:$0xff]  ;;  %v1015_v44 = vld [vmem:[%s1215_s22 + $0x220] sm:$0xff] }
  0x28   : > { %1043 = vmatpush1.bf16.msra.mxu0 %v1042_v36  ;;  %v991_v36 = vld [vmem:[%s1215_s22 + $0x180] sm:$0xff]  ;;  %v1016_v45 = vld [vmem:[%s1215_s22 + $0x228] sm:$0xff]  ;;  %v1017_v50 = vld [vmem:[%s1215_s22 + $0x230] sm:$0xff] }
  0x29   : > { %1070 = vmatpush1.bf16.msra.mxu1 %v1069_v37  ;;  %1044 = vmatprep.subr.bf16.mxu0 %v1163_v1  ;;  %v992_v37 = vld [vmem:[%s1215_s22 + $0x188] sm:$0xff]  ;;  %v995_v47 = vld [vmem:[%s1215_s22 + $0x1a0] sm:$0xff]  ;;  %v1018_v51 = vld [vmem:[%s1215_s22 + $0x238] sm:$0xff] }
  0x2a   : > { %1071 = vmatprep.subr.bf16.mxu1 %v1163_v1  ;;  %v1099_v40 = vpack.c.bf16 %v992_v37, %v991_v36  ;;  %v1132_v53 = vpack.c.bf16 %v1018_v51, %v1017_v50 }
  0x2c   : > { %1046 = vmatpush1.bf16.msra.mxu0 %v1045_v42  ;;  %v994_v42 = vld [vmem:[%s1215_s22 + $0x198] sm:$0xff] }
  0x2d   : > { %1073 = vmatpush1.bf16.msra.mxu1 %v1072_v43  ;;  %1047 = vmatprep.subr.bf16.mxu0 %v1163_v1  ;;  %v1102_v46 = vpack.c.bf16 %v994_v42, %v993_v41 }
  0x2e   : > { %1074 = vmatprep.subr.bf16.mxu1 %v1163_v1 }
  0x30   : > { %1049 = vmatpush1.bf16.msra.mxu0 %v1048_v48  ;;  %v996_v48 = vld [vmem:[%s1215_s22 + $0x1a8] sm:$0xff] }
  0x31   : > { %1076 = vmatpush1.bf16.msra.mxu1 %v1075_v49  ;;  %1050 = vmatprep.subr.bf16.mxu0 %v1163_v1  ;;  %v1129_v49 = vpack.c.bf16 %v1016_v45, %v1015_v44  ;;  %v1105_v52 = vpack.c.bf16 %v996_v48, %v995_v47 }
  0x32   : > { %1077 = vmatprep.subr.bf16.mxu1 %v1163_v1 }
  0x34   : > { %1052 = vmatpush1.bf16.msra.mxu0 %v1051_v54 }
  0x35   : > { %1079 = vmatpush1.bf16.msra.mxu1 %v1078_v55  ;;  %1080 = vmatprep.subr.bf16.mxu0 %v1163_v1 }
  0x36   : > { %1107 = vmatprep.subr.bf16.mxu1 %v1163_v1 }
  0x37   : > { %302 = vmatmul.mubr.f32.vlgmr.msra.gmra.mrb[0].mxu0 %v1276_v60 }
  0x38   : > { %426 = vmatmul.mubr.f32.vlgmr.msra.gmra.mrb[0].mxu1 %v1276_v60  ;;  %1082 = vmatpush1.bf16.msra.mxu0 %v1081_v61 }
  0x39   : > { %976 = vmatprep.mubr.msk.f32.mxu1 %vm224_vm0, %v1284_v2  ;;  %1083 = vmatprep.subr.bf16.mxu0 %v1163_v1 }
  0x3a   : > { %1109 = vmatpush1.bf16.msra.mxu1 %v1108_v3  ;;  %954 = vmatprep.mubr.msk.f32.mxu0 %vm224_vm0, %v1284_v2 }
  0x3b   : > { %307 = vmatmul.mubr.f32.gmra.mrb[2].mxu0 %v1296_v7  ;;  %1110 = vmatprep.subr.bf16.mxu1 %v1163_v1 }
  0x3c   : > { %431 = vmatmul.mubr.f32.gmra.mrb[2].mxu1 %v1296_v7  ;;  %1085 = vmatpush1.bf16.msra.mxu0 %v1084_v6 }
  0x3d   : > { %1086 = vmatprep.subr.bf16.mxu0 %v1163_v1  ;;  %955 = vmatprep.mubr.msk.f32.mxu0 %vm224_vm0, %v1306_v11 }
  0x3e   : > { %1112 = vmatpush1.bf16.msra.mxu1 %v1111_v10  ;;  %977 = vmatprep.mubr.msk.f32.mxu1 %vm224_vm0, %v1306_v11 }
  0x3f   : > { %1113 = vmatprep.subr.bf16.mxu1 %v1163_v1  ;;  %312 = vmatmul.mubr.f32.gmra.mrb[4].mxu0 %v1316_v15 }
  0x40   : > { %1088 = vmatpush1.bf16.msra.mxu0 %v1087_v14  ;;  %956 = vmatprep.mubr.msk.f32.mxu0 %vm224_vm0, %v1326_v18 }
  0x41   : > { %1089 = vmatprep.subr.bf16.mxu0 %v1163_v1  ;;  %436 = vmatmul.mubr.f32.gmra.mrb[4].mxu1 %v1316_v15 }
  0x42   : > { %1115 = vmatpush1.bf16.msra.mxu1 %v1114_v19  ;;  %978 = vmatprep.mubr.msk.f32.mxu1 %vm224_vm0, %v1326_v18 }
  0x43   : > { %1116 = vmatprep.subr.bf16.mxu1 %v1163_v1  ;;  %317 = vmatmul.mubr.f32.gmra.mrb[6].mxu0 %v1339_v23 }
  0x44   : > { %1091 = vmatpush1.bf16.msra.mxu0 %v1090_v22  ;;  %997 = vmatprep.mubr.msk.f32.mxu0 %vm224_vm0, %v1201_v0 }
  0x45   : > { %1092 = vmatprep.subr.bf16.mxu0 %v1163_v1  ;;  %441 = vmatmul.mubr.f32.gmra.mrb[6].mxu1 %v1339_v23 }
  0x46   : > { %1118 = vmatpush1.bf16.msra.mxu1 %v1117_v26  ;;  %1019 = vmatprep.mubr.msk.f32.mxu1 %vm224_vm0, %v1201_v0  ;;  %v1013_v0 = vld [vmem:[%s1215_s22 + $0x210] sm:$0xff] }
  0x47   : > { %1119 = vmatprep.subr.bf16.mxu1 %v1163_v1  ;;  %v1126_v43 = vpack.c.bf16 %v1014_v39, %v1013_v0  ;;  %v1164_v0 = vmov 0  }
  0x48   : > { %1094 = vmatpush1.bf16.msra.mxu0 %v1093_v29  ;;  %1145 = vset.pattern.permute.xlu0 %v1164_v0 }
  0x49   : > { %1095 = vmatprep.subr.bf16.mxu0 %v1163_v1  ;;  %1146 = vset.pattern.permute.xlu1 %v1164_v0 }
  0x4a   : > { %1121 = vmatpush1.bf16.msra.mxu1 %v1120_v32 }
  0x4b   : > { %1122 = vmatprep.subr.bf16.mxu1 %v1163_v1 }
  0x4c   : > { %1097 = vmatpush1.bf16.msra.mxu0 %v1096_v35 }
  0x4d   : > { %1098 = vmatprep.subr.bf16.mxu0 %v1163_v1 }
  0x4e   : > { %1124 = vmatpush1.bf16.msra.mxu1 %v1123_v38 }
  0x4f   : > { %1125 = vmatprep.subr.bf16.mxu1 %v1163_v1 }
  0x50   : > { %1100 = vmatpush1.bf16.msra.mxu0 %v1099_v40 }
  0x51   : > { %1101 = vmatprep.subr.bf16.mxu0 %v1163_v1 }
  0x52   : > { %1127 = vmatpush1.bf16.msra.mxu1 %v1126_v43 }
  0x53   : > { %1128 = vmatprep.subr.bf16.mxu1 %v1163_v1 }
  0x54   : > { %1103 = vmatpush1.bf16.msra.mxu0 %v1102_v46 }
  0x55   : > { %1104 = vmatprep.subr.bf16.mxu0 %v1163_v1 }
  0x56   : > { %1130 = vmatpush1.bf16.msra.mxu1 %v1129_v49 }
  0x57   : > { %1131 = vmatprep.subr.bf16.mxu1 %v1163_v1 }
  0x58   : > { %1106 = vmatpush1.bf16.msra.mxu0 %v1105_v52 }
  0x5a   : > { %1133 = vmatpush1.bf16.msra.mxu1 %v1132_v53 }
  0x5b   : > { %558 = vmatmul.mubr.f32.vlgmr.msra.gmra.mrb[8].mxu0 %v1276_v60 }
  0x5c   : > { %998 = vmatprep.mubr.msk.f32.mxu0 %vm224_vm0, %v1284_v2 }
  0x5d   : > { %690 = vmatmul.mubr.f32.vlgmr.msra.gmra.mrb[8].mxu1 %v1276_v60 }
  0x5e   : > { %1020 = vmatprep.mubr.msk.f32.mxu1 %vm224_vm0, %v1284_v2 }
  0x5f   : > { %563 = vmatmul.mubr.f32.gmra.mrb[10].mxu0 %v1296_v7 }
  0x60   : > { %999 = vmatprep.mubr.msk.f32.mxu0 %vm224_vm0, %v1306_v11 }
  0x61   : > { %695 = vmatmul.mubr.f32.gmra.mrb[10].mxu1 %v1296_v7 }
  0x62   : > { %1021 = vmatprep.mubr.msk.f32.mxu1 %vm224_vm0, %v1306_v11 }
  0x63   : > { %568 = vmatmul.mubr.f32.gmra.mrb[12].mxu0 %v1316_v15 }
  0x64   : > { %1000 = vmatprep.mubr.msk.f32.mxu0 %vm224_vm0, %v1326_v18 }
  0x65   : > { %700 = vmatmul.mubr.f32.gmra.mrb[12].mxu1 %v1316_v15 }
  0x66   : > { %1022 = vmatprep.mubr.msk.f32.mxu1 %vm224_vm0, %v1326_v18 }
  0x67   : > { %573 = vmatmul.mubr.f32.gmra.mrb[14].mxu0 %v1339_v23 }
  0x69   : > { %705 = vmatmul.mubr.f32.gmra.mrb[14].mxu1 %v1339_v23 }
 0x10a   : > { %v1402_v1 = vpop.f32.mrb[0].mxu0 }
 0x10b   : > { %322 = vadd.xlane.f32.xlu0 %v1402_v1  ;;  %v305_v54 = vpop.f32.mrb[1].mxu0  ;;  %v1405_v55 = vpop.f32.mrb[0].mxu1  ;;  %v330_v62 = vmul.f32 %v1402_v1, %v1402_v1 }
 0x10c   : > { %v429_v56 = vpop.f32.mrb[1].mxu1  ;;  %v454_v5 = vmul.f32 %v1405_v55, %v1405_v55 }
 0x10e   : > { %v1407_v57 = vpop.f32.mrb[2].mxu0 }
 0x10f   : > { %v1409_v58 = vpop.f32.mrb[2].mxu1  ;;  %446 = vadd.xlane.f32.xlu0 %v1405_v55  ;;  %v310_v59 = vpop.f32.mrb[3].mxu0  ;;  %v331_v60 = vmul.f32 %v1407_v57, %v1407_v57 }
 0x110   : > { %448 = vadd.xlane.f32.xlu1 %v1409_v58  ;;  %v434_v61 = vpop.f32.mrb[3].mxu1  ;;  %v455_v3 = vmul.f32 %v1409_v58, %v1409_v58 }
 0x112   : > { %v1417_v63 = vpop.f32.mrb[4].mxu0 }
 0x113   : > { %334 = vadd.xlane.f32.xlu0 %v330_v62  ;;  %v315_v2 = vpop.f32.mrb[5].mxu0  ;;  %v332_v11 = vmul.f32 %v1417_v63, %v1417_v63 }
 0x114   : > { %336 = vadd.xlane.f32.xlu1 %v331_v60  ;;  %v1421_v4 = vpop.f32.mrb[4].mxu1 }
 0x115   : > { %v439_v6 = vpop.f32.mrb[5].mxu1  ;;  %v456_v13 = vmul.f32 %v1421_v4, %v1421_v4 }
 0x116   : > { %v1425_v7 = vpop.f32.mrb[6].mxu0 }
 0x117   : > { %458 = vadd.xlane.f32.xlu0 %v454_v5  ;;  %v320_v8 = vpop.f32.mrb[7].mxu0  ;;  %v333_v12 = vmul.f32 %v1425_v7, %v1425_v7 }
 0x118   : > { %460 = vadd.xlane.f32.xlu1 %v455_v3  ;;  %v1427_v9 = vpop.f32.mrb[6].mxu1 }
 0x119   : > { %v444_v10 = vpop.f32.mrb[7].mxu1  ;;  %v457_v14 = vmul.f32 %v1427_v9, %v1427_v9 }
 0x11b   : > { %324 = vadd.xlane.f32.xlu0 %v1407_v57 }
 0x11c   : > { %326 = vadd.xlane.f32.xlu1 %v1417_v63 }
 0x11f   : > { %450 = vadd.xlane.f32.xlu0 %v1421_v4 }
 0x120   : > { %328 = vadd.xlane.f32.xlu1 %v1425_v7 }
 0x123   : > { %338 = vadd.xlane.f32.xlu0 %v332_v11 }
 0x124   : > { %452 = vadd.xlane.f32.xlu1 %v1427_v9 }
 0x127   : > { %462 = vadd.xlane.f32.xlu0 %v456_v13 }
 0x128   : > { %340 = vadd.xlane.f32.xlu1 %v333_v12 }
 0x12c   : > { %464 = vadd.xlane.f32.xlu1 %v457_v14 }
 0x12e   : > { %v1442_v15 = vpop.f32.mrb[8].mxu0 }
 0x12f   : > { %578 = vadd.xlane.f32.xlu0 %v1442_v15  ;;  %v561_v16 = vpop.f32.mrb[9].mxu0  ;;  %v586_v22 = vmul.f32 %v1442_v15, %v1442_v15 }
 0x130   : > { %v1445_v17 = vpop.f32.mrb[8].mxu1 }
 0x131   : > { %v693_v18 = vpop.f32.mrb[9].mxu1  ;;  %v718_v27 = vmul.f32 %v1445_v17, %v1445_v17 }
 0x132   : > { %v1447_v19 = vpop.f32.mrb[10].mxu0 }
 0x133   : > { %710 = vadd.xlane.f32.xlu0 %v1445_v17  ;;  %580 = vadd.xlane.f32.xlu1 %v1447_v19  ;;  %v566_v20 = vpop.f32.mrb[11].mxu0  ;;  %v587_v28 = vmul.f32 %v1447_v19, %v1447_v19 }
 0x134   : > { %v1451_v21 = vpop.f32.mrb[10].mxu1 }
 0x135   : > { %v698_v23 = vpop.f32.mrb[11].mxu1  ;;  %v719_v33 = vmul.f32 %v1451_v21, %v1451_v21 }
 0x136   : > { %v1455_v24 = vpop.f32.mrb[12].mxu0 }
 0x137   : > { %590 = vadd.xlane.f32.xlu0 %v586_v22  ;;  %712 = vadd.xlane.f32.xlu1 %v1451_v21  ;;  %v571_v25 = vpop.f32.mrb[13].mxu0  ;;  %v588_v35 = vmul.f32 %v1455_v24, %v1455_v24 }
 0x138   : > { %v1458_v26 = vpop.f32.mrb[12].mxu1 }
 0x139   : > { %v703_v29 = vpop.f32.mrb[13].mxu1  ;;  %v720_v36 = vmul.f32 %v1458_v26, %v1458_v26 }
 0x13a   : > { %v1464_v30 = vpop.f32.mrb[14].mxu0 }
 0x13b   : > { %722 = vadd.xlane.f32.xlu0 %v718_v27  ;;  %592 = vadd.xlane.f32.xlu1 %v587_v28  ;;  %v576_v31 = vpop.f32.mrb[15].mxu0  ;;  %v589_v37 = vmul.f32 %v1464_v30, %v1464_v30 }
 0x13c   : > { %v1466_v32 = vpop.f32.mrb[14].mxu1 }
 0x13d   : > { %v708_v34 = vpop.f32.mrb[15].mxu1  ;;  %v721_v38 = vmul.f32 %v1466_v32, %v1466_v32 }
 0x13f   : > { %724 = vadd.xlane.f32.xlu1 %v719_v33  ;;  %582 = vadd.xlane.f32.xlu0 %v1455_v24 }
 0x143   : > { %714 = vadd.xlane.f32.xlu0 %v1458_v26  ;;  %584 = vadd.xlane.f32.xlu1 %v1464_v30 }
 0x147   : > { %594 = vadd.xlane.f32.xlu0 %v588_v35  ;;  %716 = vadd.xlane.f32.xlu1 %v1466_v32 }
 0x14b   : > { %726 = vadd.xlane.f32.xlu0 %v720_v36  ;;  %596 = vadd.xlane.f32.xlu1 %v589_v37 }
 0x14f   : > { %728 = vadd.xlane.f32.xlu1 %v721_v38 }
 0x198   : > { %v323_v39 = vpop.xlane.xlu0 %322 }
 0x19c   : > { %v447_v40 = vpop.xlane.xlu0 %446 }
 0x19d   : > { %v449_v41 = vpop.xlane.xlu1 %448  ;;  %v466_v59 = vadd.f32 %v447_v40, %v323_v39 }
 0x1a0   : > { %v335_v42 = vpop.xlane.xlu0 %334 }
 0x1a1   : > { %v337_v43 = vpop.xlane.xlu1 %336 }
 0x1a4   : > { %v459_v44 = vpop.xlane.xlu0 %458 }
 0x1a5   : > { %v461_v45 = vpop.xlane.xlu1 %460  ;;  %v470_v8 = vadd.f32 %v459_v44, %v335_v42 }
 0x1a6   : > { %v471_v18 = vadd.f32 %v461_v45, %v337_v43 }
 0x1a8   : > { %v325_v46 = vpop.xlane.xlu0 %324 }
 0x1a9   : > { %v327_v47 = vpop.xlane.xlu1 %326  ;;  %v467_v2 = vadd.f32 %v449_v41, %v325_v46 }
 0x1ac   : > { %v451_v48 = vpop.xlane.xlu0 %450 }
 0x1ad   : > { %v329_v49 = vpop.xlane.xlu1 %328  ;;  %v468_v34 = vadd.f32 %v451_v48, %v327_v47 }
 0x1b0   : > { %v339_v51 = vpop.xlane.xlu0 %338 }
 0x1b1   : > { %v453_v50 = vpop.xlane.xlu1 %452 }
 0x1b2   : > { %v469_v42 = vadd.f32 %v453_v50, %v329_v49  ;;  %v758_v50 = vld [vmem:[%s1542_s2] sm:$0xff] }
 0x1b4   : > { %v463_v53 = vpop.xlane.xlu0 %462 }
 0x1b5   : > { %v341_v52 = vpop.xlane.xlu1 %340 }
 0x1b9   : > { %v465_v54 = vpop.xlane.xlu1 %464 }
 0x1bc   : > { %v579_v56 = vpop.xlane.xlu0 %578 }
 0x1bd   : > { %v598_v62 = vadd.f32 %v579_v56, %v466_v59  ;;  %v472_v56 = vadd.f32 %v463_v53, %v339_v51 }
 0x1c0   : > { %v711_v60 = vpop.xlane.xlu0 %710  ;;  %v581_v61 = vpop.xlane.xlu1 %580 }
 0x1c1   : > { %v730_v3 = vadd.f32 %v711_v60, %v598_v62  ;;  %v599_v10 = vadd.f32 %v581_v61, %v467_v2 }
 0x1c3   : > { %v738_v11 = vmul.f32 0.001953125, %v730_v3  ;;  %v473_v3 = vadd.f32 %v465_v54, %v341_v52  ;;  %v759_v52 = vld [vmem:[%s1542_s2 + $0x8] sm:$0xff] }
 0x1c4   : > { %v591_v5 = vpop.xlane.xlu0 %590  ;;  %v713_v6 = vpop.xlane.xlu1 %712 }
 0x1c5   : > { %v602_v12 = vadd.f32 %v591_v5, %v470_v8  ;;  %v731_v13 = vadd.f32 %v713_v6, %v599_v10  ;;  %v746_v22 = vmul.f32 %v738_v11, %v738_v11 }
 0x1c7   : > { %v1482_v23 = vmul.f32 0.001953125, %v731_v13 }
 0x1c8   : > { %v723_v14 = vpop.xlane.xlu0 %722  ;;  %v593_v16 = vpop.xlane.xlu1 %592 }
 0x1c9   : > { %v734_v20 = vadd.f32 %v723_v14, %v602_v12  ;;  %v603_v27 = vadd.f32 %v593_v16, %v471_v18  ;;  %v747_v35 = vmul.f32 %v1482_v23, %v1482_v23 }
 0x1cb   : > { %v742_v25 = vmul.f32 0.001953125, %v734_v20 }
 0x1cc   : > { %v725_v28 = vpop.xlane.xlu1 %724  ;;  %v583_v29 = vpop.xlane.xlu0 %582 }
 0x1cd   : > { %v750_v31 = vsub.f32 %v742_v25, %v746_v22  ;;  %v735_v33 = vadd.f32 %v725_v28, %v603_v27  ;;  %v600_v41 = vadd.f32 %v583_v29, %v468_v34 }
 0x1cf   : > { %v754_v36 = vmax.f32 %v750_v31, 0.0  ;;  %v743_v37 = vmul.f32 0.001953125, %v735_v33  ;;  %v774_v31 = vld [vmem:[%s1543_s3] sm:$0xff] }
 0x1d0   : > { %v715_v38 = vpop.xlane.xlu0 %714  ;;  %v585_v0 = vpop.xlane.xlu1 %584 }
 0x1d1   : > { %v762_v39 = vadd.f32 1e-05, %v754_v36  ;;  %v751_v40 = vsub.f32 %v743_v37, %v747_v35  ;;  %v732_v44 = vadd.f32 %v715_v38, %v600_v41  ;;  %v601_v60 = vadd.f32 %v585_v0, %v469_v42  ;;  %v760_v35 = vld [vmem:[%s1542_s2 + $0x10] sm:$0xff] }
 0x1d3   : > { %1147 = vrsqrt.f32 %v762_v39  ;;  %v755_v43 = vmax.f32 %v751_v40, 0.0  ;;  %v740_v47 = vmul.f32 0.001953125, %v732_v44  ;;  %v761_v40 = vld [vmem:[%s1542_s2 + $0x18] sm:$0xff] }
 0x1d4   : > { %v595_v45 = vpop.xlane.xlu0 %594  ;;  %v717_v46 = vpop.xlane.xlu1 %716 }
 0x1d5   : > { %v763_v59 = vadd.f32 1e-05, %v755_v43  ;;  %v604_v48 = vadd.f32 %v595_v45, %v472_v56  ;;  %v733_v61 = vadd.f32 %v717_v46, %v601_v60  ;;  %v748_v6 = vmul.f32 %v740_v47, %v740_v47  ;;  %v776_v43 = vld [vmem:[%s1543_s3 + $0x10] sm:$0xff]  ;;  %v777_v45 = vld [vmem:[%s1543_s3 + $0x18] sm:$0xff] }
 0x1d7   : > { %1149 = vrsqrt.f32 %v763_v59  ;;  %v741_v8 = vmul.f32 0.001953125, %v733_v61 }
 0x1d8   : > { %v727_v62 = vpop.xlane.xlu0 %726  ;;  %v597_v2 = vpop.xlane.xlu1 %596 }
 0x1d9   : > { %v736_v5 = vadd.f32 %v727_v62, %v604_v48  ;;  %v605_v49 = vadd.f32 %v597_v2, %v473_v3  ;;  %v749_v16 = vmul.f32 %v741_v8, %v741_v8 }
 0x1db   : > { %v744_v10 = vmul.f32 0.001953125, %v736_v5 }
 0x1dc   : > { %v729_v12 = vpop.xlane.xlu1 %728 }
 0x1dd   : > { %v1148_v51 = vpop.eup %1147  ;;  %v752_v53 = vsub.f32 %v744_v10, %v748_v6  ;;  %v737_v13 = vadd.f32 %v729_v12, %v605_v49 }
 0x1de   : > { %v770_v14 = vmul.f32 %v1148_v51, %v758_v50 }
 0x1df   : > { %v756_v18 = vmax.f32 %v752_v53, 0.0  ;;  %v745_v20 = vmul.f32 0.001953125, %v737_v13 }
 0x1e0   : > { %788 = vperm.xlu0 %1145, %v770_v14   ;;  %v778_v28 = vmul.f32 %v770_v14, %v738_v11  ;;  %v775_v11 = vld [vmem:[%s1543_s3 + $0x8] sm:$0xff] }
 0x1e1   : > { %v1150_v54 = vpop.eup %1149  ;;  %v764_v22 = vadd.f32 1e-05, %v756_v18  ;;  %v753_v25 = vsub.f32 %v745_v20, %v749_v16 }
 0x1e2   : > { %v771_v27 = vmul.f32 %v1150_v54, %v759_v52  ;;  %v782_v34 = vsub.f32 %v774_v31, %v778_v28 }
 0x1e3   : > { %1151 = vrsqrt.f32 %v764_v22  ;;  %v757_v29 = vmax.f32 %v753_v25, 0.0 }
 0x1e4   : > { %793 = vperm.xlu1 %1146, %v771_v27   ;;  %v779_v38 = vmul.f32 %v771_v27, %v1482_v23 }
 0x1e5   : > { %v765_v33 = vadd.f32 1e-05, %v757_v29 }
 0x1e6   : > { %v783_v0 = vsub.f32 %v775_v11, %v779_v38 }
 0x1e7   : > { %1153 = vrsqrt.f32 %v765_v33 }
 0x1e8   : > { %812 = vperm.xlu1 %1146, %v782_v34  }
 0x1ed   : > { %v1152_v36 = vpop.eup %1151 }
 0x1ee   : > { %v772_v37 = vmul.f32 %v1152_v36, %v760_v35 }
 0x1f0   : > { %798 = vperm.xlu1 %1146, %v772_v37   ;;  %v780_v42 = vmul.f32 %v772_v37, %v740_v47 }
 0x1f1   : > { %v1154_v39 = vpop.eup %1153 }
 0x1f2   : > { %v773_v41 = vmul.f32 %v1154_v39, %v761_v40  ;;  %v784_v23 = vsub.f32 %v776_v43, %v780_v42 }
 0x1f4   : > { %817 = vperm.xlu1 %1146, %v783_v0   ;;  %v781_v44 = vmul.f32 %v773_v41, %v741_v8 }
 0x1f6   : > { %v785_v46 = vsub.f32 %v777_v45, %v781_v44 }
 0x1f8   : > { %803 = vperm.xlu1 %1146, %v773_v41  }
 0x1fc   : > { %822 = vperm.xlu1 %1146, %v784_v23  }
 0x200   : > { %827 = vperm.xlu1 %1146, %v785_v46  }
 0x25f   : > { %v789_v56 = vpop.permute.xlu0 %788 }
 0x260   : > { %v806_v60 = vmul.f32 %v789_v56, %v1402_v1  ;;  %v838_v47 = vmul.f32 %v789_v56, %v1405_v55  ;;  %v854_v48 = vmul.f32 %v789_v56, %v1442_v15  ;;  %v870_v62 = vmul.f32 %v789_v56, %v1445_v17 }
 0x263   : > { %v794_v59 = vpop.permute.xlu1 %793 }
 0x264   : > { %v807_v15 = vmul.f32 %v794_v59, %v1407_v57  ;;  %v839_v17 = vmul.f32 %v794_v59, %v1409_v58  ;;  %v855_v53 = vmul.f32 %v794_v59, %v1447_v19  ;;  %v871_v14 = vmul.f32 %v794_v59, %v1451_v21 }
 0x267   : > { %v813_v61 = vpop.permute.xlu1 %812 }
 0x268   : > { %v830_v2 = vadd.f32 %v813_v61, %v806_v60  ;;  %v842_v3 = vadd.f32 %v838_v47, %v813_v61  ;;  %v858_v5 = vadd.f32 %v854_v48, %v813_v61  ;;  %v874_v10 = vadd.f32 %v870_v62, %v813_v61 }
 0x26a   : > { %v834_v6 = vmax.f32 %v830_v2, 0.0  ;;  %v846_v8 = vmax.f32 %v842_v3, 0.0  ;;  %v862_v50 = vmax.f32 %v858_v5, 0.0  ;;  %v878_v51 = vmax.f32 %v874_v10, 0.0 }
 0x26c   : > { %v850_v49 = vmax.f32 %v834_v6, %v846_v8 }
 0x26e   : > { %v866_v12 = vmax.f32 %v850_v49, %v862_v50 }
 0x26f   : > { %v799_v1 = vpop.permute.xlu1 %798 }
 0x270   : > { %v882_v55 = vmax.f32 %v866_v12, %v878_v51  ;;  %v808_v57 = vmul.f32 %v799_v1, %v1417_v63  ;;  %v840_v58 = vmul.f32 %v799_v1, %v1421_v4  ;;  %v856_v19 = vmul.f32 %v799_v1, %v1455_v24 }
 0x271   : > { %v872_v21 = vmul.f32 %v799_v1, %v1458_v26 }
 0x272   : > { %886 = vst [vmem:[%s1519_s6] sm:$0xff] %v882_v55 }
 0x273   : > { %v818_v13 = vpop.permute.xlu1 %817 }
 0x274   : > { %v831_v16 = vadd.f32 %v818_v13, %v807_v15  ;;  %v843_v18 = vadd.f32 %v839_v17, %v818_v13  ;;  %v859_v20 = vadd.f32 %v855_v53, %v818_v13  ;;  %v875_v22 = vadd.f32 %v871_v14, %v818_v13 }
 0x276   : > { %v835_v52 = vmax.f32 %v831_v16, 0.0  ;;  %v847_v54 = vmax.f32 %v843_v18, 0.0  ;;  %v863_v28 = vmax.f32 %v859_v20, 0.0  ;;  %v879_v31 = vmax.f32 %v875_v22, 0.0 }
 0x277   : > { %v804_v25 = vpop.permute.xlu1 %803 }
 0x278   : > { %v851_v27 = vmax.f32 %v835_v52, %v847_v54  ;;  %v809_v11 = vmul.f32 %v804_v25, %v1425_v7  ;;  %v841_v63 = vmul.f32 %v804_v25, %v1427_v9  ;;  %v857_v4 = vmul.f32 %v804_v25, %v1464_v30 }
 0x279   : > { %v873_v40 = vmul.f32 %v804_v25, %v1466_v32 }
 0x27a   : > { %v867_v29 = vmax.f32 %v851_v27, %v863_v28 }
 0x27b   : > { %v823_v33 = vpop.permute.xlu1 %822 }
 0x27c   : > { %v883_v34 = vmax.f32 %v867_v29, %v879_v31  ;;  %v832_v35 = vadd.f32 %v823_v33, %v808_v57  ;;  %v844_v36 = vadd.f32 %v840_v58, %v823_v33  ;;  %v860_v37 = vadd.f32 %v856_v19, %v823_v33 }
 0x27d   : > { %v876_v38 = vadd.f32 %v872_v21, %v823_v33 }
 0x27e   : > { %887 = vst [vmem:[%s1519_s6 + $0x8] sm:$0xff] %v883_v34  ;;  %v836_v0 = vmax.f32 %v832_v35, 0.0  ;;  %v848_v39 = vmax.f32 %v844_v36, 0.0  ;;  %v864_v24 = vmax.f32 %v860_v37, 0.0 }
 0x27f   : > { %v828_v26 = vpop.permute.xlu1 %827  ;;  %v880_v44 = vmax.f32 %v876_v38, 0.0 }
 0x280   : > { %v852_v41 = vmax.f32 %v836_v0, %v848_v39  ;;  %v833_v42 = vadd.f32 %v828_v26, %v809_v11  ;;  %v845_v43 = vadd.f32 %v841_v63, %v828_v26  ;;  %v861_v23 = vadd.f32 %v857_v4, %v828_v26 }
 0x281   : > { %v877_v56 = vadd.f32 %v873_v40, %v828_v26 }
 0x282   : > { %v868_v45 = vmax.f32 %v852_v41, %v864_v24  ;;  %v837_v7 = vmax.f32 %v833_v42, 0.0  ;;  %v849_v46 = vmax.f32 %v845_v43, 0.0  ;;  %v865_v9 = vmax.f32 %v861_v23, 0.0 }
 0x283   : > { %v881_v47 = vmax.f32 %v877_v56, 0.0 }
 0x284   : > { %v884_v59 = vmax.f32 %v868_v45, %v880_v44  ;;  %v853_v60 = vmax.f32 %v837_v7, %v849_v46 }
 0x286   : > { %888 = vst [vmem:[%s1519_s6 + $0x10] sm:$0xff] %v884_v59  ;;  %v869_v30 = vmax.f32 %v853_v60, %v865_v9 }
 0x288   : > { %v885_v48 = vmax.f32 %v869_v30, %v881_v47 }
 0x28a   : > { %889 = vst [vmem:[%s1519_s6 + $0x18] sm:$0xff] %v885_v48 }
 0x28b PF: > { %s14_s15 = sadd.s32 1, %s1161_s15  }
 0x28c   : > { %p11_p4 = scmp.ge.s32.totalorder %s14_s15, 5  }
 0x28e   :  { %13 = sbr.rel (!%p11_p4) target bundleno = 1 (0x1), region = 69 }

// kernel: rnn_net_forward.7
= control target key start
LH: loop header
LB: loop body
LE: loop exit
PB: predicated region body
PF: predicated region fallthrough
CT: control target
= control target key end

     0   :  { %s672_s15 = smov 0   ;;  %s763_s0 = inlined_call_operand.vmem [shape: f32[3,1,288,128], index: 0, kind: input, shape index: {}]   ;;  %s764_s1 = inlined_call_operand.vmem [shape: f32[16,288], index: 1, kind: input, shape index: {}]   ;;  %s765_s2 = inlined_call_operand.vmem [shape: f32[16,1], index: 2, kind: input, shape index: {}]   ;;  %s766_s3 = inlined_call_operand.vmem [shape: f32[16,1], index: 3, kind: input, shape index: {}]   ;;  %s767_s4 = inlined_call_operand.vmem [shape: f32[3,16,128], index: 4, kind: output, shape index: {}]  }
   0x1 LB: > { %s514_s16 = sadd.s32 4294967295, %s644_s15   ;;  %p518_p0 = scmp.ge.s32.totalorder %s644_s15, 1  ;;  %s644_s15 = sphi %s672_s15, %s14_s15  }
   0x2   : > { %p162_p1 = scmp.lt.s32.totalorder %s644_s15, 4 }
   0x4   : > { %p163_p2 = pnand %p518_p0, %p162_p1 }
   0x5   : > { %p188_p3 = scmp.lt.s32.totalorder (!%p163_p2), %s514_s16, 2  ;;  %v199_v0 = vld [vmem:[%s764_s1 + $0x8] sm:$0xff] (!%p163_p2)  ;;  %v200_v1 = vld [vmem:[%s764_s1 + $0x10] sm:$0xff] (!%p163_p2)  ;;  %vm240_vm0 = vcmask (!%p163_p2), 261120   ;;  %v198_v57 = vld [vmem:[%s764_s1] sm:$0xff] (!%p163_p2) }
   0x6   : > { %166 = sbr.rel (%p163_p2) target bundleno = 579 (0x243), region = 36  ;;  %311 = vmatprep.mubr.f32.mxu0 (!%p163_p2), %v199_v0  ;;  %579 = vmatprep.mubr.msk.f32.mxu1 (!%p163_p2), %vm240_vm0, %v200_v1  ;;  %v203_v43 = vld [vmem:[%s764_s1 + $0x28] sm:$0xff] (!%p163_p2)  ;;  %v202_v58 = vld [vmem:[%s764_s1 + $0x20] sm:$0xff] (!%p163_p2)  ;;  %v201_v59 = vld [vmem:[%s764_s1 + $0x18] sm:$0xff] (!%p163_p2) }
   0xd   : > { %s769_s16 = smov (!%p188_p3, %s514_s16), 2 }
   0xe   : > { %s622_s21 = smul.u32 288, %s769_s16  ;;  %s526_s17 = sshll.u32 %s769_s16, 4 }
   0xf   : > { %s197_s20 = scalar_lea.vmem %s767_s4, %s526_s17 }
  0x10   : > { %s693_s24 = scalar_lea.vmem %s763_s0, %s622_s21 }
  0x11   : > { %v220_v2 = vld [vmem:[%s693_s24 + $0x80] sm:$0xff]  ;;  %v221_v3 = vld [vmem:[%s693_s24 + $0x88] sm:$0xff]  ;;  %v222_v7 = vld [vmem:[%s693_s24 + $0x90] sm:$0xff] }
  0x12   : > { %v204_v4 = vld [vmem:[%s693_s24] sm:$0xff]  ;;  %v582_v5 = vpack.c.bf16 %v221_v3, %v220_v2  ;;  %v205_v6 = vld [vmem:[%s693_s24 + $0x8] sm:$0xff]  ;;  %v223_v8 = vld [vmem:[%s693_s24 + $0x98] sm:$0xff] }
  0x13   : > { %v584_v9 = vpack.c.bf16 %v205_v6, %v204_v4  ;;  %v586_v10 = vpack.c.bf16 %v223_v8, %v222_v7  ;;  %v206_v11 = vld [vmem:[%s693_s24 + $0x10] sm:$0xff]  ;;  %v207_v12 = vld [vmem:[%s693_s24 + $0x18] sm:$0xff]  ;;  %v224_v13 = vld [vmem:[%s693_s24 + $0xa0] sm:$0xff]  ;;  %v646_v8 = vmov 0  }
  0x14   : > { %583 = vmatprep.subr.bf16.mxu0 %v582_v5  ;;  %v225_v14 = vld [vmem:[%s693_s24 + $0xa8] sm:$0xff]  ;;  %v588_v15 = vpack.c.bf16 %v207_v12, %v206_v11  ;;  %v208_v17 = vld [vmem:[%s693_s24 + $0x20] sm:$0xff]  ;;  %v226_v19 = vld [vmem:[%s693_s24 + $0xb0] sm:$0xff]  ;;  %632 = vset.pattern.permute.xlu0 %v646_v8 }
  0x15   : > { %585 = vmatpush3.bf16.msra.mxu0 %v584_v9  ;;  %v590_v16 = vpack.c.bf16 %v225_v14, %v224_v13  ;;  %v209_v18 = vld [vmem:[%s693_s24 + $0x28] sm:$0xff]  ;;  %v227_v20 = vld [vmem:[%s693_s24 + $0xb8] sm:$0xff]  ;;  %v210_v22 = vld [vmem:[%s693_s24 + $0x30] sm:$0xff]  ;;  %633 = vset.pattern.permute.xlu1 %v646_v8 }
  0x16   : > { %587 = vmatprep.subr.bf16.mxu0 %v586_v10  ;;  %v592_v21 = vpack.c.bf16 %v209_v18, %v208_v17  ;;  %v594_v23 = vpack.c.bf16 %v227_v20, %v226_v19  ;;  %v211_v24 = vld [vmem:[%s693_s24 + $0x38] sm:$0xff]  ;;  %v236_v25 = vld [vmem:[%s693_s24 + $0x100] sm:$0xff]  ;;  %v237_v26 = vld [vmem:[%s693_s24 + $0x108] sm:$0xff] }
  0x17   : > { %v228_v27 = vld [vmem:[%s693_s24 + $0xc0] sm:$0xff]  ;;  %v229_v28 = vld [vmem:[%s693_s24 + $0xc8] sm:$0xff]  ;;  %v614_v29 = vpack.c.bf16 %v237_v26, %v236_v25  ;;  %v238_v30 = vld [vmem:[%s693_s24 + $0x110] sm:$0xff]  ;;  %v596_v32 = vpack.c.bf16 %v211_v24, %v210_v22 }
  0x18   : > { %v239_v31 = vld [vmem:[%s693_s24 + $0x118] sm:$0xff]  ;;  %v598_v34 = vpack.c.bf16 %v229_v28, %v228_v27  ;;  %v212_v35 = vld [vmem:[%s693_s24 + $0x40] sm:$0xff]  ;;  %v213_v36 = vld [vmem:[%s693_s24 + $0x48] sm:$0xff] }
  0x19   : > { %589 = vmatpush3.bf16.msra.mxu0 %v588_v15  ;;  %615 = vmatprep.subr.bf16.mxu1 %v614_v29  ;;  %v618_v33 = vpack.c.bf16 %v239_v31, %v238_v30  ;;  %v230_v37 = vld [vmem:[%s693_s24 + $0xd0] sm:$0xff]  ;;  %v231_v38 = vld [vmem:[%s693_s24 + $0xd8] sm:$0xff]  ;;  %v600_v39 = vpack.c.bf16 %v213_v36, %v212_v35  ;;  %v232_v44 = vld [vmem:[%s693_s24 + $0xe0] sm:$0xff] }
  0x1a   : > { %591 = vmatprep.subr.bf16.mxu0 %v590_v16  ;;  %617 = vmatpush3.bf16.msra.mxu1 %v614_v29  ;;  %v602_v40 = vpack.c.bf16 %v231_v38, %v230_v37  ;;  %v214_v41 = vld [vmem:[%s693_s24 + $0x50] sm:$0xff]  ;;  %v215_v42 = vld [vmem:[%s693_s24 + $0x58] sm:$0xff]  ;;  %v233_v45 = vld [vmem:[%s693_s24 + $0xe8] sm:$0xff] }
  0x1b   : > { %619 = vmatprep.subr.bf16.mxu1 %v618_v33  ;;  %v604_v46 = vpack.c.bf16 %v215_v42, %v214_v41  ;;  %v606_v47 = vpack.c.bf16 %v233_v45, %v232_v44  ;;  %v216_v48 = vld [vmem:[%s693_s24 + $0x60] sm:$0xff]  ;;  %v217_v49 = vld [vmem:[%s693_s24 + $0x68] sm:$0xff]  ;;  %v234_v50 = vld [vmem:[%s693_s24 + $0xf0] sm:$0xff] }
  0x1c   : > { %v235_v51 = vld [vmem:[%s693_s24 + $0xf8] sm:$0xff]  ;;  %v608_v52 = vpack.c.bf16 %v217_v49, %v216_v48  ;;  %v218_v54 = vld [vmem:[%s693_s24 + $0x70] sm:$0xff]  ;;  %v417_v25 = vld [vmem:[%s765_s2] sm:$0xff] }
  0x1d   : > { %593 = vmatpush3.bf16.msra.mxu0 %v592_v21  ;;  %v610_v53 = vpack.c.bf16 %v235_v51, %v234_v50  ;;  %v219_v55 = vld [vmem:[%s693_s24 + $0x78] sm:$0xff]  ;;  %v418_v28 = vld [vmem:[%s765_s2 + $0x8] sm:$0xff] }
  0x1e   : > { %595 = vmatprep.subr.bf16.mxu0 %v594_v23  ;;  %621 = vmatpush3.bf16.msra.mxu1 %v618_v33  ;;  %v612_v56 = vpack.c.bf16 %v219_v55, %v218_v54  ;;  %v426_v35 = vld [vmem:[%s766_s3 + $0x8] sm:$0xff] }
  0x21   : > { %597 = vmatpush3.bf16.msra.mxu0 %v596_v32  ;;  %580 = vmatmul.mubr.msk.f32.vlgmr.msra.gmra.mrb[0].mxu1 %vm240_vm0, %v203_v43  ;;  %v425_v32 = vld [vmem:[%s766_s3] sm:$0xff] }
  0x22   : > { %599 = vmatprep.subr.bf16.mxu0 %v598_v34 }
  0x25   : > { %601 = vmatpush3.bf16.msra.mxu0 %v600_v39 }
  0x26   : > { %603 = vmatprep.subr.bf16.mxu0 %v602_v40 }
  0x29   : > { %605 = vmatpush3.bf16.msra.mxu0 %v604_v46 }
  0x2a   : > { %607 = vmatprep.subr.bf16.mxu0 %v606_v47 }
  0x2d   : > { %609 = vmatpush3.bf16.msra.mxu0 %v608_v52 }
  0x2e   : > { %611 = vmatprep.subr.bf16.mxu0 %v610_v53 }
  0x31   : > { %613 = vmatpush3.bf16.msra.mxu0 %v612_v56 }
  0x34   : > { %312 = vmatmul.mubr.f32.vlgmr.msra.gmra.mrb[0].mxu0 %v198_v57 }
  0x35   : > { %316 = vmatprep.mubr.f32.mxu0 %v202_v58 }
  0x38   : > { %317 = vmatmul.mubr.f32.gmra.mrb[2].mxu0 %v201_v59 }
  0xf4   : > { %v581_v60 = vpop.f32.mrb[0].mxu1 }
  0xf5   : > { %v388_v61 = vpop.f32.mrb[1].mxu1 }
 0x107   : > { %v559_v62 = vpop.f32.mrb[0].mxu0 }
 0x108   : > { %v560_v63 = vpop.f32.mrb[1].mxu0 }
 0x109   : > { %v561_v0 = vadd.f32 %v560_v63, %v559_v62 }
 0x10b   : > { %v389_v1 = vadd.f32 %v561_v0, %v388_v61  ;;  %v562_v2 = vpop.f32.mrb[2].mxu0 }
 0x10c   : > { %v563_v3 = vpop.f32.mrb[3].mxu0 }
 0x10d   : > { %v564_v4 = vadd.f32 %v563_v3, %v562_v2  ;;  %397 = vadd.xlane.f32.xlu0 %v389_v1  ;;  %v401_v5 = vmul.f32 %v389_v1, %v389_v1 }
 0x10f   : > { %v394_v6 = vadd.f32 %v581_v60, %v564_v4  ;;  %403 = vadd.xlane.f32.xlu1 %v401_v5 }
 0x111   : > { %399 = vadd.xlane.f32.xlu0 %v394_v6  ;;  %v402_v7 = vmul.f32 %v394_v6, %v394_v6 }
 0x113   : > { %405 = vadd.xlane.f32.xlu1 %v402_v7 }
 0x19a   : > { %v398_v9 = vpop.xlane.xlu0 %397 }
 0x19b   : > { %v407_v10 = vmul.f32 0.0078125, %v398_v9 }
 0x19c   : > { %v404_v11 = vpop.xlane.xlu1 %403 }
 0x19d   : > { %v411_v12 = vmul.f32 %v407_v10, %v407_v10  ;;  %v409_v13 = vmul.f32 0.0078125, %v404_v11 }
 0x19e   : > { %v400_v14 = vpop.xlane.xlu0 %399 }
 0x19f   : > { %v413_v15 = vsub.f32 %v409_v13, %v411_v12  ;;  %v408_v16 = vmul.f32 0.0078125, %v400_v14 }
 0x1a0   : > { %v406_v17 = vpop.xlane.xlu1 %405 }
 0x1a1   : > { %v415_v18 = vmax.f32 %v413_v15, 0.0  ;;  %v412_v19 = vmul.f32 %v408_v16, %v408_v16  ;;  %v410_v20 = vmul.f32 0.0078125, %v406_v17 }
 0x1a3   : > { %v419_v21 = vadd.f32 1e-05, %v415_v18  ;;  %v414_v22 = vsub.f32 %v410_v20, %v412_v19 }
 0x1a5   : > { %634 = vrsqrt.f32 %v419_v21  ;;  %v416_v23 = vmax.f32 %v414_v22, 0.0 }
 0x1a7   : > { %v420_v24 = vadd.f32 1e-05, %v416_v23 }
 0x1a9   : > { %636 = vrsqrt.f32 %v420_v24 }
 0x1af   : > { %v635_v26 = vpop.eup %634 }
 0x1b0   : > { %v423_v27 = vmul.f32 %v635_v26, %v417_v25 }
 0x1b2   : > { %433 = vperm.xlu0 %632, %v423_v27   ;;  %v427_v31 = vmul.f32 %v423_v27, %v407_v10 }
 0x1b3   : > { %v637_v29 = vpop.eup %636 }
 0x1b4   : > { %v424_v30 = vmul.f32 %v637_v29, %v418_v28  ;;  %v429_v33 = vsub.f32 %v425_v32, %v427_v31 }
 0x1b6   : > { %438 = vperm.xlu1 %633, %v424_v30   ;;  %v428_v34 = vmul.f32 %v424_v30, %v408_v16 }
 0x1b8   : > { %v430_v36 = vsub.f32 %v426_v35, %v428_v34 }
 0x1ba   : > { %445 = vperm.xlu1 %633, %v429_v33  }
 0x1be   : > { %450 = vperm.xlu1 %633, %v430_v36  }
 0x231   : > { %v434_v37 = vpop.permute.xlu0 %433 }
 0x232   : > { %v441_v39 = vmul.f32 %v434_v37, %v389_v1 }
 0x235   : > { %v439_v38 = vpop.permute.xlu1 %438 }
 0x236   : > { %v442_v42 = vmul.f32 %v439_v38, %v394_v6 }
 0x239   : > { %v446_v40 = vpop.permute.xlu1 %445 }
 0x23a   : > { %v453_v41 = vadd.f32 %v446_v40, %v441_v39 }
 0x23c   : > { %v455_v43 = vmax.f32 %v453_v41, 0.0 }
 0x23d   : > { %v451_v44 = vpop.permute.xlu1 %450 }
 0x23e   : > { %457 = vst [vmem:[%s197_s20] sm:$0xff] %v455_v43  ;;  %v454_v45 = vadd.f32 %v451_v44, %v442_v42 }
 0x240   : > { %v456_v46 = vmax.f32 %v454_v45, 0.0 }
 0x242   : > { %458 = vst [vmem:[%s197_s20 + $0x8] sm:$0xff] %v456_v46 }
 0x243 PF: > { %s14_s15 = sadd.s32 1, %s644_s15  }
 0x244   : > { %p11_p4 = scmp.ge.s32.totalorder %s14_s15, 5  }
 0x246   :  { %13 = sbr.rel (!%p11_p4) target bundleno = 1 (0x1), region = 66 }

// kernel: rnn_net_forward.8
= control target key start
LH: loop header
LB: loop body
LE: loop exit
PB: predicated region body
PF: predicated region fallthrough
CT: control target
= control target key end

     0   :  { %s2762_s1 = inlined_call_operand.vmem [shape: f32[1024,384], index: 1, kind: input, shape index: {}]   ;;  %s2763_s0 = inlined_call_operand.vmem [shape: f32[8,1024], index: 0, kind: input, shape index: {}]   ;;  %s2764_s2 = inlined_call_operand.vmem [shape: f32[1,384], index: 2, kind: input, shape index: {}]   ;;  %s2765_s3 = inlined_call_operand.vmem [shape: f32[8,384], index: 3, kind: output, shape index: {}]  }
   0x1   :  { %v23_v0 = vld [vmem:[%s2762_s1 + $0x8] sm:$0xff]  ;;  %v26_v1 = vld [vmem:[%s2762_s1 + $0x20] sm:$0xff]  ;;  %v25_v6 = vld [vmem:[%s2762_s1 + $0x18] sm:$0xff] }
   0x2   :  { %v119_v2 = vld [vmem:[%s2762_s1 + $0x308] sm:$0xff]  ;;  %v1134_v3 = vpack.c.bf16 %v26_v1, %v23_v0  ;;  %v122_v4 = vld [vmem:[%s2762_s1 + $0x320] sm:$0xff]  ;;  %v121_v10 = vld [vmem:[%s2762_s1 + $0x318] sm:$0xff] }
   0x3   :  { %v22_v5 = vld [vmem:[%s2762_s1] sm:$0xff]  ;;  %v1198_v7 = vpack.c.bf16 %v122_v4, %v119_v2  ;;  %v29_v11 = vld [vmem:[%s2762_s1 + $0x38] sm:$0xff]  ;;  %v32_v13 = vld [vmem:[%s2762_s1 + $0x50] sm:$0xff] }
   0x4   :  { %v1136_v8 = vpack.c.bf16 %v25_v6, %v22_v5  ;;  %v118_v9 = vld [vmem:[%s2762_s1 + $0x300] sm:$0xff]  ;;  %1135 = vmatprep.subr.bf16.mxu1 %v1134_v3  ;;  %v125_v14 = vld [vmem:[%s2762_s1 + $0x338] sm:$0xff]  ;;  %v128_v15 = vld [vmem:[%s2762_s1 + $0x350] sm:$0xff]  ;;  %v1138_v16 = vpack.c.bf16 %v32_v13, %v29_v11 }
   0x5   :  { %v1200_v12 = vpack.c.bf16 %v121_v10, %v118_v9  ;;  %1199 = vmatprep.subr.bf16.mxu0 %v1198_v7  ;;  %v1202_v17 = vpack.c.bf16 %v128_v15, %v125_v14  ;;  %v28_v18 = vld [vmem:[%s2762_s1 + $0x30] sm:$0xff]  ;;  %v31_v19 = vld [vmem:[%s2762_s1 + $0x48] sm:$0xff]  ;;  %v38_v24 = vld [vmem:[%s2762_s1 + $0x80] sm:$0xff] }
   0x6   :  { %1137 = vmatpush1.bf16.msra.mxu1 %v1136_v8  ;;  %v124_v20 = vld [vmem:[%s2762_s1 + $0x330] sm:$0xff]  ;;  %v1140_v21 = vpack.c.bf16 %v31_v19, %v28_v18  ;;  %v127_v22 = vld [vmem:[%s2762_s1 + $0x348] sm:$0xff]  ;;  %v134_v28 = vld [vmem:[%s2762_s1 + $0x380] sm:$0xff] }
   0x7   :  { %1201 = vmatpush1.bf16.msra.mxu0 %v1200_v12  ;;  %v35_v23 = vld [vmem:[%s2762_s1 + $0x68] sm:$0xff]  ;;  %1139 = vmatprep.subr.bf16.mxu1 %v1138_v16  ;;  %v1204_v25 = vpack.c.bf16 %v127_v22, %v124_v20  ;;  %v34_v29 = vld [vmem:[%s2762_s1 + $0x60] sm:$0xff]  ;;  %v37_v31 = vld [vmem:[%s2762_s1 + $0x78] sm:$0xff] }
   0x8   :  { %1203 = vmatprep.subr.bf16.mxu0 %v1202_v17  ;;  %v1142_v26 = vpack.c.bf16 %v38_v24, %v35_v23  ;;  %v131_v27 = vld [vmem:[%s2762_s1 + $0x368] sm:$0xff]  ;;  %v130_v32 = vld [vmem:[%s2762_s1 + $0x360] sm:$0xff]  ;;  %v133_v33 = vld [vmem:[%s2762_s1 + $0x378] sm:$0xff]  ;;  %v1144_v34 = vpack.c.bf16 %v37_v31, %v34_v29 }
   0x9   :  { %v1206_v30 = vpack.c.bf16 %v134_v28, %v131_v27  ;;  %v41_v35 = vld [vmem:[%s2762_s1 + $0x98] sm:$0xff]  ;;  %v44_v36 = vld [vmem:[%s2762_s1 + $0xb0] sm:$0xff]  ;;  %v1208_v38 = vpack.c.bf16 %v133_v33, %v130_v32  ;;  %v43_v42 = vld [vmem:[%s2762_s1 + $0xa8] sm:$0xff] }
   0xa   :  { %1141 = vmatpush1.bf16.msra.mxu1 %v1140_v21  ;;  %v137_v37 = vld [vmem:[%s2762_s1 + $0x398] sm:$0xff]  ;;  %v1146_v39 = vpack.c.bf16 %v44_v36, %v41_v35  ;;  %v140_v40 = vld [vmem:[%s2762_s1 + $0x3b0] sm:$0xff]  ;;  %v139_v45 = vld [vmem:[%s2762_s1 + $0x3a8] sm:$0xff] }
   0xb   :  { %1205 = vmatpush1.bf16.msra.mxu0 %v1204_v25  ;;  %1143 = vmatprep.subr.bf16.mxu1 %v1142_v26  ;;  %v40_v41 = vld [vmem:[%s2762_s1 + $0x90] sm:$0xff]  ;;  %v1210_v43 = vpack.c.bf16 %v140_v40, %v137_v37  ;;  %v47_v46 = vld [vmem:[%s2762_s1 + $0xc8] sm:$0xff]  ;;  %v50_v47 = vld [vmem:[%s2762_s1 + $0xe0] sm:$0xff] }
   0xc   :  { %1207 = vmatprep.subr.bf16.mxu0 %v1206_v30  ;;  %v136_v44 = vld [vmem:[%s2762_s1 + $0x390] sm:$0xff]  ;;  %v143_v48 = vld [vmem:[%s2762_s1 + $0x3c8] sm:$0xff]  ;;  %v146_v49 = vld [vmem:[%s2762_s1 + $0x3e0] sm:$0xff]  ;;  %v1148_v50 = vpack.c.bf16 %v43_v42, %v40_v41  ;;  %v1150_v52 = vpack.c.bf16 %v50_v47, %v47_v46 }
   0xd   :  { %v1212_v51 = vpack.c.bf16 %v139_v45, %v136_v44  ;;  %v46_v53 = vld [vmem:[%s2762_s1 + $0xc0] sm:$0xff]  ;;  %v49_v54 = vld [vmem:[%s2762_s1 + $0xd8] sm:$0xff]  ;;  %v1214_v56 = vpack.c.bf16 %v146_v49, %v143_v48  ;;  %v56_v59 = vld [vmem:[%s2762_s1 + $0x110] sm:$0xff] }
   0xe   :  { %1145 = vmatpush1.bf16.msra.mxu1 %v1144_v34  ;;  %v142_v55 = vld [vmem:[%s2762_s1 + $0x3c0] sm:$0xff]  ;;  %v145_v57 = vld [vmem:[%s2762_s1 + $0x3d8] sm:$0xff]  ;;  %v152_v61 = vld [vmem:[%s2762_s1 + $0x410] sm:$0xff]  ;;  %v1152_v62 = vpack.c.bf16 %v49_v54, %v46_v53 }
   0xf   :  { %1209 = vmatpush1.bf16.msra.mxu0 %v1208_v38  ;;  %1147 = vmatprep.subr.bf16.mxu1 %v1146_v39  ;;  %v53_v58 = vld [vmem:[%s2762_s1 + $0xf8] sm:$0xff]  ;;  %v1216_v63 = vpack.c.bf16 %v145_v57, %v142_v55  ;;  %v52_v1 = vld [vmem:[%s2762_s1 + $0xf0] sm:$0xff]  ;;  %v55_v2 = vld [vmem:[%s2762_s1 + $0x108] sm:$0xff] }
  0x10   :  { %1211 = vmatprep.subr.bf16.mxu0 %v1210_v43  ;;  %v149_v60 = vld [vmem:[%s2762_s1 + $0x3f8] sm:$0xff]  ;;  %v1154_v0 = vpack.c.bf16 %v56_v59, %v53_v58  ;;  %v148_v3 = vld [vmem:[%s2762_s1 + $0x3f0] sm:$0xff]  ;;  %v151_v5 = vld [vmem:[%s2762_s1 + $0x408] sm:$0xff]  ;;  %v1156_v10 = vpack.c.bf16 %v55_v2, %v52_v1 }
  0x11   :  { %v1218_v4 = vpack.c.bf16 %v152_v61, %v149_v60  ;;  %v59_v6 = vld [vmem:[%s2762_s1 + $0x128] sm:$0xff]  ;;  %v62_v7 = vld [vmem:[%s2762_s1 + $0x140] sm:$0xff]  ;;  %v1220_v11 = vpack.c.bf16 %v151_v5, %v148_v3  ;;  %v61_v14 = vld [vmem:[%s2762_s1 + $0x138] sm:$0xff] }
  0x12   :  { %1149 = vmatpush1.bf16.msra.mxu1 %v1148_v50  ;;  %v155_v8 = vld [vmem:[%s2762_s1 + $0x428] sm:$0xff]  ;;  %v158_v9 = vld [vmem:[%s2762_s1 + $0x440] sm:$0xff]  ;;  %v1158_v12 = vpack.c.bf16 %v62_v7, %v59_v6  ;;  %v157_v17 = vld [vmem:[%s2762_s1 + $0x438] sm:$0xff] }
  0x13   :  { %1213 = vmatpush1.bf16.msra.mxu0 %v1212_v51  ;;  %1151 = vmatprep.subr.bf16.mxu1 %v1150_v52  ;;  %v58_v13 = vld [vmem:[%s2762_s1 + $0x120] sm:$0xff]  ;;  %v1222_v16 = vpack.c.bf16 %v158_v9, %v155_v8  ;;  %v65_v18 = vld [vmem:[%s2762_s1 + $0x158] sm:$0xff]  ;;  %v68_v19 = vld [vmem:[%s2762_s1 + $0x170] sm:$0xff] }
  0x14   :  { %1215 = vmatprep.subr.bf16.mxu0 %v1214_v56  ;;  %v154_v15 = vld [vmem:[%s2762_s1 + $0x420] sm:$0xff]  ;;  %v161_v20 = vld [vmem:[%s2762_s1 + $0x458] sm:$0xff]  ;;  %v164_v21 = vld [vmem:[%s2762_s1 + $0x470] sm:$0xff]  ;;  %v1160_v22 = vpack.c.bf16 %v61_v14, %v58_v13  ;;  %v1162_v24 = vpack.c.bf16 %v68_v19, %v65_v18 }
  0x15   :  { %v1224_v23 = vpack.c.bf16 %v157_v17, %v154_v15  ;;  %v64_v25 = vld [vmem:[%s2762_s1 + $0x150] sm:$0xff]  ;;  %v67_v26 = vld [vmem:[%s2762_s1 + $0x168] sm:$0xff]  ;;  %v1226_v28 = vpack.c.bf16 %v164_v21, %v161_v20  ;;  %v74_v31 = vld [vmem:[%s2762_s1 + $0x1a0] sm:$0xff] }
  0x16   :  { %1153 = vmatpush1.bf16.msra.mxu1 %v1152_v62  ;;  %v160_v27 = vld [vmem:[%s2762_s1 + $0x450] sm:$0xff]  ;;  %v163_v29 = vld [vmem:[%s2762_s1 + $0x468] sm:$0xff]  ;;  %v170_v33 = vld [vmem:[%s2762_s1 + $0x4a0] sm:$0xff]  ;;  %v1164_v34 = vpack.c.bf16 %v67_v26, %v64_v25 }
  0x17   :  { %1217 = vmatpush1.bf16.msra.mxu0 %v1216_v63  ;;  %1155 = vmatprep.subr.bf16.mxu1 %v1154_v0  ;;  %v71_v30 = vld [vmem:[%s2762_s1 + $0x188] sm:$0xff]  ;;  %v1228_v35 = vpack.c.bf16 %v163_v29, %v160_v27  ;;  %v70_v37 = vld [vmem:[%s2762_s1 + $0x180] sm:$0xff]  ;;  %v73_v38 = vld [vmem:[%s2762_s1 + $0x198] sm:$0xff] }
  0x18   :  { %1219 = vmatprep.subr.bf16.mxu0 %v1218_v4  ;;  %v167_v32 = vld [vmem:[%s2762_s1 + $0x488] sm:$0xff]  ;;  %v1166_v36 = vpack.c.bf16 %v74_v31, %v71_v30  ;;  %v166_v39 = vld [vmem:[%s2762_s1 + $0x480] sm:$0xff]  ;;  %v169_v41 = vld [vmem:[%s2762_s1 + $0x498] sm:$0xff]  ;;  %v1168_v46 = vpack.c.bf16 %v73_v38, %v70_v37 }
  0x19   :  { %v1230_v40 = vpack.c.bf16 %v170_v33, %v167_v32  ;;  %v77_v42 = vld [vmem:[%s2762_s1 + $0x1b8] sm:$0xff]  ;;  %v80_v43 = vld [vmem:[%s2762_s1 + $0x1d0] sm:$0xff]  ;;  %v1232_v47 = vpack.c.bf16 %v169_v41, %v166_v39  ;;  %v79_v50 = vld [vmem:[%s2762_s1 + $0x1c8] sm:$0xff] }
  0x1a   :  { %1157 = vmatpush1.bf16.msra.mxu1 %v1156_v10  ;;  %v173_v44 = vld [vmem:[%s2762_s1 + $0x4b8] sm:$0xff]  ;;  %v176_v45 = vld [vmem:[%s2762_s1 + $0x4d0] sm:$0xff]  ;;  %v1170_v48 = vpack.c.bf16 %v80_v43, %v77_v42  ;;  %v175_v53 = vld [vmem:[%s2762_s1 + $0x4c8] sm:$0xff] }
  0x1b   :  { %1221 = vmatpush1.bf16.msra.mxu0 %v1220_v11  ;;  %1159 = vmatprep.subr.bf16.mxu1 %v1158_v12  ;;  %v76_v49 = vld [vmem:[%s2762_s1 + $0x1b0] sm:$0xff]  ;;  %v1234_v52 = vpack.c.bf16 %v176_v45, %v173_v44  ;;  %v83_v54 = vld [vmem:[%s2762_s1 + $0x1e8] sm:$0xff]  ;;  %v86_v55 = vld [vmem:[%s2762_s1 + $0x200] sm:$0xff] }
  0x1c   :  { %1223 = vmatprep.subr.bf16.mxu0 %v1222_v16  ;;  %v172_v51 = vld [vmem:[%s2762_s1 + $0x4b0] sm:$0xff]  ;;  %v179_v56 = vld [vmem:[%s2762_s1 + $0x4e8] sm:$0xff]  ;;  %v182_v57 = vld [vmem:[%s2762_s1 + $0x500] sm:$0xff]  ;;  %v1172_v58 = vpack.c.bf16 %v79_v50, %v76_v49  ;;  %v1174_v60 = vpack.c.bf16 %v86_v55, %v83_v54 }
  0x1d   :  { %v1236_v59 = vpack.c.bf16 %v175_v53, %v172_v51  ;;  %v82_v61 = vld [vmem:[%s2762_s1 + $0x1e0] sm:$0xff]  ;;  %v85_v62 = vld [vmem:[%s2762_s1 + $0x1f8] sm:$0xff]  ;;  %v1238_v0 = vpack.c.bf16 %v182_v57, %v179_v56  ;;  %v92_v3 = vld [vmem:[%s2762_s1 + $0x230] sm:$0xff] }
  0x1e   :  { %1161 = vmatpush1.bf16.msra.mxu1 %v1160_v22  ;;  %v178_v63 = vld [vmem:[%s2762_s1 + $0x4e0] sm:$0xff]  ;;  %v181_v1 = vld [vmem:[%s2762_s1 + $0x4f8] sm:$0xff]  ;;  %v188_v5 = vld [vmem:[%s2762_s1 + $0x530] sm:$0xff]  ;;  %v1176_v6 = vpack.c.bf16 %v85_v62, %v82_v61 }
  0x1f   :  { %1225 = vmatpush1.bf16.msra.mxu0 %v1224_v23  ;;  %1163 = vmatprep.subr.bf16.mxu1 %v1162_v24  ;;  %v89_v2 = vld [vmem:[%s2762_s1 + $0x218] sm:$0xff]  ;;  %v88_v7 = vld [vmem:[%s2762_s1 + $0x210] sm:$0xff]  ;;  %v1240_v8 = vpack.c.bf16 %v181_v1, %v178_v63  ;;  %v91_v10 = vld [vmem:[%s2762_s1 + $0x228] sm:$0xff] }
  0x20   :  { %1227 = vmatprep.subr.bf16.mxu0 %v1226_v28  ;;  %v185_v4 = vld [vmem:[%s2762_s1 + $0x518] sm:$0xff]  ;;  %v1178_v9 = vpack.c.bf16 %v92_v3, %v89_v2  ;;  %v184_v11 = vld [vmem:[%s2762_s1 + $0x510] sm:$0xff]  ;;  %v187_v12 = vld [vmem:[%s2762_s1 + $0x528] sm:$0xff]  ;;  %v1180_v20 = vpack.c.bf16 %v91_v10, %v88_v7 }
  0x21   :  { %v1242_v13 = vpack.c.bf16 %v188_v5, %v185_v4  ;;  %v95_v14 = vld [vmem:[%s2762_s1 + $0x248] sm:$0xff]  ;;  %v98_v15 = vld [vmem:[%s2762_s1 + $0x260] sm:$0xff]  ;;  %v1855_v19 = vld [vmem:[%s2763_s0 + $0x18] sm:$0xff]  ;;  %v1244_v21 = vpack.c.bf16 %v187_v12, %v184_v11 }
  0x22   :  { %1165 = vmatpush1.bf16.msra.mxu1 %v1164_v34  ;;  %v1843_v16 = vld [vmem:[%s2763_s0 + $0x8] sm:$0xff]  ;;  %v194_v18 = vld [vmem:[%s2762_s1 + $0x560] sm:$0xff]  ;;  %558 = vmatprep.mubr.f32.mxu0 %v1855_v19  ;;  %v1182_v22 = vpack.c.bf16 %v98_v15, %v95_v14  ;;  %v97_v24 = vld [vmem:[%s2762_s1 + $0x258] sm:$0xff] }
  0x23   :  { %1229 = vmatpush1.bf16.msra.mxu0 %v1228_v35  ;;  %1167 = vmatprep.subr.bf16.mxu1 %v1166_v36  ;;  %v191_v17 = vld [vmem:[%s2762_s1 + $0x548] sm:$0xff]  ;;  %v94_v23 = vld [vmem:[%s2762_s1 + $0x240] sm:$0xff]  ;;  %v193_v27 = vld [vmem:[%s2762_s1 + $0x558] sm:$0xff] }
  0x24   :  { %1231 = vmatprep.subr.bf16.mxu0 %v1230_v40  ;;  %487 = vmatprep.mubr.f32.mxu1 %v1843_v16  ;;  %v190_v25 = vld [vmem:[%s2762_s1 + $0x540] sm:$0xff]  ;;  %v1246_v26 = vpack.c.bf16 %v194_v18, %v191_v17  ;;  %v101_v28 = vld [vmem:[%s2762_s1 + $0x278] sm:$0xff]  ;;  %v104_v29 = vld [vmem:[%s2762_s1 + $0x290] sm:$0xff]  ;;  %v1184_v32 = vpack.c.bf16 %v97_v24, %v94_v23 }
  0x25   :  { %v197_v30 = vld [vmem:[%s2762_s1 + $0x578] sm:$0xff]  ;;  %v200_v31 = vld [vmem:[%s2762_s1 + $0x590] sm:$0xff]  ;;  %v1248_v33 = vpack.c.bf16 %v193_v27, %v190_v25  ;;  %v1186_v34 = vpack.c.bf16 %v104_v29, %v101_v28  ;;  %v103_v36 = vld [vmem:[%s2762_s1 + $0x288] sm:$0xff] }
  0x26   :  { %1169 = vmatpush1.bf16.msra.mxu1 %v1168_v46  ;;  %v100_v35 = vld [vmem:[%s2762_s1 + $0x270] sm:$0xff]  ;;  %v1250_v38 = vpack.c.bf16 %v200_v31, %v197_v30  ;;  %v199_v39 = vld [vmem:[%s2762_s1 + $0x588] sm:$0xff]  ;;  %v110_v41 = vld [vmem:[%s2762_s1 + $0x2c0] sm:$0xff] }
  0x27   :  { %1233 = vmatpush1.bf16.msra.mxu0 %v1232_v47  ;;  %1171 = vmatprep.subr.bf16.mxu1 %v1170_v48  ;;  %v196_v37 = vld [vmem:[%s2762_s1 + $0x570] sm:$0xff]  ;;  %v107_v40 = vld [vmem:[%s2762_s1 + $0x2a8] sm:$0xff]  ;;  %v206_v43 = vld [vmem:[%s2762_s1 + $0x5c0] sm:$0xff]  ;;  %v1188_v44 = vpack.c.bf16 %v103_v36, %v100_v35 }
  0x28   :  { %1235 = vmatprep.subr.bf16.mxu0 %v1234_v52  ;;  %v203_v42 = vld [vmem:[%s2762_s1 + $0x5a8] sm:$0xff]  ;;  %v1252_v45 = vpack.c.bf16 %v199_v39, %v196_v37  ;;  %v1190_v46 = vpack.c.bf16 %v110_v41, %v107_v40  ;;  %v106_v47 = vld [vmem:[%s2762_s1 + $0x2a0] sm:$0xff]  ;;  %v109_v48 = vld [vmem:[%s2762_s1 + $0x2b8] sm:$0xff] }
  0x29   :  { %v202_v49 = vld [vmem:[%s2762_s1 + $0x5a0] sm:$0xff]  ;;  %v1254_v50 = vpack.c.bf16 %v206_v43, %v203_v42  ;;  %v205_v51 = vld [vmem:[%s2762_s1 + $0x5b8] sm:$0xff]  ;;  %v116_v53 = vld [vmem:[%s2762_s1 + $0x2f0] sm:$0xff]  ;;  %v1192_v56 = vpack.c.bf16 %v109_v48, %v106_v47 }
  0x2a   :  { %1173 = vmatpush1.bf16.msra.mxu1 %v1172_v58  ;;  %v113_v52 = vld [vmem:[%s2762_s1 + $0x2d8] sm:$0xff]  ;;  %v212_v55 = vld [vmem:[%s2762_s1 + $0x5f0] sm:$0xff]  ;;  %v1256_v57 = vpack.c.bf16 %v205_v51, %v202_v49  ;;  %v211_v63 = vld [vmem:[%s2762_s1 + $0x5e8] sm:$0xff] }
  0x2b   :  { %1237 = vmatpush1.bf16.msra.mxu0 %v1236_v59  ;;  %1175 = vmatprep.subr.bf16.mxu1 %v1174_v60  ;;  %v209_v54 = vld [vmem:[%s2762_s1 + $0x5d8] sm:$0xff]  ;;  %v1194_v58 = vpack.c.bf16 %v116_v53, %v113_v52  ;;  %v112_v59 = vld [vmem:[%s2762_s1 + $0x2d0] sm:$0xff]  ;;  %v115_v60 = vld [vmem:[%s2762_s1 + $0x2e8] sm:$0xff] }
  0x2c   :  { %1239 = vmatprep.subr.bf16.mxu0 %v1238_v0  ;;  %v208_v61 = vld [vmem:[%s2762_s1 + $0x5d0] sm:$0xff]  ;;  %v1258_v62 = vpack.c.bf16 %v212_v55, %v209_v54  ;;  %v75_v1 = vld [vmem:[%s2762_s1 + $0x1a8] sm:$0xff]  ;;  %v218_v3 = vld [vmem:[%s2762_s1 + $0x620] sm:$0xff]  ;;  %v1196_v4 = vpack.c.bf16 %v115_v60, %v112_v59 }
  0x2d   :  { %v72_v0 = vld [vmem:[%s2762_s1 + $0x190] sm:$0xff]  ;;  %v215_v2 = vld [vmem:[%s2762_s1 + $0x608] sm:$0xff]  ;;  %v1260_v5 = vpack.c.bf16 %v211_v63, %v208_v61  ;;  %v214_v7 = vld [vmem:[%s2762_s1 + $0x600] sm:$0xff] }
  0x2e   :  { %1177 = vmatpush1.bf16.msra.mxu1 %v1176_v6  ;;  %v1390_v6 = vpack.c.bf16 %v75_v1, %v72_v0  ;;  %v1262_v10 = vpack.c.bf16 %v218_v3, %v215_v2  ;;  %v217_v11 = vld [vmem:[%s2762_s1 + $0x618] sm:$0xff]  ;;  %v78_v12 = vld [vmem:[%s2762_s1 + $0x1c0] sm:$0xff]  ;;  %v224_v15 = vld [vmem:[%s2762_s1 + $0x650] sm:$0xff] }
  0x2f   :  { %1241 = vmatpush1.bf16.msra.mxu0 %v1240_v8  ;;  %1179 = vmatprep.subr.bf16.mxu1 %v1178_v9  ;;  %v24_v8 = vld [vmem:[%s2762_s1 + $0x10] sm:$0xff]  ;;  %v27_v9 = vld [vmem:[%s2762_s1 + $0x28] sm:$0xff]  ;;  %v221_v14 = vld [vmem:[%s2762_s1 + $0x638] sm:$0xff] }
  0x30   :  { %1243 = vmatprep.subr.bf16.mxu0 %v1242_v13  ;;  %v81_v13 = vld [vmem:[%s2762_s1 + $0x1d8] sm:$0xff]  ;;  %v1981_v17 = vld [vmem:[%s2763_s0] sm:$0xff]  ;;  %v1986_v18 = vld [vmem:[%s2763_s0 + $0x10] sm:$0xff] }
  0x31   :  { %v220_v23 = vld [vmem:[%s2762_s1 + $0x630] sm:$0xff]  ;;  %v30_v24 = vld [vmem:[%s2762_s1 + $0x40] sm:$0xff]  ;;  %v33_v25 = vld [vmem:[%s2762_s1 + $0x58] sm:$0xff] }
  0x32   :  { %1181 = vmatpush1.bf16.msra.mxu1 %v1180_v20  ;;  %v1392_v20 = vpack.c.bf16 %v27_v9, %v24_v8  ;;  %v223_v27 = vld [vmem:[%s2762_s1 + $0x648] sm:$0xff]  ;;  %v84_v28 = vld [vmem:[%s2762_s1 + $0x1f0] sm:$0xff]  ;;  %v230_v31 = vld [vmem:[%s2762_s1 + $0x680] sm:$0xff] }
  0x33   :  { %1245 = vmatpush1.bf16.msra.mxu0 %v1244_v21  ;;  %1183 = vmatprep.subr.bf16.mxu1 %v1182_v22  ;;  %v1264_v21 = vpack.c.bf16 %v217_v11, %v214_v7  ;;  %v1394_v22 = vpack.c.bf16 %v81_v13, %v78_v12  ;;  %v87_v29 = vld [vmem:[%s2762_s1 + $0x208] sm:$0xff]  ;;  %v226_v35 = vld [vmem:[%s2762_s1 + $0x660] sm:$0xff]  ;;  %v36_v36 = vld [vmem:[%s2762_s1 + $0x70] sm:$0xff] }
  0x34   :  { %1247 = vmatprep.subr.bf16.mxu0 %v1246_v26  ;;  %v1266_v26 = vpack.c.bf16 %v224_v15, %v221_v14  ;;  %v227_v30 = vld [vmem:[%s2762_s1 + $0x668] sm:$0xff]  ;;  %v229_v39 = vld [vmem:[%s2762_s1 + $0x678] sm:$0xff]  ;;  %v90_v40 = vld [vmem:[%s2762_s1 + $0x220] sm:$0xff] }
  0x35   :  { %v39_v37 = vld [vmem:[%s2762_s1 + $0x88] sm:$0xff]  ;;  %v93_v41 = vld [vmem:[%s2762_s1 + $0x238] sm:$0xff]  ;;  %v236_v43 = vld [vmem:[%s2762_s1 + $0x6b0] sm:$0xff] }
  0x36   :  { %1185 = vmatpush1.bf16.msra.mxu1 %v1184_v32  ;;  %v1396_v32 = vpack.c.bf16 %v33_v25, %v30_v24  ;;  %v233_v42 = vld [vmem:[%s2762_s1 + $0x698] sm:$0xff]  ;;  %v232_v47 = vld [vmem:[%s2762_s1 + $0x690] sm:$0xff]  ;;  %v99_v52 = vld [vmem:[%s2762_s1 + $0x268] sm:$0xff] }
  0x37   :  { %1249 = vmatpush1.bf16.msra.mxu0 %v1248_v33  ;;  %1187 = vmatprep.subr.bf16.mxu1 %v1186_v34  ;;  %v1268_v33 = vpack.c.bf16 %v223_v27, %v220_v23  ;;  %v1398_v34 = vpack.c.bf16 %v87_v29, %v84_v28  ;;  %v45_v48 = vld [vmem:[%s2762_s1 + $0xb8] sm:$0xff]  ;;  %v1274_v49 = vpack.c.bf16 %v236_v43, %v233_v42  ;;  %v96_v51 = vld [vmem:[%s2762_s1 + $0x250] sm:$0xff]  ;;  %v239_v53 = vld [vmem:[%s2762_s1 + $0x6c8] sm:$0xff] }
  0x38   :  { %1251 = vmatprep.subr.bf16.mxu0 %v1250_v38  ;;  %v1270_v38 = vpack.c.bf16 %v230_v31, %v227_v30  ;;  %v242_v54 = vld [vmem:[%s2762_s1 + $0x6e0] sm:$0xff]  ;;  %v48_v59 = vld [vmem:[%s2762_s1 + $0xd0] sm:$0xff]  ;;  %v51_v60 = vld [vmem:[%s2762_s1 + $0xe8] sm:$0xff] }
  0x39   :  { %v1278_v61 = vpack.c.bf16 %v242_v54, %v239_v53  ;;  %v102_v63 = vld [vmem:[%s2762_s1 + $0x280] sm:$0xff]  ;;  %v105_v0 = vld [vmem:[%s2762_s1 + $0x298] sm:$0xff]  ;;  %v248_v2 = vld [vmem:[%s2762_s1 + $0x710] sm:$0xff]  ;;  %v1408_v3 = vpack.c.bf16 %v51_v60, %v48_v59 }
  0x3a   :  { %1189 = vmatpush1.bf16.msra.mxu1 %v1188_v44  ;;  %v1400_v44 = vpack.c.bf16 %v39_v37, %v36_v36  ;;  %v245_v1 = vld [vmem:[%s2762_s1 + $0x6f8] sm:$0xff]  ;;  %v54_v7 = vld [vmem:[%s2762_s1 + $0x100] sm:$0xff]  ;;  %v108_v11 = vld [vmem:[%s2762_s1 + $0x2b0] sm:$0xff] }
  0x3b   :  { %1253 = vmatpush1.bf16.msra.mxu0 %v1252_v45  ;;  %1191 = vmatprep.subr.bf16.mxu1 %v1190_v46  ;;  %v1272_v45 = vpack.c.bf16 %v229_v39, %v226_v35  ;;  %v1402_v46 = vpack.c.bf16 %v93_v41, %v90_v40  ;;  %v57_v8 = vld [vmem:[%s2762_s1 + $0x118] sm:$0xff]  ;;  %v1282_v9 = vpack.c.bf16 %v248_v2, %v245_v1  ;;  %v111_v12 = vld [vmem:[%s2762_s1 + $0x2c8] sm:$0xff]  ;;  %v254_v14 = vld [vmem:[%s2762_s1 + $0x740] sm:$0xff] }
  0x3c   :  { %1255 = vmatprep.subr.bf16.mxu0 %v1254_v50  ;;  %v235_v50 = vld [vmem:[%s2762_s1 + $0x6a8] sm:$0xff]  ;;  %v1412_v15 = vpack.c.bf16 %v57_v8, %v54_v7  ;;  %v253_v23 = vld [vmem:[%s2762_s1 + $0x738] sm:$0xff]  ;;  %v60_v24 = vld [vmem:[%s2762_s1 + $0x130] sm:$0xff] }
  0x3d   :  { %v251_v13 = vld [vmem:[%s2762_s1 + $0x728] sm:$0xff]  ;;  %v114_v27 = vld [vmem:[%s2762_s1 + $0x2e0] sm:$0xff]  ;;  %v117_v28 = vld [vmem:[%s2762_s1 + $0x2f8] sm:$0xff] }
  0x3e   :  { %1193 = vmatpush1.bf16.msra.mxu1 %v1192_v56  ;;  %v1276_v56 = vpack.c.bf16 %v235_v50, %v232_v47  ;;  %v63_v25 = vld [vmem:[%s2762_s1 + $0x148] sm:$0xff]  ;;  %v257_v30 = vld [vmem:[%s2762_s1 + $0x758] sm:$0xff]  ;;  %v260_v31 = vld [vmem:[%s2762_s1 + $0x770] sm:$0xff] }
  0x3f   :  { %1257 = vmatpush1.bf16.msra.mxu0 %v1256_v57  ;;  %1195 = vmatprep.subr.bf16.mxu1 %v1194_v58  ;;  %v1406_v57 = vpack.c.bf16 %v99_v52, %v96_v51  ;;  %v238_v58 = vld [vmem:[%s2762_s1 + $0x6c0] sm:$0xff]  ;;  %v2132_v29 = vld [vmem:[%s2763_s0 + $0x28] sm:$0xff]  ;;  %v256_v35 = vld [vmem:[%s2762_s1 + $0x750] sm:$0xff] }
  0x40   :  { %1259 = vmatprep.subr.bf16.mxu0 %v1258_v62  ;;  %v241_v62 = vld [vmem:[%s2762_s1 + $0x6d8] sm:$0xff]  ;;  %v66_v36 = vld [vmem:[%s2762_s1 + $0x160] sm:$0xff]  ;;  %v259_v39 = vld [vmem:[%s2762_s1 + $0x768] sm:$0xff] }
  0x41   :  { %v69_v37 = vld [vmem:[%s2762_s1 + $0x178] sm:$0xff]  ;;  %v168_v40 = vld [vmem:[%s2762_s1 + $0x490] sm:$0xff]  ;;  %v171_v41 = vld [vmem:[%s2762_s1 + $0x4a8] sm:$0xff] }
  0x42   :  { %1197 = vmatpush1.bf16.msra.mxu1 %v1196_v4  ;;  %v1280_v4 = vpack.c.bf16 %v241_v62, %v238_v58  ;;  %v263_v42 = vld [vmem:[%s2762_s1 + $0x788] sm:$0xff]  ;;  %v266_v43 = vld [vmem:[%s2762_s1 + $0x7a0] sm:$0xff]  ;;  %v265_v50 = vld [vmem:[%s2762_s1 + $0x798] sm:$0xff] }
  0x43   :  { %1261 = vmatpush1.bf16.msra.mxu0 %v1260_v5  ;;  %1391 = vmatprep.subr.bf16.mxu1 %v1390_v6  ;;  %v1410_v5 = vpack.c.bf16 %v105_v0, %v102_v63  ;;  %v244_v6 = vld [vmem:[%s2762_s1 + $0x6f0] sm:$0xff]  ;;  %v262_v47 = vld [vmem:[%s2762_s1 + $0x780] sm:$0xff]  ;;  %v177_v52 = vld [vmem:[%s2762_s1 + $0x4d8] sm:$0xff] }
  0x44   :  { %1263 = vmatprep.subr.bf16.mxu0 %v1262_v10  ;;  %v247_v10 = vld [vmem:[%s2762_s1 + $0x708] sm:$0xff]  ;;  %v174_v51 = vld [vmem:[%s2762_s1 + $0x4c0] sm:$0xff]  ;;  %v269_v53 = vld [vmem:[%s2762_s1 + $0x7b8] sm:$0xff] }
  0x45   :  { %488 = vmatmul.mubr.f32.vlgmr.msra.gmra.mrb[0].mxu1 %v1981_v17  ;;  %v272_v54 = vld [vmem:[%s2762_s1 + $0x7d0] sm:$0xff]  ;;  %v126_v59 = vld [vmem:[%s2762_s1 + $0x340] sm:$0xff]  ;;  %v129_v60 = vld [vmem:[%s2762_s1 + $0x358] sm:$0xff] }
  0x46   :  { %559 = vmatmul.mubr.f32.vlgmr.msra.gmra.mrb[0].mxu0 %v1986_v18  ;;  %1393 = vmatpush3.bf16.msra.mxu1 %v1392_v20  ;;  %v250_v20 = vld [vmem:[%s2762_s1 + $0x720] sm:$0xff]  ;;  %v268_v58 = vld [vmem:[%s2762_s1 + $0x7b0] sm:$0xff]  ;;  %v271_v62 = vld [vmem:[%s2762_s1 + $0x7c8] sm:$0xff] }
  0x47   :  { %1265 = vmatpush1.bf16.msra.mxu0 %v1264_v21  ;;  %1395 = vmatprep.subr.bf16.mxu1 %v1394_v22  ;;  %v1284_v21 = vpack.c.bf16 %v247_v10, %v244_v6  ;;  %v1414_v22 = vpack.c.bf16 %v111_v12, %v108_v11  ;;  %v180_v63 = vld [vmem:[%s2762_s1 + $0x4f0] sm:$0xff]  ;;  %v183_v0 = vld [vmem:[%s2762_s1 + $0x508] sm:$0xff]  ;;  %v278_v2 = vld [vmem:[%s2762_s1 + $0x800] sm:$0xff] }
  0x48   :  { %1267 = vmatprep.subr.bf16.mxu0 %v1266_v26  ;;  %771 = vmatprep.mubr.f32.mxu1 %v1843_v16  ;;  %v42_v16 = vld [vmem:[%s2762_s1 + $0xa0] sm:$0xff]  ;;  %v1286_v26 = vpack.c.bf16 %v254_v14, %v251_v13  ;;  %v275_v1 = vld [vmem:[%s2762_s1 + $0x7e8] sm:$0xff]  ;;  %v132_v6 = vld [vmem:[%s2762_s1 + $0x370] sm:$0xff] }
  0x49   :  { %v1404_v55 = vpack.c.bf16 %v45_v48, %v42_v16  ;;  %629 = vmatprep.mubr.f32.mxu0 %v2132_v29  ;;  %v120_v16 = vld [vmem:[%s2762_s1 + $0x310] sm:$0xff]  ;;  %v123_v48 = vld [vmem:[%s2762_s1 + $0x328] sm:$0xff]  ;;  %v1302_v8 = vpack.c.bf16 %v278_v2, %v275_v1  ;;  %v189_v10 = vld [vmem:[%s2762_s1 + $0x538] sm:$0xff] }
  0x4a   :  { %1397 = vmatpush3.bf16.msra.mxu1 %v1396_v32  ;;  %v1416_v32 = vpack.c.bf16 %v63_v25, %v60_v24  ;;  %v135_v7 = vld [vmem:[%s2762_s1 + $0x388] sm:$0xff]  ;;  %v281_v11 = vld [vmem:[%s2762_s1 + $0x818] sm:$0xff]  ;;  %v284_v12 = vld [vmem:[%s2762_s1 + $0x830] sm:$0xff] }
  0x4b   :  { %1269 = vmatpush1.bf16.msra.mxu0 %v1268_v33  ;;  %1399 = vmatprep.subr.bf16.mxu1 %v1398_v34  ;;  %v1288_v33 = vpack.c.bf16 %v253_v23, %v250_v20  ;;  %v1418_v34 = vpack.c.bf16 %v117_v28, %v114_v27  ;;  %v1432_v13 = vpack.c.bf16 %v135_v7, %v132_v6  ;;  %v280_v20 = vld [vmem:[%s2762_s1 + $0x810] sm:$0xff]  ;;  %v283_v24 = vld [vmem:[%s2762_s1 + $0x828] sm:$0xff]  ;;  %v290_v28 = vld [vmem:[%s2762_s1 + $0x860] sm:$0xff] }
  0x4c   :  { %1271 = vmatprep.subr.bf16.mxu0 %v1270_v38  ;;  %v1290_v38 = vpack.c.bf16 %v260_v31, %v257_v30  ;;  %v1306_v23 = vpack.c.bf16 %v284_v12, %v281_v11  ;;  %v192_v25 = vld [vmem:[%s2762_s1 + $0x550] sm:$0xff]  ;;  %v287_v27 = vld [vmem:[%s2762_s1 + $0x848] sm:$0xff]  ;;  %v1308_v31 = vpack.c.bf16 %v283_v24, %v280_v20  ;;  %v273_v24 = vld [vmem:[%s2762_s1 + $0x7d8] sm:$0xff] }
  0x4d   :  { %v307_v7 = vld [vmem:[%s2762_s1 + $0x8e8] sm:$0xff] }
  0x4e   :  { %1401 = vmatpush3.bf16.msra.mxu1 %v1400_v44  ;;  %v1420_v44 = vpack.c.bf16 %v69_v37, %v66_v36  ;;  %v1310_v36 = vpack.c.bf16 %v290_v28, %v287_v27  ;;  %v289_v37 = vld [vmem:[%s2762_s1 + $0x858] sm:$0xff]  ;;  %v219_v20 = vld [vmem:[%s2762_s1 + $0x628] sm:$0xff]  ;;  %v2386_v27 = vld [vmem:[%s2763_s0 + $0x20] sm:$0xff] }
  0x4f   :  { %1273 = vmatpush1.bf16.msra.mxu0 %v1272_v45  ;;  %1403 = vmatprep.subr.bf16.mxu1 %v1402_v46  ;;  %v1292_v45 = vpack.c.bf16 %v259_v39, %v256_v35  ;;  %v1422_v46 = vpack.c.bf16 %v171_v41, %v168_v40  ;;  %v147_v35 = vld [vmem:[%s2762_s1 + $0x3e8] sm:$0xff]  ;;  %v201_v39 = vld [vmem:[%s2762_s1 + $0x598] sm:$0xff]  ;;  %v296_v41 = vld [vmem:[%s2762_s1 + $0x890] sm:$0xff] }
  0x50   :  { %1275 = vmatprep.subr.bf16.mxu0 %v1274_v49  ;;  %v1294_v49 = vpack.c.bf16 %v266_v43, %v263_v42  ;;  %v293_v40 = vld [vmem:[%s2762_s1 + $0x878] sm:$0xff] }
  0x52   :  { %1405 = vmatpush3.bf16.msra.mxu1 %v1404_v55  ;;  %v1424_v55 = vpack.c.bf16 %v123_v48, %v120_v16  ;;  %v1314_v16 = vpack.c.bf16 %v296_v41, %v293_v40  ;;  %v295_v48 = vld [vmem:[%s2762_s1 + $0x888] sm:$0xff]  ;;  %v326_v40 = vld [vmem:[%s2762_s1 + $0x980] sm:$0xff] }
  0x53   :  { %1277 = vmatpush1.bf16.msra.mxu0 %v1276_v56  ;;  %1407 = vmatprep.subr.bf16.mxu1 %v1406_v57  ;;  %v1296_v56 = vpack.c.bf16 %v265_v50, %v262_v47  ;;  %v1426_v57 = vpack.c.bf16 %v177_v52, %v174_v51  ;;  %v153_v47 = vld [vmem:[%s2762_s1 + $0x418] sm:$0xff]  ;;  %v207_v50 = vld [vmem:[%s2762_s1 + $0x5c8] sm:$0xff]  ;;  %v302_v52 = vld [vmem:[%s2762_s1 + $0x8c0] sm:$0xff] }
  0x54   :  { %1279 = vmatprep.subr.bf16.mxu0 %v1278_v61  ;;  %v1298_v61 = vpack.c.bf16 %v272_v54, %v269_v53  ;;  %v299_v51 = vld [vmem:[%s2762_s1 + $0x8a8] sm:$0xff] }
  0x56   :  { %1409 = vmatpush3.bf16.msra.mxu1 %v1408_v3  ;;  %v1428_v3 = vpack.c.bf16 %v129_v60, %v126_v59  ;;  %v1318_v59 = vpack.c.bf16 %v302_v52, %v299_v51  ;;  %v301_v60 = vld [vmem:[%s2762_s1 + $0x8b8] sm:$0xff]  ;;  %v332_v51 = vld [vmem:[%s2762_s1 + $0x9b0] sm:$0xff] }
  0x57   :  { %1281 = vmatpush1.bf16.msra.mxu0 %v1280_v4  ;;  %1411 = vmatprep.subr.bf16.mxu1 %v1410_v5  ;;  %v1300_v4 = vpack.c.bf16 %v271_v62, %v268_v58  ;;  %v1430_v5 = vpack.c.bf16 %v183_v0, %v180_v63  ;;  %v159_v58 = vld [vmem:[%s2762_s1 + $0x448] sm:$0xff]  ;;  %v213_v62 = vld [vmem:[%s2762_s1 + $0x5f8] sm:$0xff]  ;;  %v308_v0 = vld [vmem:[%s2762_s1 + $0x8f0] sm:$0xff] }
  0x58   :  { %1283 = vmatprep.subr.bf16.mxu0 %v1282_v9  ;;  %v186_v9 = vld [vmem:[%s2762_s1 + $0x520] sm:$0xff]  ;;  %v305_v63 = vld [vmem:[%s2762_s1 + $0x8d8] sm:$0xff] }
  0x59   :  { %v1322_v6 = vpack.c.bf16 %v308_v0, %v305_v63 }
  0x5a   :  { %1413 = vmatpush3.bf16.msra.mxu1 %v1412_v15  ;;  %v1434_v15 = vpack.c.bf16 %v189_v10, %v186_v9  ;;  %v311_v9 = vld [vmem:[%s2762_s1 + $0x908] sm:$0xff]  ;;  %v314_v10 = vld [vmem:[%s2762_s1 + $0x920] sm:$0xff] }
  0x5b   :  { %1285 = vmatpush1.bf16.msra.mxu0 %v1284_v21  ;;  %1415 = vmatprep.subr.bf16.mxu1 %v1414_v22  ;;  %v138_v21 = vld [vmem:[%s2762_s1 + $0x3a0] sm:$0xff]  ;;  %v141_v22 = vld [vmem:[%s2762_s1 + $0x3b8] sm:$0xff] }
  0x5c   :  { %1287 = vmatprep.subr.bf16.mxu0 %v1286_v26  ;;  %v195_v26 = vld [vmem:[%s2762_s1 + $0x568] sm:$0xff]  ;;  %v1436_v30 = vpack.c.bf16 %v141_v22, %v138_v21  ;;  %v1326_v21 = vpack.c.bf16 %v314_v10, %v311_v9  ;;  %v313_v22 = vld [vmem:[%s2762_s1 + $0x918] sm:$0xff] }
  0x5e   :  { %1417 = vmatpush3.bf16.msra.mxu1 %v1416_v32  ;;  %v1438_v32 = vpack.c.bf16 %v195_v26, %v192_v25  ;;  %v317_v25 = vld [vmem:[%s2762_s1 + $0x938] sm:$0xff]  ;;  %v320_v26 = vld [vmem:[%s2762_s1 + $0x950] sm:$0xff] }
  0x5f   :  { %1289 = vmatpush1.bf16.msra.mxu0 %v1288_v33  ;;  %1419 = vmatprep.subr.bf16.mxu1 %v1418_v34  ;;  %v286_v33 = vld [vmem:[%s2762_s1 + $0x840] sm:$0xff]  ;;  %v144_v34 = vld [vmem:[%s2762_s1 + $0x3d0] sm:$0xff] }
  0x60   :  { %1291 = vmatprep.subr.bf16.mxu0 %v1290_v38  ;;  %v198_v38 = vld [vmem:[%s2762_s1 + $0x580] sm:$0xff]  ;;  %v1440_v42 = vpack.c.bf16 %v147_v35, %v144_v34  ;;  %v1312_v43 = vpack.c.bf16 %v289_v37, %v286_v33  ;;  %v225_v34 = vld [vmem:[%s2762_s1 + $0x658] sm:$0xff]  ;;  %v1330_v35 = vpack.c.bf16 %v320_v26, %v317_v25  ;;  %v276_v37 = vld [vmem:[%s2762_s1 + $0x7f0] sm:$0xff] }
  0x61   :  { %v222_v33 = vld [vmem:[%s2762_s1 + $0x640] sm:$0xff] }
  0x62   :  { %1421 = vmatpush3.bf16.msra.mxu1 %v1420_v44  ;;  %v1442_v44 = vpack.c.bf16 %v201_v39, %v198_v38  ;;  %v279_v38 = vld [vmem:[%s2762_s1 + $0x808] sm:$0xff]  ;;  %v1460_v41 = vpack.c.bf16 %v225_v34, %v222_v33  ;;  %v349_v34 = vld [vmem:[%s2762_s1 + $0xa38] sm:$0xff] }
  0x63   :  { %1293 = vmatpush1.bf16.msra.mxu0 %v1292_v45  ;;  %1423 = vmatprep.subr.bf16.mxu1 %v1422_v46  ;;  %v292_v45 = vld [vmem:[%s2762_s1 + $0x870] sm:$0xff]  ;;  %v150_v46 = vld [vmem:[%s2762_s1 + $0x400] sm:$0xff]  ;;  %v323_v39 = vld [vmem:[%s2762_s1 + $0x968] sm:$0xff] }
  0x64   :  { %1295 = vmatprep.subr.bf16.mxu0 %v1294_v49  ;;  %v204_v49 = vld [vmem:[%s2762_s1 + $0x5b0] sm:$0xff]  ;;  %v1444_v53 = vpack.c.bf16 %v153_v47, %v150_v46  ;;  %v1316_v54 = vpack.c.bf16 %v295_v48, %v292_v45  ;;  %v231_v46 = vld [vmem:[%s2762_s1 + $0x688] sm:$0xff]  ;;  %v1334_v47 = vpack.c.bf16 %v326_v40, %v323_v39  ;;  %v282_v48 = vld [vmem:[%s2762_s1 + $0x820] sm:$0xff] }
  0x65   :  { %772 = vmatmul.mubr.f32.vlgmr.msra.gmra.mrb[2].mxu1 %v1981_v17  ;;  %v274_v17 = vld [vmem:[%s2762_s1 + $0x7e0] sm:$0xff]  ;;  %v228_v45 = vld [vmem:[%s2762_s1 + $0x670] sm:$0xff] }
  0x66   :  { %1425 = vmatpush3.bf16.msra.mxu1 %v1424_v55  ;;  %841 = vmatprep.mubr.f32.mxu1 %v1855_v19  ;;  %v277_v19 = vld [vmem:[%s2762_s1 + $0x7f8] sm:$0xff]  ;;  %v1446_v55 = vpack.c.bf16 %v207_v50, %v204_v49  ;;  %v1464_v52 = vpack.c.bf16 %v231_v46, %v228_v45  ;;  %v355_v46 = vld [vmem:[%s2762_s1 + $0xa68] sm:$0xff] }
  0x67   :  { %1297 = vmatpush1.bf16.msra.mxu0 %v1296_v56  ;;  %1427 = vmatprep.subr.bf16.mxu1 %v1426_v57  ;;  %v1304_v14 = vpack.c.bf16 %v277_v19, %v274_v17  ;;  %v298_v56 = vld [vmem:[%s2762_s1 + $0x8a0] sm:$0xff]  ;;  %v156_v57 = vld [vmem:[%s2762_s1 + $0x430] sm:$0xff]  ;;  %v165_v17 = vld [vmem:[%s2762_s1 + $0x478] sm:$0xff] }
  0x68   :  { %1299 = vmatprep.subr.bf16.mxu0 %v1298_v61  ;;  %v210_v61 = vld [vmem:[%s2762_s1 + $0x5e0] sm:$0xff]  ;;  %v1448_v1 = vpack.c.bf16 %v159_v58, %v156_v57  ;;  %v1320_v2 = vpack.c.bf16 %v301_v60, %v298_v56  ;;  %v267_v19 = vld [vmem:[%s2762_s1 + $0x7a8] sm:$0xff]  ;;  %v285_v49 = vld [vmem:[%s2762_s1 + $0x838] sm:$0xff] }
  0x69   :  { %v329_v50 = vld [vmem:[%s2762_s1 + $0x998] sm:$0xff]  ;;  %v331_v58 = vld [vmem:[%s2762_s1 + $0x9a8] sm:$0xff] }
  0x6a   :  { %1429 = vmatpush3.bf16.msra.mxu1 %v1428_v3  ;;  %v1450_v3 = vpack.c.bf16 %v213_v62, %v210_v61  ;;  %v237_v56 = vld [vmem:[%s2762_s1 + $0x6b8] sm:$0xff]  ;;  %v1338_v57 = vpack.c.bf16 %v332_v51, %v329_v50  ;;  %v291_v60 = vld [vmem:[%s2762_s1 + $0x868] sm:$0xff]  ;;  %v338_v62 = vld [vmem:[%s2762_s1 + $0x9e0] sm:$0xff] }
  0x6b   :  { %1301 = vmatpush1.bf16.msra.mxu0 %v1300_v4  ;;  %1431 = vmatprep.subr.bf16.mxu1 %v1430_v5  ;;  %v304_v4 = vld [vmem:[%s2762_s1 + $0x8d0] sm:$0xff]  ;;  %v162_v5 = vld [vmem:[%s2762_s1 + $0x460] sm:$0xff]  ;;  %v335_v61 = vld [vmem:[%s2762_s1 + $0x9c8] sm:$0xff] }
  0x6c   :  { %1303 = vmatprep.subr.bf16.mxu0 %v1302_v8  ;;  %v264_v8 = vld [vmem:[%s2762_s1 + $0x790] sm:$0xff]  ;;  %v1452_v11 = vpack.c.bf16 %v165_v17, %v162_v5  ;;  %v1324_v12 = vpack.c.bf16 %v307_v7, %v304_v4  ;;  %v243_v4 = vld [vmem:[%s2762_s1 + $0x6e8] sm:$0xff]  ;;  %v1342_v5 = vpack.c.bf16 %v338_v62, %v335_v61  ;;  %v337_v17 = vld [vmem:[%s2762_s1 + $0x9d8] sm:$0xff] }
  0x6d   :  { %v297_v7 = vld [vmem:[%s2762_s1 + $0x898] sm:$0xff] }
  0x6e   :  { %1433 = vmatpush3.bf16.msra.mxu1 %v1432_v13  ;;  %v1454_v13 = vpack.c.bf16 %v267_v19, %v264_v8  ;;  %v341_v8 = vld [vmem:[%s2762_s1 + $0x9f8] sm:$0xff]  ;;  %v344_v19 = vld [vmem:[%s2762_s1 + $0xa10] sm:$0xff] }
  0x6f   :  { %1305 = vmatpush1.bf16.msra.mxu0 %v1304_v14  ;;  %1435 = vmatprep.subr.bf16.mxu1 %v1434_v15  ;;  %v310_v14 = vld [vmem:[%s2762_s1 + $0x900] sm:$0xff]  ;;  %v216_v15 = vld [vmem:[%s2762_s1 + $0x610] sm:$0xff] }
  0x70   :  { %1307 = vmatprep.subr.bf16.mxu0 %v1306_v23  ;;  %v270_v23 = vld [vmem:[%s2762_s1 + $0x7c0] sm:$0xff]  ;;  %v1456_v28 = vpack.c.bf16 %v219_v20, %v216_v15  ;;  %v1346_v15 = vpack.c.bf16 %v344_v19, %v341_v8  ;;  %v343_v20 = vld [vmem:[%s2762_s1 + $0xa08] sm:$0xff] }
  0x72   :  { %1437 = vmatpush3.bf16.msra.mxu1 %v1436_v30  ;;  %v1328_v30 = vpack.c.bf16 %v313_v22, %v310_v14  ;;  %v249_v14 = vld [vmem:[%s2762_s1 + $0x718] sm:$0xff]  ;;  %v303_v22 = vld [vmem:[%s2762_s1 + $0x8c8] sm:$0xff] }
  0x73   :  { %1309 = vmatpush1.bf16.msra.mxu0 %v1308_v31  ;;  %1439 = vmatprep.subr.bf16.mxu1 %v1438_v32  ;;  %v1458_v31 = vpack.c.bf16 %v273_v24, %v270_v23  ;;  %v316_v32 = vld [vmem:[%s2762_s1 + $0x930] sm:$0xff]  ;;  %v347_v23 = vld [vmem:[%s2762_s1 + $0xa28] sm:$0xff]  ;;  %v350_v24 = vld [vmem:[%s2762_s1 + $0xa40] sm:$0xff] }
  0x74   :  { %1311 = vmatprep.subr.bf16.mxu0 %v1310_v36  ;;  %v319_v36 = vld [vmem:[%s2762_s1 + $0x948] sm:$0xff]  ;;  %v1350_v33 = vpack.c.bf16 %v350_v24, %v347_v23  ;;  %v376_v24 = vld [vmem:[%s2762_s1 + $0xb10] sm:$0xff] }
  0x76   :  { %1441 = vmatpush3.bf16.msra.mxu1 %v1440_v42  ;;  %v2417_v42 = vld [vmem:[%s2763_s0 + $0x38] sm:$0xff] }
  0x77   :  { %1313 = vmatpush1.bf16.msra.mxu0 %v1312_v43  ;;  %1443 = vmatprep.subr.bf16.mxu1 %v1442_v44  ;;  %v1462_v43 = vpack.c.bf16 %v279_v38, %v276_v37  ;;  %v322_v44 = vld [vmem:[%s2762_s1 + $0x960] sm:$0xff]  ;;  %v353_v37 = vld [vmem:[%s2762_s1 + $0xa58] sm:$0xff]  ;;  %v356_v38 = vld [vmem:[%s2762_s1 + $0xa70] sm:$0xff] }
  0x78   :  { %1315 = vmatprep.subr.bf16.mxu0 %v1314_v16  ;;  %v325_v16 = vld [vmem:[%s2762_s1 + $0x978] sm:$0xff]  ;;  %v1354_v45 = vpack.c.bf16 %v356_v38, %v353_v37  ;;  %v382_v38 = vld [vmem:[%s2762_s1 + $0xb40] sm:$0xff] }
  0x7a   :  { %1445 = vmatpush3.bf16.msra.mxu1 %v1444_v53  ;;  %v1336_v53 = vpack.c.bf16 %v325_v16, %v322_v44  ;;  %v261_v44 = vld [vmem:[%s2762_s1 + $0x778] sm:$0xff]  ;;  %v363_v16 = vld [vmem:[%s2762_s1 + $0xaa8] sm:$0xff] }
  0x7b   :  { %1317 = vmatpush1.bf16.msra.mxu0 %v1316_v54  ;;  %1447 = vmatprep.subr.bf16.mxu1 %v1446_v55  ;;  %v1466_v54 = vpack.c.bf16 %v285_v49, %v282_v48  ;;  %v234_v55 = vld [vmem:[%s2762_s1 + $0x6a0] sm:$0xff]  ;;  %v359_v48 = vld [vmem:[%s2762_s1 + $0xa88] sm:$0xff] }
  0x7c   :  { %1319 = vmatprep.subr.bf16.mxu0 %v1318_v59  ;;  %v288_v59 = vld [vmem:[%s2762_s1 + $0x850] sm:$0xff]  ;;  %v1468_v63 = vpack.c.bf16 %v237_v56, %v234_v55  ;;  %v362_v49 = vld [vmem:[%s2762_s1 + $0xaa0] sm:$0xff]  ;;  %v361_v56 = vld [vmem:[%s2762_s1 + $0xa98] sm:$0xff] }
  0x7d   :  { %v1358_v55 = vpack.c.bf16 %v362_v49, %v359_v48  ;;  %v388_v49 = vld [vmem:[%s2762_s1 + $0xb70] sm:$0xff] }
  0x7e   :  { %1449 = vmatpush3.bf16.msra.mxu1 %v1448_v1  ;;  %v1470_v1 = vpack.c.bf16 %v291_v60, %v288_v59  ;;  %v365_v59 = vld [vmem:[%s2762_s1 + $0xab8] sm:$0xff]  ;;  %v368_v60 = vld [vmem:[%s2762_s1 + $0xad0] sm:$0xff] }
  0x7f   :  { %1321 = vmatpush1.bf16.msra.mxu0 %v1320_v2  ;;  %1451 = vmatprep.subr.bf16.mxu1 %v1450_v3  ;;  %v334_v2 = vld [vmem:[%s2762_s1 + $0x9c0] sm:$0xff]  ;;  %v240_v3 = vld [vmem:[%s2762_s1 + $0x6d0] sm:$0xff] }
  0x80   :  { %1323 = vmatprep.subr.bf16.mxu0 %v1322_v6  ;;  %v294_v6 = vld [vmem:[%s2762_s1 + $0x880] sm:$0xff]  ;;  %v1472_v9 = vpack.c.bf16 %v243_v4, %v240_v3  ;;  %v1344_v10 = vpack.c.bf16 %v337_v17, %v334_v2  ;;  %v321_v2 = vld [vmem:[%s2762_s1 + $0x958] sm:$0xff]  ;;  %v1362_v3 = vpack.c.bf16 %v368_v60, %v365_v59  ;;  %v367_v4 = vld [vmem:[%s2762_s1 + $0xac8] sm:$0xff] }
  0x81   :  { %v375_v17 = vld [vmem:[%s2762_s1 + $0xb08] sm:$0xff]  ;;  %v394_v60 = vld [vmem:[%s2762_s1 + $0xba0] sm:$0xff] }
  0x82   :  { %1453 = vmatpush3.bf16.msra.mxu1 %v1452_v11  ;;  %v1474_v11 = vpack.c.bf16 %v297_v7, %v294_v6  ;;  %v371_v6 = vld [vmem:[%s2762_s1 + $0xae8] sm:$0xff]  ;;  %v374_v7 = vld [vmem:[%s2762_s1 + $0xb00] sm:$0xff] }
  0x83   :  { %1325 = vmatpush1.bf16.msra.mxu0 %v1324_v12  ;;  %1455 = vmatprep.subr.bf16.mxu1 %v1454_v13  ;;  %v340_v12 = vld [vmem:[%s2762_s1 + $0x9f0] sm:$0xff]  ;;  %v246_v13 = vld [vmem:[%s2762_s1 + $0x700] sm:$0xff] }
  0x84   :  { %1327 = vmatprep.subr.bf16.mxu0 %v1326_v21  ;;  %v300_v21 = vld [vmem:[%s2762_s1 + $0x8b0] sm:$0xff]  ;;  %v1476_v25 = vpack.c.bf16 %v249_v14, %v246_v13  ;;  %v1348_v26 = vpack.c.bf16 %v343_v20, %v340_v12  ;;  %v1366_v12 = vpack.c.bf16 %v374_v7, %v371_v6  ;;  %v378_v13 = vld [vmem:[%s2762_s1 + $0xb20] sm:$0xff]  ;;  %v381_v14 = vld [vmem:[%s2762_s1 + $0xb38] sm:$0xff] }
  0x85   :  { %842 = vmatmul.mubr.f32.vlgmr.msra.gmra.mrb[4].mxu1 %v1986_v18  ;;  %v1332_v18 = vpack.c.bf16 %v319_v36, %v316_v32  ;;  %v255_v32 = vld [vmem:[%s2762_s1 + $0x748] sm:$0xff]  ;;  %v309_v36 = vld [vmem:[%s2762_s1 + $0x8f8] sm:$0xff]  ;;  %v380_v20 = vld [vmem:[%s2762_s1 + $0xb30] sm:$0xff]  ;;  %v1498_v23 = vpack.c.bf16 %v381_v14, %v378_v13 }
  0x86   :  { %630 = vmatmul.mubr.f32.vlgmr.msra.gmra.mrb[0].mxu0 %v2386_v27  ;;  %1457 = vmatpush3.bf16.msra.mxu1 %v1456_v28  ;;  %v1478_v28 = vpack.c.bf16 %v303_v22, %v300_v21  ;;  %v354_v7 = vld [vmem:[%s2762_s1 + $0xa60] sm:$0xff] }
  0x87   :  { %1329 = vmatpush1.bf16.msra.mxu0 %v1328_v30  ;;  %1459 = vmatprep.subr.bf16.mxu1 %v1458_v31  ;;  %v346_v30 = vld [vmem:[%s2762_s1 + $0xa20] sm:$0xff]  ;;  %v252_v31 = vld [vmem:[%s2762_s1 + $0x730] sm:$0xff] }
  0x88   :  { %1331 = vmatprep.subr.bf16.mxu0 %v1330_v35  ;;  %911 = vmatprep.mubr.f32.mxu1 %v2132_v29  ;;  %v328_v29 = vld [vmem:[%s2762_s1 + $0x990] sm:$0xff]  ;;  %v306_v35 = vld [vmem:[%s2762_s1 + $0x8e0] sm:$0xff]  ;;  %v1480_v39 = vpack.c.bf16 %v255_v32, %v252_v31  ;;  %v1352_v40 = vpack.c.bf16 %v349_v34, %v346_v30  ;;  %v379_v30 = vld [vmem:[%s2762_s1 + $0xb28] sm:$0xff] }
  0x89   :  { %700 = vmatprep.mubr.f32.mxu0 %v2417_v42  ;;  %v1340_v0 = vpack.c.bf16 %v331_v58, %v328_v29  ;;  %v315_v29 = vld [vmem:[%s2762_s1 + $0x928] sm:$0xff]  ;;  %v369_v58 = vld [vmem:[%s2762_s1 + $0xad8] sm:$0xff]  ;;  %v384_v31 = vld [vmem:[%s2762_s1 + $0xb50] sm:$0xff] }
  0x8a   :  { %1461 = vmatpush3.bf16.msra.mxu1 %v1460_v41  ;;  %v1482_v41 = vpack.c.bf16 %v309_v36, %v306_v35  ;;  %v387_v32 = vld [vmem:[%s2762_s1 + $0xb68] sm:$0xff]  ;;  %v386_v34 = vld [vmem:[%s2762_s1 + $0xb60] sm:$0xff]  ;;  %v1372_v36 = vpack.c.bf16 %v379_v30, %v376_v24 }
  0x8b   :  { %1333 = vmatpush1.bf16.msra.mxu0 %v1332_v18  ;;  %1463 = vmatprep.subr.bf16.mxu1 %v1462_v43  ;;  %v352_v18 = vld [vmem:[%s2762_s1 + $0xa50] sm:$0xff]  ;;  %v258_v43 = vld [vmem:[%s2762_s1 + $0x760] sm:$0xff]  ;;  %v1502_v37 = vpack.c.bf16 %v387_v32, %v384_v31 }
  0x8c   :  { %1335 = vmatprep.subr.bf16.mxu0 %v1334_v47  ;;  %v360_v47 = vld [vmem:[%s2762_s1 + $0xa90] sm:$0xff]  ;;  %v1484_v50 = vpack.c.bf16 %v261_v44, %v258_v43  ;;  %v1356_v51 = vpack.c.bf16 %v355_v46, %v352_v18  ;;  %v385_v18 = vld [vmem:[%s2762_s1 + $0xb58] sm:$0xff]  ;;  %v390_v43 = vld [vmem:[%s2762_s1 + $0xb80] sm:$0xff] }
  0x8d   :  { %v393_v44 = vld [vmem:[%s2762_s1 + $0xb98] sm:$0xff]  ;;  %v392_v46 = vld [vmem:[%s2762_s1 + $0xb90] sm:$0xff]  ;;  %v406_v24 = vld [vmem:[%s2764_s2] sm:$0x7] }
  0x8e   :  { %1465 = vmatpush3.bf16.msra.mxu1 %v1464_v52  ;;  %v1486_v52 = vpack.c.bf16 %v363_v16, %v360_v47  ;;  %v1376_v16 = vpack.c.bf16 %v385_v18, %v382_v38  ;;  %v1506_v48 = vpack.c.bf16 %v393_v44, %v390_v43 }
  0x8f   :  { %1337 = vmatpush1.bf16.msra.mxu0 %v1336_v53  ;;  %1467 = vmatprep.subr.bf16.mxu1 %v1466_v54  ;;  %v358_v53 = vld [vmem:[%s2762_s1 + $0xa80] sm:$0xff]  ;;  %v312_v54 = vld [vmem:[%s2762_s1 + $0x910] sm:$0xff] }
  0x90   :  { %1339 = vmatprep.subr.bf16.mxu0 %v1338_v57  ;;  %v366_v57 = vld [vmem:[%s2762_s1 + $0xac0] sm:$0xff]  ;;  %v1488_v61 = vpack.c.bf16 %v315_v29, %v312_v54  ;;  %v1360_v62 = vpack.c.bf16 %v361_v56, %v358_v53  ;;  %v391_v53 = vld [vmem:[%s2762_s1 + $0xb88] sm:$0xff]  ;;  %v396_v54 = vld [vmem:[%s2762_s1 + $0xbb0] sm:$0xff] }
  0x91   :  { %v399_v29 = vld [vmem:[%s2762_s1 + $0xbc8] sm:$0xff]  ;;  %v398_v56 = vld [vmem:[%s2762_s1 + $0xbc0] sm:$0xff] }
  0x92   :  { %1469 = vmatpush3.bf16.msra.mxu1 %v1468_v63  ;;  %v1490_v63 = vpack.c.bf16 %v369_v58, %v366_v57  ;;  %v1380_v58 = vpack.c.bf16 %v391_v53, %v388_v49  ;;  %v1510_v59 = vpack.c.bf16 %v399_v29, %v396_v54 }
  0x93   :  { %1341 = vmatpush1.bf16.msra.mxu0 %v1340_v0  ;;  %1471 = vmatprep.subr.bf16.mxu1 %v1470_v1  ;;  %v364_v0 = vld [vmem:[%s2762_s1 + $0xab0] sm:$0xff]  ;;  %v318_v1 = vld [vmem:[%s2762_s1 + $0x940] sm:$0xff] }
  0x94   :  { %1343 = vmatprep.subr.bf16.mxu0 %v1342_v5  ;;  %v372_v5 = vld [vmem:[%s2762_s1 + $0xaf0] sm:$0xff]  ;;  %v1492_v8 = vpack.c.bf16 %v321_v2, %v318_v1  ;;  %v1364_v19 = vpack.c.bf16 %v367_v4, %v364_v0  ;;  %v397_v0 = vld [vmem:[%s2762_s1 + $0xbb8] sm:$0xff]  ;;  %v402_v1 = vld [vmem:[%s2762_s1 + $0xbe0] sm:$0xff] }
  0x95   :  { %v405_v2 = vld [vmem:[%s2762_s1 + $0xbf8] sm:$0xff]  ;;  %v404_v4 = vld [vmem:[%s2762_s1 + $0xbf0] sm:$0xff] }
  0x96   :  { %1473 = vmatpush3.bf16.msra.mxu1 %v1472_v9  ;;  %v1494_v9 = vpack.c.bf16 %v375_v17, %v372_v5  ;;  %v1384_v17 = vpack.c.bf16 %v397_v0, %v394_v60  ;;  %v1514_v6 = vpack.c.bf16 %v405_v2, %v402_v1 }
  0x97   :  { %1345 = vmatpush1.bf16.msra.mxu0 %v1344_v10  ;;  %1475 = vmatprep.subr.bf16.mxu1 %v1474_v11  ;;  %v324_v10 = vld [vmem:[%s2762_s1 + $0x970] sm:$0xff]  ;;  %v327_v11 = vld [vmem:[%s2762_s1 + $0x988] sm:$0xff] }
  0x98   :  { %1347 = vmatprep.subr.bf16.mxu0 %v1346_v15  ;;  %v377_v15 = vld [vmem:[%s2762_s1 + $0xb18] sm:$0xff]  ;;  %v1496_v21 = vpack.c.bf16 %v327_v11, %v324_v10 }
  0x9a   :  { %1477 = vmatpush3.bf16.msra.mxu1 %v1476_v25  ;;  %v330_v25 = vld [vmem:[%s2762_s1 + $0x9a0] sm:$0xff] }
  0x9b   :  { %1349 = vmatpush1.bf16.msra.mxu0 %v1348_v26  ;;  %1479 = vmatprep.subr.bf16.mxu1 %v1478_v28  ;;  %v333_v26 = vld [vmem:[%s2762_s1 + $0x9b8] sm:$0xff]  ;;  %v1370_v28 = vpack.c.bf16 %v380_v20, %v377_v15 }
  0x9c   :  { %1351 = vmatprep.subr.bf16.mxu0 %v1350_v33  ;;  %v383_v33 = vld [vmem:[%s2762_s1 + $0xb48] sm:$0xff]  ;;  %v1500_v35 = vpack.c.bf16 %v333_v26, %v330_v25 }
  0x9e   :  { %1481 = vmatpush3.bf16.msra.mxu1 %v1480_v39  ;;  %v336_v39 = vld [vmem:[%s2762_s1 + $0x9d0] sm:$0xff] }
  0x9f   :  { %1353 = vmatpush1.bf16.msra.mxu0 %v1352_v40  ;;  %1483 = vmatprep.subr.bf16.mxu1 %v1482_v41  ;;  %v339_v40 = vld [vmem:[%s2762_s1 + $0x9e8] sm:$0xff]  ;;  %v1374_v41 = vpack.c.bf16 %v386_v34, %v383_v33 }
  0xa0   :  { %1355 = vmatprep.subr.bf16.mxu0 %v1354_v45  ;;  %v389_v45 = vld [vmem:[%s2762_s1 + $0xb78] sm:$0xff]  ;;  %v1504_v47 = vpack.c.bf16 %v339_v40, %v336_v39 }
  0xa2   :  { %1485 = vmatpush3.bf16.msra.mxu1 %v1484_v50  ;;  %v342_v50 = vld [vmem:[%s2762_s1 + $0xa00] sm:$0xff] }
  0xa3   :  { %1357 = vmatpush1.bf16.msra.mxu0 %v1356_v51  ;;  %1487 = vmatprep.subr.bf16.mxu1 %v1486_v52  ;;  %v345_v51 = vld [vmem:[%s2762_s1 + $0xa18] sm:$0xff]  ;;  %v1378_v52 = vpack.c.bf16 %v392_v46, %v389_v45 }
  0xa4   :  { %1359 = vmatprep.subr.bf16.mxu0 %v1358_v55  ;;  %v395_v55 = vld [vmem:[%s2762_s1 + $0xba8] sm:$0xff]  ;;  %v1508_v57 = vpack.c.bf16 %v345_v51, %v342_v50 }
  0xa5   :  { %912 = vmatmul.mubr.f32.vlgmr.msra.gmra.mrb[6].mxu1 %v2386_v27  ;;  %v370_v27 = vld [vmem:[%s2762_s1 + $0xae0] sm:$0xff] }
  0xa6   :  { %1489 = vmatpush3.bf16.msra.mxu1 %v1488_v61  ;;  %981 = vmatprep.mubr.f32.mxu1 %v2417_v42  ;;  %v373_v42 = vld [vmem:[%s2762_s1 + $0xaf8] sm:$0xff]  ;;  %v348_v61 = vld [vmem:[%s2762_s1 + $0xa30] sm:$0xff] }
  0xa7   :  { %1361 = vmatpush1.bf16.msra.mxu0 %v1360_v62  ;;  %1491 = vmatprep.subr.bf16.mxu1 %v1490_v63  ;;  %v1368_v22 = vpack.c.bf16 %v373_v42, %v370_v27  ;;  %v351_v62 = vld [vmem:[%s2762_s1 + $0xa48] sm:$0xff]  ;;  %v1382_v63 = vpack.c.bf16 %v398_v56, %v395_v55 }
  0xa8   :  { %1363 = vmatprep.subr.bf16.mxu0 %v1362_v3  ;;  %v401_v3 = vld [vmem:[%s2762_s1 + $0xbd8] sm:$0xff]  ;;  %v1512_v5 = vpack.c.bf16 %v351_v62, %v348_v61  ;;  %v403_v27 = vld [vmem:[%s2762_s1 + $0xbe8] sm:$0xff] }
  0xaa   :  { %1493 = vmatpush3.bf16.msra.mxu1 %v1492_v8  ;;  %v357_v8 = vld [vmem:[%s2762_s1 + $0xa78] sm:$0xff] }
  0xab   :  { %1365 = vmatpush1.bf16.msra.mxu0 %v1364_v19  ;;  %1495 = vmatprep.subr.bf16.mxu1 %v1494_v9  ;;  %v1386_v19 = vpack.c.bf16 %v404_v4, %v401_v3  ;;  %v400_v9 = vld [vmem:[%s2762_s1 + $0xbd0] sm:$0xff]  ;;  %v1516_v10 = vpack.c.bf16 %v357_v8, %v354_v7 }
  0xac   :  { %1367 = vmatprep.subr.bf16.mxu0 %v1366_v12  ;;  %v1388_v11 = vpack.c.bf16 %v403_v27, %v400_v9  ;;  %v20_v12 = vld [vmem:[%s2763_s0 + $0x30] sm:$0xff] }
  0xae   :  { %1497 = vmatpush3.bf16.msra.mxu1 %v1496_v21  ;;  %v408_v21 = vlaneseq }
  0xaf   :  { %1369 = vmatpush1.bf16.msra.mxu0 %v1368_v22  ;;  %1499 = vmatprep.subr.bf16.mxu1 %v1498_v23 }
  0xb0   :  { %1371 = vmatprep.subr.bf16.mxu0 %v1370_v28  ;;  %v409_v22 = vshrl.u32 %v408_v21, 7 }
  0xb2   :  { %1501 = vmatpush3.bf16.msra.mxu1 %v1500_v35  ;;  %v418_v23 = vsub.s32 2, %v409_v22  ;;  %v414_v38 = vsub.s32 1, %v409_v22 }
  0xb3   :  { %1373 = vmatpush1.bf16.msra.mxu0 %v1372_v36  ;;  %1503 = vmatprep.subr.bf16.mxu1 %v1502_v37  ;;  %v410_v37 = vsub.s32 0, %v409_v22 }
  0xb4   :  { %1375 = vmatprep.subr.bf16.mxu0 %v1374_v41  ;;  %v419_v25 = vrot.slane %v406_v24, %v418_v23  ;;  %v415_v40 = vrot.slane %v406_v24, %v414_v38 }
  0xb5   :  { %v411_v39 = vrot.slane %v406_v24, %v410_v37 }
  0xb6   :  { %1505 = vmatpush3.bf16.msra.mxu1 %v1504_v47 }
  0xb7   :  { %1377 = vmatpush1.bf16.msra.mxu0 %v1376_v16  ;;  %1507 = vmatprep.subr.bf16.mxu1 %v1506_v48 }
  0xb8   :  { %1379 = vmatprep.subr.bf16.mxu0 %v1378_v52 }
  0xba   :  { %1509 = vmatpush3.bf16.msra.mxu1 %v1508_v57 }
  0xbb   :  { %1381 = vmatpush1.bf16.msra.mxu0 %v1380_v58  ;;  %1511 = vmatprep.subr.bf16.mxu1 %v1510_v59 }
  0xbc   :  { %1383 = vmatprep.subr.bf16.mxu0 %v1382_v63 }
  0xbe   :  { %1513 = vmatpush3.bf16.msra.mxu1 %v1512_v5 }
  0xbf   :  { %1385 = vmatpush1.bf16.msra.mxu0 %v1384_v17  ;;  %1515 = vmatprep.subr.bf16.mxu1 %v1514_v6 }
  0xc0   :  { %1387 = vmatprep.subr.bf16.mxu0 %v1386_v19 }
  0xc2   :  { %1517 = vmatpush3.bf16.msra.mxu1 %v1516_v10 }
  0xc3   :  { %1389 = vmatpush1.bf16.msra.mxu0 %v1388_v11 }
  0xc5   :  { %982 = vmatmul.mubr.f32.vlgmr.msra.gmra.mrb[8].mxu1 %v20_v12 }
  0xc6   :  { %701 = vmatmul.mubr.f32.vlgmr.msra.gmra.mrb[0].mxu0 %v20_v12 }
 0x118   :  { %v489_v42 = vpop.f32.mrb[0].mxu1 }
 0x119   :  { %v491_v13 = vpop.f32.mrb[1].mxu1  ;;  %v490_v41 = vadd.f32 %v489_v42, %v411_v39 }
 0x11a   :  { %v492_v43 = vadd.f32 %v491_v13, %v415_v40 }
 0x138   :  { %v1026_v14 = vpop.f32.mrb[2].mxu1 }
 0x139   :  { %v1027_v15 = vpop.f32.mrb[3].mxu1 }
 0x13a   :  { %v1028_v20 = vadd.f32 %v1027_v15, %v1026_v14 }
 0x13c   :  { %v774_v30 = vadd.f32 %v1028_v20, %v419_v25 }
 0x158   :  { %v1061_v26 = vpop.f32.mrb[4].mxu1 }
 0x159   :  { %v1062_v28 = vpop.f32.mrb[5].mxu1 }
 0x15a   :  { %v1063_v31 = vadd.f32 %v1062_v28, %v1061_v26 }
 0x15c   :  { %v844_v32 = vadd.f32 %v1063_v31, %v774_v30 }
 0x178   :  { %v1096_v33 = vpop.f32.mrb[6].mxu1 }
 0x179   :  { %v1097_v34 = vpop.f32.mrb[7].mxu1 }
 0x17a   :  { %v1098_v35 = vadd.f32 %v1097_v34, %v1096_v33 }
 0x17c   :  { %v914_v36 = vadd.f32 %v1098_v35, %v844_v32 }
 0x198   :  { %v1131_v18 = vpop.f32.mrb[8].mxu1 }
 0x199   :  { %v702_v44 = vpop.f32.mrb[0].mxu0  ;;  %v1132_v45 = vpop.f32.mrb[9].mxu1 }
 0x19a   :  { %v1519_v46 = vadd.f32 %v702_v44, %v490_v41  ;;  %v704_v47 = vpop.f32.mrb[1].mxu0  ;;  %v1133_v16 = vadd.f32 %v1132_v45, %v1131_v18 }
 0x19b   :  { %v1521_v48 = vadd.f32 %v704_v47, %v492_v43 }
 0x19c   :  { %987 = vst [vmem:[%s2765_s3] sm:$0xff] %v1519_v46  ;;  %v984_v49 = vadd.f32 %v1133_v16, %v914_v36 }
 0x19d   :  { %988 = vst [vmem:[%s2765_s3 + $0x8] sm:$0xff] %v1521_v48 }
 0x19e   :  { %989 = vst [vmem:[%s2765_s3 + $0x10] sm:$0xff] %v984_v49 }

// kernel: rnn_net_forward.9
= control target key start
LH: loop header
LB: loop body
LE: loop exit
PB: predicated region body
PF: predicated region fallthrough
CT: control target
= control target key end

     0   :  { %v1177_v7 = vmov 0.0|0.0   ;;  %v1178_v8 = vmov 0.0   ;;  %vm1179_vm0 = vmmov 0   ;;  %s1624_s0 = inlined_call_operand.vmem [shape: f32[3,2,384], index: 0, kind: input, shape index: {}]   ;;  %s1625_s1 = inlined_call_operand.vmem [shape: f32[128,384], index: 1, kind: input, shape index: {}]   ;;  %s1626_s2 = inlined_call_operand.vmem [shape: f32[1,384], index: 2, kind: input, shape index: {}]   ;;  %s1627_s3 = inlined_call_operand.vmem [shape: f32[128,128], index: 3, kind: input, shape index: {}]   ;;  %s1628_s4 = inlined_call_operand.vmem [shape: f32[1,128], index: 4, kind: input, shape index: {}]   ;;  %s1629_s5 = inlined_call_operand.hbm [shape: f32[2,128], index: 5, kind: output, shape index: {}]  }
   0x1   :  { %v27_v0 = vld [vmem:[%s1625_s1 + $0x8] sm:$0xff]  ;;  %v30_v1 = vld [vmem:[%s1625_s1 + $0x20] sm:$0xff]  ;;  %v29_v4 = vld [vmem:[%s1625_s1 + $0x18] sm:$0xff]  ;;  %959 = vmatprep.subr.bf16.mxu1 %v1177_v7  ;;  %25 = vst [vmem:[#allocation2] sm:$0x3] %v1178_v8  ;;  %157 = vmatprep.mubr.f32.mxu0 %v1178_v8 }
   0x2   :  { %v26_v2 = vld [vmem:[%s1625_s1] sm:$0xff]  ;;  %v1220_v3 = vpack.c.bf16 %v30_v1, %v27_v0  ;;  %v33_v5 = vld [vmem:[%s1625_s1 + $0x38] sm:$0xff]  ;;  %v36_v6 = vld [vmem:[%s1625_s1 + $0x50] sm:$0xff]  ;;  %819 = vmatprep.mubr.msk.f32.mxu1 %vm1179_vm0, %v1178_v8 }
   0x3   :  { %v1234_v9 = vpack.c.bf16 %v29_v4, %v26_v2  ;;  %v1236_v10 = vpack.c.bf16 %v36_v6, %v33_v5  ;;  %v32_v11 = vld [vmem:[%s1625_s1 + $0x30] sm:$0xff]  ;;  %v35_v12 = vld [vmem:[%s1625_s1 + $0x48] sm:$0xff]  ;;  %v42_v14 = vld [vmem:[%s1625_s1 + $0x80] sm:$0xff] }
   0x4   :  { %v39_v13 = vld [vmem:[%s1625_s1 + $0x68] sm:$0xff]  ;;  %928 = vmatprep.subr.bf16.mxu0 %v1220_v3  ;;  %v1254_v15 = vpack.c.bf16 %v35_v12, %v32_v11  ;;  %v38_v17 = vld [vmem:[%s1625_s1 + $0x60] sm:$0xff]  ;;  %v41_v18 = vld [vmem:[%s1625_s1 + $0x78] sm:$0xff] }
   0x5   :  { %930 = vmatpush1.bf16.msra.mxu0 %v1234_v9  ;;  %v1257_v16 = vpack.c.bf16 %v42_v14, %v39_v13  ;;  %v45_v19 = vld [vmem:[%s1625_s1 + $0x98] sm:$0xff]  ;;  %v48_v20 = vld [vmem:[%s1625_s1 + $0xb0] sm:$0xff]  ;;  %v1272_v21 = vpack.c.bf16 %v41_v18, %v38_v17  ;;  %v47_v24 = vld [vmem:[%s1625_s1 + $0xa8] sm:$0xff] }
   0x6   :  { %932 = vmatprep.subr.bf16.mxu0 %v1236_v10  ;;  %v1275_v22 = vpack.c.bf16 %v48_v20, %v45_v19  ;;  %v44_v23 = vld [vmem:[%s1625_s1 + $0x90] sm:$0xff]  ;;  %v51_v25 = vld [vmem:[%s1625_s1 + $0xc8] sm:$0xff]  ;;  %v54_v26 = vld [vmem:[%s1625_s1 + $0xe0] sm:$0xff] }
   0x7   :  { %v28_v27 = vld [vmem:[%s1625_s1 + $0x10] sm:$0xff]  ;;  %v31_v28 = vld [vmem:[%s1625_s1 + $0x28] sm:$0xff]  ;;  %v34_v30 = vld [vmem:[%s1625_s1 + $0x40] sm:$0xff]  ;;  %v1301_v31 = vpack.c.bf16 %v47_v24, %v44_v23  ;;  %v1307_v33 = vpack.c.bf16 %v54_v26, %v51_v25 }
   0x8   :  { %v1295_v29 = vpack.c.bf16 %v31_v28, %v28_v27  ;;  %v37_v32 = vld [vmem:[%s1625_s1 + $0x58] sm:$0xff]  ;;  %v50_v34 = vld [vmem:[%s1625_s1 + $0xc0] sm:$0xff]  ;;  %v60_v38 = vld [vmem:[%s1625_s1 + $0x110] sm:$0xff] }
   0x9   :  { %934 = vmatpush1.bf16.msra.mxu0 %v1254_v15  ;;  %v53_v35 = vld [vmem:[%s1625_s1 + $0xd8] sm:$0xff]  ;;  %v1319_v37 = vpack.c.bf16 %v37_v32, %v34_v30  ;;  %v40_v39 = vld [vmem:[%s1625_s1 + $0x70] sm:$0xff]  ;;  %v43_v40 = vld [vmem:[%s1625_s1 + $0x88] sm:$0xff] }
   0xa   :  { %936 = vmatprep.subr.bf16.mxu0 %v1257_v16  ;;  %v57_v36 = vld [vmem:[%s1625_s1 + $0xf8] sm:$0xff]  ;;  %961 = vmatpush3.bf16.msra.mxu1 %v1295_v29  ;;  %v1332_v41 = vpack.c.bf16 %v53_v35, %v50_v34  ;;  %v56_v42 = vld [vmem:[%s1625_s1 + $0xf0] sm:$0xff]  ;;  %v59_v44 = vld [vmem:[%s1625_s1 + $0x108] sm:$0xff]  ;;  %v1347_v46 = vpack.c.bf16 %v43_v40, %v40_v39 }
   0xb   :  { %962 = vmatprep.subr.bf16.mxu1 %v1177_v7  ;;  %v1338_v43 = vpack.c.bf16 %v60_v38, %v57_v36  ;;  %v63_v45 = vld [vmem:[%s1625_s1 + $0x128] sm:$0xff] }
   0xd   :  { %938 = vmatpush1.bf16.msra.mxu0 %v1272_v21 }
   0xe   :  { %940 = vmatprep.subr.bf16.mxu0 %v1275_v22  ;;  %964 = vmatpush3.bf16.msra.mxu1 %v1319_v37 }
  0x11   :  { %942 = vmatpush1.bf16.msra.mxu0 %v1301_v31 }
  0x12   :  { %944 = vmatprep.subr.bf16.mxu0 %v1307_v33 }
  0x13   :  { %10 = vsyncpa [#allocation4], 0  ;;  %v66_v47 = vld [vmem:[%s1625_s1 + $0x140] sm:$0xff]  ;;  %965 = vmatprep.subr.bf16.mxu1 %v1177_v7  ;;  %v49_v49 = vld [vmem:[%s1625_s1 + $0xb8] sm:$0xff]  ;;  %v1360_v50 = vpack.c.bf16 %v59_v44, %v56_v42  ;;  %v78_v18 = vlaneseq  ;;  %s1180_s25 = smov [#allocation3]  }
  0x14   :  { %v46_v48 = vld [vmem:[%s1625_s1 + $0xa0] sm:$0xff]  ;;  %v1363_v51 = vpack.c.bf16 %v66_v47, %v63_v45  ;;  %v65_v53 = vld [vmem:[%s1625_s1 + $0x138] sm:$0xff]  ;;  %967 = vmatpush3.bf16.msra.mxu1 %v1347_v46  ;;  %v72_v56 = vld [vmem:[%s1625_s1 + $0x170] sm:$0xff]  ;;  %s702_s26 = sshll.u32 %s1180_s25, 4  ;;  %s703_s26 = int_to_ptr.vmem [resolvable:$true] %s702_s26 }
  0x15   :  { %946 = vmatpush1.bf16.msra.mxu0 %v1332_v41  ;;  %v62_v52 = vld [vmem:[%s1625_s1 + $0x120] sm:$0xff]  ;;  %v69_v54 = vld [vmem:[%s1625_s1 + $0x158] sm:$0xff]  ;;  %v1375_v55 = vpack.c.bf16 %v49_v49, %v46_v48  ;;  %968 = vmatprep.subr.bf16.mxu1 %v1177_v7  ;;  %v52_v57 = vld [vmem:[%s1625_s1 + $0xd0] sm:$0xff]  ;;  %v79_v19 = vshrl.u32 %v78_v18, 7  ;;  %s1153_s27 = scalar_lea.vmem %s703_s26, 32  ;;  %p1158_p1 = scmp.lt.s32.totalorder %s703_s26, %s703_s26 }
  0x16   :  { %948 = vmatprep.subr.bf16.mxu0 %v1338_v43  ;;  %v55_v58 = vld [vmem:[%s1625_s1 + $0xe8] sm:$0xff]  ;;  %v1388_v59 = vpack.c.bf16 %v65_v53, %v62_v52  ;;  %v1391_v60 = vpack.c.bf16 %v72_v56, %v69_v54  ;;  %v68_v61 = vld [vmem:[%s1625_s1 + $0x150] sm:$0xff]  ;;  %v58_v0 = vld [vmem:[%s1625_s1 + $0x100] sm:$0xff]  ;;  %p1154_p0 = scmp.ne.s32.totalorder %s703_s26, %s1153_s27  ;;  %p1159_p2 = scmp.lt.s32.totalorder %s1153_s27, %s1153_s27 }
  0x17   :  { %v71_v62 = vld [vmem:[%s1625_s1 + $0x168] sm:$0xff]  ;;  %v1400_v63 = vpack.c.bf16 %v55_v58, %v52_v57  ;;  %v61_v1 = vld [vmem:[%s1625_s1 + $0x118] sm:$0xff]  ;;  %v64_v5 = vld [vmem:[%s1625_s1 + $0x130] sm:$0xff]  ;;  %v80_v20 = vsub.s32 0, %v79_v19  ;;  %v84_v24 = vsub.s32 1, %v79_v19  ;;  %v88_v47 = vsub.s32 2, %v79_v19 }
  0x18   :  { %970 = vmatpush3.bf16.msra.mxu1 %v1375_v55  ;;  %v1410_v2 = vpack.c.bf16 %v71_v62, %v68_v61  ;;  %v1414_v4 = vpack.c.bf16 %v61_v1, %v58_v0  ;;  %v67_v6 = vld [vmem:[%s1625_s1 + $0x148] sm:$0xff]  ;;  %v1424_v11 = vld [vmem:[#allocation2] sm:$0x3]  ;;  %v73_v14 = vld [vmem:[%s1625_s1 + $0x178] sm:$0xff]  ;;  %p1160_p3 = por %p1159_p2, %p1158_p1 }
  0x19   :  { %950 = vmatpush1.bf16.msra.mxu0 %v1360_v50  ;;  %971 = vmatprep.subr.bf16.mxu1 %v1177_v7  ;;  %v1427_v12 = vpack.c.bf16 %v67_v6, %v64_v5  ;;  %v70_v13 = vld [vmem:[%s1625_s1 + $0x160] sm:$0xff] }
  0x1a   :  { %952 = vmatprep.subr.bf16.mxu0 %v1363_v51  ;;  %v1441_v17 = vpack.c.bf16 %v73_v14, %v70_v13  ;;  %v74_v23 = vld [vmem:[%s1626_s2] sm:$0x7]  ;;  %p1161_p4 = pnand %p1160_p3, %p1154_p0 }
  0x1b   :  { %v1483_v25 = vrot.slane %v74_v23, %v80_v20  ;;  %v76_v26 = vld [vmem:[%s1624_s0] sm:$0x3f]  ;;  %v1492_v48 = vrot.slane %v74_v23, %v88_v47  ;;  %v603_v20 = vld [vmem:[%s1627_s3 + $0x8] sm:$0xff] }
  0x1c   :  { %973 = vmatpush3.bf16.msra.mxu1 %v1400_v63  ;;  %v242_v34 = vrot.slane %v76_v26, 2  ;;  %v252_v54 = vrot.slane %v76_v26, 4  ;;  %v602_v19 = vld [vmem:[%s1627_s3] sm:$0xff]  ;;  %v615_v47 = vld [vmem:[%s1627_s3 + $0x68] sm:$0xff] }
  0x1d   :  { %954 = vmatpush1.bf16.msra.mxu0 %v1388_v59  ;;  %974 = vmatprep.subr.bf16.mxu1 %v1177_v7 }
  0x1e   :  { %956 = vmatprep.subr.bf16.mxu0 %v1391_v60 }
  0x20   :  { %976 = vmatpush3.bf16.msra.mxu1 %v1414_v4 }
  0x21   :  { %958 = vmatpush1.bf16.msra.mxu0 %v1410_v2  ;;  %977 = vmatprep.subr.bf16.mxu1 %v1177_v7 }
  0x22   :  { %984 = vmatprep.subr.bf16.mxu0 %v1220_v3 }
  0x24   :  { %158 = vmatmul.mubr.f32.vlgmr.msra.gmra.mrb[0].mxu0 %v1424_v11  ;;  %979 = vmatpush3.bf16.msra.mxu1 %v1427_v12 }
  0x25   :  { %986 = vmatpush1.bf16.msra.mxu0 %v1234_v9  ;;  %326 = vmatprep.mubr.f32.mxu0 %v1178_v8 }
  0x26   :  { %988 = vmatprep.subr.bf16.mxu0 %v1236_v10  ;;  %980 = vmatprep.subr.bf16.mxu1 %v1177_v7 }
  0x28   :  { %982 = vmatpush3.bf16.msra.mxu1 %v1441_v17 }
  0x29   :  { %990 = vmatpush1.bf16.msra.mxu0 %v1254_v15  ;;  %1015 = vmatprep.subr.bf16.mxu1 %v1177_v7 }
  0x2a   :  { %992 = vmatprep.subr.bf16.mxu0 %v1257_v16 }
  0x2b   :  { %820 = vmatmul.mubr.f32.vlgmr.msra.gmra.mrb[0].mxu1 %v1424_v11 }
  0x2c   :  { %1017 = vmatpush3.bf16.msra.mxu1 %v1295_v29  ;;  %854 = vmatprep.mubr.msk.f32.mxu1 %vm1179_vm0, %v1178_v8 }
  0x2d   :  { %994 = vmatpush1.bf16.msra.mxu0 %v1272_v21  ;;  %1018 = vmatprep.subr.bf16.mxu1 %v1177_v7 }
  0x2e   :  { %996 = vmatprep.subr.bf16.mxu0 %v1275_v22 }
  0x30   :  { %1020 = vmatpush3.bf16.msra.mxu1 %v1319_v37 }
  0x31   :  { %998 = vmatpush1.bf16.msra.mxu0 %v1301_v31  ;;  %1021 = vmatprep.subr.bf16.mxu1 %v1177_v7 }
  0x32   :  { %1000 = vmatprep.subr.bf16.mxu0 %v1307_v33 }
  0x34   :  { %1023 = vmatpush3.bf16.msra.mxu1 %v1347_v46 }
  0x35   :  { %1002 = vmatpush1.bf16.msra.mxu0 %v1332_v41  ;;  %1024 = vmatprep.subr.bf16.mxu1 %v1177_v7 }
  0x36   :  { %1004 = vmatprep.subr.bf16.mxu0 %v1338_v43 }
  0x38   :  { %1026 = vmatpush3.bf16.msra.mxu1 %v1375_v55 }
  0x39   :  { %1006 = vmatpush1.bf16.msra.mxu0 %v1360_v50  ;;  %1027 = vmatprep.subr.bf16.mxu1 %v1177_v7 }
  0x3a   :  { %1008 = vmatprep.subr.bf16.mxu0 %v1363_v51 }
  0x3c   :  { %1029 = vmatpush3.bf16.msra.mxu1 %v1400_v63 }
  0x3d   :  { %1010 = vmatpush1.bf16.msra.mxu0 %v1388_v59  ;;  %1030 = vmatprep.subr.bf16.mxu1 %v1177_v7 }
  0x3e   :  { %1012 = vmatprep.subr.bf16.mxu0 %v1391_v60 }
  0x40   :  { %1032 = vmatpush3.bf16.msra.mxu1 %v1414_v4 }
  0x41   :  { %1014 = vmatpush1.bf16.msra.mxu0 %v1410_v2  ;;  %1033 = vmatprep.subr.bf16.mxu1 %v1177_v7 }
  0x42   :  { %1040 = vmatprep.subr.bf16.mxu0 %v1220_v3  ;;  %v1485_v3 = vrot.slane %v74_v23, %v84_v24  ;;  %v1096_v23 = vpack.c.bf16 %v603_v20, %v602_v19  ;;  %v604_v24 = vld [vmem:[%s1627_s3 + $0x10] sm:$0xff] }
  0x44   :  { %1035 = vmatpush3.bf16.msra.mxu1 %v1427_v12 }
  0x45   :  { %1036 = vmatprep.subr.bf16.mxu1 %v1177_v7 }
  0x48   :  { %1038 = vmatpush3.bf16.msra.mxu1 %v1441_v17 }
  0x49   :  { %1071 = vmatprep.subr.bf16.mxu1 %v1177_v7 }
  0xf7   :  { %v159_v27 = vpop.f32.mrb[0].mxu0 }
  0xf8   :  { %v160_v28 = vadd.f32 %v159_v27, %v1483_v25  ;;  %v161_v30 = vpop.f32.mrb[1].mxu0  ;;  %v606_v27 = vld [vmem:[%s1627_s3 + $0x20] sm:$0xff] }
  0xf9   :  { %v162_v32 = vadd.f32 %v161_v30, %v1485_v3 }
  0xfa   :  { %v234_v35 = vadd.f32 %v160_v28, %v76_v26  ;;  %v607_v28 = vld [vmem:[%s1627_s3 + $0x28] sm:$0xff] }
  0xfb   :  { %v244_v38 = vadd.f32 %v242_v34, %v162_v32  ;;  %v1102_v30 = vpack.c.bf16 %v607_v28, %v606_v27  ;;  %v608_v32 = vld [vmem:[%s1627_s3 + $0x30] sm:$0xff]  ;;  %v609_v34 = vld [vmem:[%s1627_s3 + $0x38] sm:$0xff] }
  0xfc   :  { %v710_v36 = vmul.f32 -1.442695, %v234_v35  ;;  %v1105_v35 = vpack.c.bf16 %v609_v34, %v608_v32 }
  0xfd   :  { %v711_v40 = vmul.f32 -1.442695, %v244_v38  ;;  %v611_v38 = vld [vmem:[%s1627_s3 + $0x48] sm:$0xff] }
  0xfe   :  { %1123 = vpow2.f32 %v710_v36  ;;  %v230_v39 = vpop.f32.mrb[0].mxu1  ;;  %v610_v36 = vld [vmem:[%s1627_s3 + $0x40] sm:$0xff] }
  0xff   :  { %v821_v42 = vpop.f32.mrb[1].mxu1  ;;  %1125 = vpow2.f32 %v711_v40  ;;  %v231_v53 = vadd.f32 %v230_v39, %v1492_v48  ;;  %v1108_v39 = vpack.c.bf16 %v611_v38, %v610_v36  ;;  %v612_v40 = vld [vmem:[%s1627_s3 + $0x50] sm:$0xff] }
 0x100   :  { %v613_v42 = vld [vmem:[%s1627_s3 + $0x58] sm:$0xff] }
 0x108   :  { %v1124_v44 = vpop.eup %1123 }
 0x109   :  { %v238_v45 = vadd.f32 1.0, %v1124_v44  ;;  %v1126_v49 = vpop.eup %1125  ;;  %v1111_v44 = vpack.c.bf16 %v613_v42, %v612_v40 }
 0x10a   :  { %v248_v52 = vadd.f32 1.0, %v1126_v49 }
 0x10b   :  { %1127 = vrcp.f32 %v238_v45  ;;  %v614_v45 = vld [vmem:[%s1627_s3 + $0x60] sm:$0xff] }
 0x10c   :  { %1129 = vrcp.f32 %v248_v52  ;;  %v1114_v49 = vpack.c.bf16 %v615_v47, %v614_v45  ;;  %v616_v52 = vld [vmem:[%s1627_s3 + $0x70] sm:$0xff] }
 0x115   :  { %v1128_v56 = vpop.eup %1127 }
 0x116   :  { %v251_v57 = vmul.f32 %v1128_v56, %v231_v53  ;;  %v1130_v61 = vpop.eup %1129  ;;  %v617_v53 = vld [vmem:[%s1627_s3 + $0x78] sm:$0xff]  ;;  %v715_v56 = vld [vmem:[%s1624_s0 + $0xc] sm:$0x3f] }
 0x117   :  { %v256_v62 = vsub.f32 1.0, %v1130_v61  ;;  %v258_v5 = vmul.f32 %v1130_v61, %v1424_v11 }
 0x118   :  { %v254_v58 = vadd.f32 %v252_v54, %v251_v57  ;;  %v1117_v54 = vpack.c.bf16 %v617_v53, %v616_v52 }
 0x11a   :  { %1131 = vtanh.f32 %v254_v58 }
 0x124   :  { %v1132_v0 = vpop.eup %1131 }
 0x125   :  { %v257_v1 = vmul.f32 %v1132_v0, %v256_v62 }
 0x127   :  { %v1496_v6 = vadd.f32 %v258_v5, %v257_v1  ;;  %v580_v5 = vrot.slane %v715_v56, 2 }
 0x129   :  { %327 = vmatmul.mubr.f32.vlgmr.msra.gmra.mrb[2].mxu0 %v1496_v6  ;;  %855 = vmatmul.mubr.f32.vlgmr.msra.gmra.mrb[2].mxu1 %v1496_v6 }
 0x12a   :  { %1042 = vmatpush1.bf16.msra.mxu0 %v1234_v9  ;;  %1073 = vmatpush3.bf16.msra.mxu1 %v1295_v29  ;;  %v712_v9 = vld [vmem:[%s1624_s0 + $0x6] sm:$0x3f] }
 0x12b   :  { %1044 = vmatprep.subr.bf16.mxu0 %v1236_v10  ;;  %1074 = vmatprep.subr.bf16.mxu1 %v1177_v7 }
 0x12c   :  { %495 = vmatprep.mubr.f32.mxu0 %v1178_v8  ;;  %889 = vmatprep.mubr.msk.f32.mxu1 %vm1179_vm0, %v1178_v8 }
 0x12e   :  { %1046 = vmatpush1.bf16.msra.mxu0 %v1254_v15  ;;  %1076 = vmatpush3.bf16.msra.mxu1 %v1319_v37 }
 0x12f   :  { %1048 = vmatprep.subr.bf16.mxu0 %v1257_v16  ;;  %1077 = vmatprep.subr.bf16.mxu1 %v1177_v7 }
 0x132   :  { %1050 = vmatpush1.bf16.msra.mxu0 %v1272_v21  ;;  %1079 = vmatpush3.bf16.msra.mxu1 %v1347_v46 }
 0x133   :  { %1052 = vmatprep.subr.bf16.mxu0 %v1275_v22  ;;  %1080 = vmatprep.subr.bf16.mxu1 %v1177_v7 }
 0x136   :  { %1054 = vmatpush1.bf16.msra.mxu0 %v1301_v31  ;;  %1082 = vmatpush3.bf16.msra.mxu1 %v1375_v55  ;;  %v411_v31 = vrot.slane %v712_v9, 2 }
 0x137   :  { %1056 = vmatprep.subr.bf16.mxu0 %v1307_v33  ;;  %1083 = vmatprep.subr.bf16.mxu1 %v1177_v7 }
 0x13a   :  { %1058 = vmatpush1.bf16.msra.mxu0 %v1332_v41  ;;  %1085 = vmatpush3.bf16.msra.mxu1 %v1400_v63 }
 0x13b   :  { %1060 = vmatprep.subr.bf16.mxu0 %v1338_v43  ;;  %1086 = vmatprep.subr.bf16.mxu1 %v1177_v7 }
 0x13e   :  { %1062 = vmatpush1.bf16.msra.mxu0 %v1360_v50  ;;  %1088 = vmatpush3.bf16.msra.mxu1 %v1414_v4 }
 0x13f   :  { %1064 = vmatprep.subr.bf16.mxu0 %v1363_v51  ;;  %1089 = vmatprep.subr.bf16.mxu1 %v1177_v7 }
 0x142   :  { %1066 = vmatpush1.bf16.msra.mxu0 %v1388_v59  ;;  %1091 = vmatpush3.bf16.msra.mxu1 %v1427_v12 }
 0x143   :  { %1068 = vmatprep.subr.bf16.mxu0 %v1391_v60  ;;  %1092 = vmatprep.subr.bf16.mxu1 %v1177_v7  ;;  %v421_v60 = vrot.slane %v712_v9, 4 }
 0x146   :  { %1070 = vmatpush1.bf16.msra.mxu0 %v1410_v2  ;;  %1094 = vmatpush3.bf16.msra.mxu1 %v1441_v17 }
 0x147   :  { %1095 = vmatprep.subr.bf16.mxu0 %v1177_v7 }
 0x1fc   :  { %v328_v10 = vpop.f32.mrb[2].mxu0  ;;  %v399_v15 = vpop.f32.mrb[2].mxu1 }
 0x1fd   :  { %v329_v16 = vadd.f32 %v328_v10, %v1483_v25  ;;  %v330_v21 = vpop.f32.mrb[3].mxu0  ;;  %v856_v22 = vpop.f32.mrb[3].mxu1  ;;  %v400_v59 = vadd.f32 %v399_v15, %v1492_v48 }
 0x1fe   :  { %v331_v29 = vadd.f32 %v330_v21, %v1485_v3 }
 0x1ff   :  { %v403_v33 = vadd.f32 %v712_v9, %v329_v16 }
 0x200   :  { %v413_v41 = vadd.f32 %v411_v31, %v331_v29  ;;  %v590_v31 = vrot.slane %v715_v56, 4 }
 0x201   :  { %v713_v37 = vmul.f32 -1.442695, %v403_v33 }
 0x202   :  { %v714_v43 = vmul.f32 -1.442695, %v413_v41 }
 0x203   :  { %1133 = vpow2.f32 %v713_v37 }
 0x204   :  { %1135 = vpow2.f32 %v714_v43 }
 0x20d   :  { %v1134_v46 = vpop.eup %1133 }
 0x20e   :  { %v407_v50 = vadd.f32 1.0, %v1134_v46  ;;  %v1136_v51 = vpop.eup %1135 }
 0x20f   :  { %v417_v55 = vadd.f32 1.0, %v1136_v51 }
 0x210   :  { %1137 = vrcp.f32 %v407_v50 }
 0x211   :  { %1139 = vrcp.f32 %v417_v55  ;;  %v718_v55 = vld [vmem:[%s1628_s4] ss:$0 sm:$0xff] }
 0x21a   :  { %v1138_v63 = vpop.eup %1137 }
 0x21b   :  { %v420_v2 = vmul.f32 %v1138_v63, %v400_v59  ;;  %v1140_v11 = vpop.eup %1139 }
 0x21c   :  { %v425_v12 = vsub.f32 1.0, %v1140_v11  ;;  %v427_v17 = vmul.f32 %v1140_v11, %v1496_v6 }
 0x21d   :  { %v423_v4 = vadd.f32 %v421_v60, %v420_v2 }
 0x21f   :  { %1141 = vtanh.f32 %v423_v4 }
 0x229   :  { %v1142_v13 = vpop.eup %1141 }
 0x22a   :  { %v426_v14 = vmul.f32 %v1142_v13, %v425_v12 }
 0x22c   :  { %v1541_v18 = vadd.f32 %v427_v17, %v426_v14 }
 0x22e   :  { %496 = vmatmul.mubr.f32.vlgmr.msra.gmra.mrb[4].mxu0 %v1541_v18  ;;  %890 = vmatmul.mubr.f32.vlgmr.msra.gmra.mrb[4].mxu1 %v1541_v18 }
 0x22f   :  { %924 = vmatprep.mubr.msk.f32.mxu0 %vm1179_vm0, %v1178_v8  ;;  %1097 = vmatpush3.bf16.msra.mxu0 %v1096_v23  ;;  %v605_v8 = vld [vmem:[%s1627_s3 + $0x18] sm:$0xff] }
 0x230   :  { %1098 = vmatprep.subr.bf16.mxu0 %v1177_v7  ;;  %v1099_v26 = vpack.c.bf16 %v605_v8, %v604_v24 }
 0x233   :  { %1100 = vmatpush3.bf16.msra.mxu0 %v1099_v26 }
 0x234   :  { %1101 = vmatprep.subr.bf16.mxu0 %v1177_v7 }
 0x237   :  { %1103 = vmatpush3.bf16.msra.mxu0 %v1102_v30 }
 0x238   :  { %1104 = vmatprep.subr.bf16.mxu0 %v1177_v7 }
 0x23b   :  { %1106 = vmatpush3.bf16.msra.mxu0 %v1105_v35 }
 0x23c   :  { %1107 = vmatprep.subr.bf16.mxu0 %v1177_v7 }
 0x23f   :  { %1109 = vmatpush3.bf16.msra.mxu0 %v1108_v39 }
 0x240   :  { %1110 = vmatprep.subr.bf16.mxu0 %v1177_v7 }
 0x243   :  { %1112 = vmatpush3.bf16.msra.mxu0 %v1111_v44 }
 0x244   :  { %1113 = vmatprep.subr.bf16.mxu0 %v1177_v7 }
 0x247   :  { %1115 = vmatpush3.bf16.msra.mxu0 %v1114_v49 }
 0x248   :  { %1116 = vmatprep.subr.bf16.mxu0 %v1177_v7 }
 0x24b   :  { %1118 = vmatpush3.bf16.msra.mxu0 %v1117_v54 }
 0x301   :  { %v497_v57 = vpop.f32.mrb[4].mxu0  ;;  %v568_v58 = vpop.f32.mrb[4].mxu1 }
 0x302   :  { %v498_v61 = vadd.f32 %v497_v57, %v1483_v25  ;;  %v499_v62 = vpop.f32.mrb[5].mxu0  ;;  %v891_v0 = vpop.f32.mrb[5].mxu1  ;;  %v569_v29 = vadd.f32 %v568_v58, %v1492_v48 }
 0x303   :  { %v500_v1 = vadd.f32 %v499_v62, %v1485_v3 }
 0x304   :  { %v572_v6 = vadd.f32 %v715_v56, %v498_v61 }
 0x305   :  { %v582_v10 = vadd.f32 %v580_v5, %v500_v1 }
 0x306   :  { %v716_v9 = vmul.f32 -1.442695, %v572_v6 }
 0x307   :  { %v717_v15 = vmul.f32 -1.442695, %v582_v10 }
 0x308   :  { %1143 = vpow2.f32 %v716_v9 }
 0x309   :  { %1145 = vpow2.f32 %v717_v15 }
 0x312   :  { %v1144_v7 = vpop.eup %1143 }
 0x313   :  { %v576_v16 = vadd.f32 1.0, %v1144_v7  ;;  %v1146_v21 = vpop.eup %1145 }
 0x314   :  { %v586_v22 = vadd.f32 1.0, %v1146_v21 }
 0x315   :  { %1147 = vrcp.f32 %v576_v16 }
 0x316   :  { %1149 = vrcp.f32 %v586_v22 }
 0x31f   :  { %v1148_v25 = vpop.eup %1147 }
 0x320   :  { %v589_v33 = vmul.f32 %v1148_v25, %v569_v29  ;;  %v1150_v3 = vpop.eup %1149 }
 0x321   :  { %v594_v41 = vsub.f32 1.0, %v1150_v3  ;;  %v596_v50 = vmul.f32 %v1150_v3, %v1541_v18 }
 0x322   :  { %v592_v37 = vadd.f32 %v590_v31, %v589_v33 }
 0x324   :  { %1151 = vtanh.f32 %v592_v37 }
 0x32e   :  { %v1152_v43 = vpop.eup %1151 }
 0x32f   :  { %v595_v46 = vmul.f32 %v1152_v43, %v594_v41 }
 0x331   :  { %v597_v51 = vadd.f32 %v596_v50, %v595_v46 }
 0x333   :  { %598 = vst [vmem:[#allocation2] sm:$0x3] %v597_v51  ;;  %925 = vmatmul.mubr.f32.vlgmr.msra.gmra.mrb[6].mxu0 %v597_v51 }
 0x406   :  { %v691_v48 = vpop.f32.mrb[6].mxu0 }
 0x407   :  { %v692_v59 = vadd.f32 %v718_v55, %v691_v48  ;;  %v926_v60 = vpop.f32.mrb[7].mxu0 }
 0x409   :  { %695 = vst [vmem:[#allocation3] sm:$0x3] %v692_v59 }
 0x40a   :  { %1164 = shalt.err (!%p1161_p4)
}
 0x40b   :  { %s1165_s30 = scalar_lea.hbm %s1629_s5, 32 }
 0x40c   :  { %p1166_p5 = scmp.ne.s32.totalorder %s1629_s5, %s1165_s30  ;;  %p1169_p6 = scmp.lt.u32.totalorder %s1165_s30, %s1629_s5 }
 0x40e   :  { %p1171_p7 = pnand %p1169_p6, %p1166_p5 }
 0x410   :  { %1174 = shalt.err (!%p1171_p7)
}
 0x411   :  { %705 = dma.vmem_to_hbm [thread:$0]  %s703_s26, 32, %s1629_s5, [#allocation4]  }
 0x412   :  { %1175 = dma.done.wait [#allocation4], 32  }
 0x413   :  { %1176 = vsyncadd [#allocation4], 4294967264 }
 0x414   :  { %709 = vsyncpa [#allocation4], 1 }

</bundles_post_ra>
